<compile_context>
chip_gen: v5e
topology: v5e:2x2
jax: 0.10.0
libtpu: 0.0.40
codegen_flags: <defaults>
</compile_context>

<pallas_src>
import jax
import jax.numpy as jnp
from jax import lax
from jax.experimental import pallas as pl
from jax.experimental.pallas import tpu as pltpu

_BN_EPS = 1e-5

# ---------------------------------------------------------------------------
# Pallas kernels (built & cached per shape signature)
# ---------------------------------------------------------------------------
_CONV_CACHE = {}
_POOL_CACHE = {}


def _build_conv_block_call(x_shape, w_shape, padding, dtype):
    """Fused Conv2d(stride 1) + folded-BN + PReLU kernel for one layer signature."""
    N, H, W, Cin = x_shape
    KH, KW, Cin_w, Cout = w_shape
    ph, pw = padding
    assert Cin == Cin_w
    assert 2 * ph == KH - 1 and 2 * pw == KW - 1, "only 'same'-size stride-1 convs"
    Hp, Wp = H + 2 * ph, W + 2 * pw
    padded = ph > 0 or pw > 0

    def kernel(x_ref, w_ref, sb_ref, alpha_ref, o_ref, *scratch):
        if padded:
            xp_ref = scratch[0]
            # In-kernel zero padding into a VMEM scratch.
            xp_ref[...] = jnp.zeros(xp_ref.shape, jnp.float32)
            xp_ref[:, ph:ph + H, pw:pw + W, :] = x_ref[...].astype(jnp.float32)

            def window(i, j):
                return xp_ref[:, i:i + H, j:j + W, :]
        else:
            def window(i, j):
                del i, j
                return x_ref[...].astype(jnp.float32)

        # Conv as per-tap MXU matmuls: Cin on the contraction axis, Cout on lanes.
        acc = jnp.zeros((N * H * W, Cout), jnp.float32)
        for i in range(KH):
            for j in range(KW):
                lhs = window(i, j).reshape(N * H * W, Cin)
                acc = acc + jnp.dot(lhs, w_ref[i, j],
                                    preferred_element_type=jnp.float32)

        scale = sb_ref[0:1, :]            # (1, Cout): gamma / sqrt(var + eps)
        bias = sb_ref[1:2, :]             # (1, Cout): folded conv bias + BN shift
        y = acc * scale + bias
        alpha = alpha_ref[0]              # PReLU slope (scalar from SMEM)
        y = jnp.where(y >= 0.0, y, alpha * y)
        o_ref[...] = y.astype(o_ref.dtype)

    scratch_shapes = [pltpu.VMEM((N, Hp, Wp, Cin), jnp.float32)] if padded else []

    call = pl.pallas_call(
        kernel,
        out_shape=jax.ShapeDtypeStruct((N * H * W, Cout), dtype),
        in_specs=[
            pl.BlockSpec(memory_space=pltpu.MemorySpace.VMEM),   # x  (whole batch)
            pl.BlockSpec(memory_space=pltpu.MemorySpace.VMEM),   # weights (HWIO)
            pl.BlockSpec(memory_space=pltpu.MemorySpace.VMEM),   # packed scale/bias
            pl.BlockSpec(memory_space=pltpu.MemorySpace.SMEM),   # PReLU alpha
        ],
        out_specs=pl.BlockSpec(memory_space=pltpu.MemorySpace.VMEM),
        scratch_shapes=scratch_shapes,
    )

    def run(x, w, sb, alpha):
        y = call(x, w, sb, alpha)              # (N*H*W, Cout), lane-dense on Cout
        return y.reshape(N, H, W, Cout)        # free reshape in the wrapper

    return jax.jit(run)


def _build_pool_call(x_shape, mode, dtype):
    """3x3 / stride 1 / pad 1 max or avg pool (PyTorch semantics)."""
    N, H, W, C = x_shape

    def kernel(x_ref, o_ref, xp_ref):
        fill = -jnp.inf if mode == "max" else 0.0
        xp_ref[...] = jnp.full(xp_ref.shape, fill, jnp.float32)
        xp_ref[:, 1:1 + H, 1:1 + W, :] = x_ref[...].astype(jnp.float32)
        acc = None
        for i in range(3):
            for j in range(3):
                win = xp_ref[:, i:i + H, j:j + W, :]
                if acc is None:
                    acc = win
                elif mode == "max":
                    acc = jnp.maximum(acc, win)
                else:
                    acc = acc + win
        if mode == "avg":                      # count_include_pad=True -> /9 always
            acc = acc * (1.0 / 9.0)
        o_ref[...] = acc.astype(o_ref.dtype)

    call = pl.pallas_call(
        kernel,
        out_shape=jax.ShapeDtypeStruct((N, H, W, C), dtype),
        in_specs=[pl.BlockSpec(memory_space=pltpu.MemorySpace.VMEM)],
        out_specs=pl.BlockSpec(memory_space=pltpu.MemorySpace.VMEM),
        scratch_shapes=[pltpu.VMEM((N, H + 2, W + 2, C), jnp.float32)],
    )
    return jax.jit(call)


def conv_pallas(p, x):
    key = ("conv", x.shape, p["w"].shape, p["padding"], x.dtype)
    fn = _CONV_CACHE.get(key)
    if fn is None:
        fn = _build_conv_block_call(x.shape, p["w"].shape, p["padding"], x.dtype)
        _CONV_CACHE[key] = fn
    return fn(x, p["w"], p["sb"], p["alpha"])


def pool_pallas(x, mode):
    key = ("pool", x.shape, mode, x.dtype)
    fn = _POOL_CACHE.get(key)
    if fn is None:
        fn = _build_pool_call(x.shape, mode, x.dtype)
        _POOL_CACHE[key] = fn
    return fn(x)


# ---------------------------------------------------------------------------
# Pure-JAX reference (mirrors the PyTorch forward; eval-mode BN)
# ---------------------------------------------------------------------------
def conv_ref(p, x):
    ph, pw = p["padding"]
    y = lax.conv_general_dilated(
        x, p["w"], (1, 1), [(ph, ph), (pw, pw)],
        dimension_numbers=("NHWC", "HWIO", "NHWC"),
        precision=lax.Precision.HIGHEST)
    y = y + p["b"][None, None, None, :]
    inv = p["gamma"] / jnp.sqrt(p["var"] + _BN_EPS)
    y = (y - p["mean"][None, None, None, :]) * inv[None, None, None, :] \
        + p["beta"][None, None, None, :]
    return jnp.where(y >= 0, y, p["alpha"][0] * y)


def pool_ref(x, mode):
    if mode == "max":
        return lax.reduce_window(x, -jnp.inf, lax.max, (1, 3, 3, 1), (1, 1, 1, 1),
                                 [(0, 0), (1, 1), (1, 1), (0, 0)])
    s = lax.reduce_window(x, 0.0, lax.add, (1, 3, 3, 1), (1, 1, 1, 1),
                          [(0, 0), (1, 1), (1, 1), (0, 0)])
    return s / 9.0


# ---------------------------------------------------------------------------
# Parameters (deterministic synthetic init) and block composition
# ---------------------------------------------------------------------------
def _keygen(key):
    i = 0
    while True:
        yield jax.random.fold_in(key, i)
        i += 1


def make_conv_block(kg, c_in, c_out, ksize, padding=1):
    kh, kw = (ksize, ksize) if isinstance(ksize, int) else ksize
    ph, pw = (padding, padding) if isinstance(padding, int) else padding
    k_w, k_b, k_g, k_be, k_m, k_v = jax.random.split(next(kg), 6)
    fan_in = kh * kw * c_in
    wb = (6.0 / fan_in) ** 0.5                 # keeps activation magnitudes ~O(1)
    w = jax.random.uniform(k_w, (kh, kw, c_in, c_out), jnp.float32, -wb, wb)
    b = jax.random.uniform(k_b, (c_out,), jnp.float32, -0.1, 0.1)
    gamma = 1.0 + 0.1 * jax.random.normal(k_g, (c_out,), jnp.float32)
    beta = 0.1 * jax.random.normal(k_be, (c_out,), jnp.float32)
    mean = 0.1 * jax.random.normal(k_m, (c_out,), jnp.float32)
    var = 1.0 + 0.2 * jax.random.uniform(k_v, (c_out,), jnp.float32)
    scale = gamma / jnp.sqrt(var + _BN_EPS)
    bias = (b - mean) * scale + beta
    return {
        "w": w, "b": b, "gamma": gamma, "beta": beta, "mean": mean, "var": var,
        "alpha": jnp.array([0.25], jnp.float32),          # nn.PReLU() default
        "sb": jnp.stack([scale, bias], axis=0),           # packed (2, Cout)
        "padding": (ph, pw),
    }


def make_stem(kg, in_ch, I):
    return {
        "conv1": make_conv_block(kg, in_ch, I, 3),
        "conv2": make_conv_block(kg, I, I, 3),
        "conv3": make_conv_block(kg, I, 2 * I, 3),
        "branch1": make_conv_block(kg, 2 * I, 3 * I, 3),
        "branch1_1": [make_conv_block(kg, 5 * I, 2 * I, 1, 0),
                      make_conv_block(kg, 2 * I, 2 * I, (1, 7), (0, 3)),
                      make_conv_block(kg, 2 * I, 2 * I, (7, 1), (3, 0)),
                      make_conv_block(kg, 2 * I, 3 * I, 3)],
        "branch2_1": [make_conv_block(kg, 5 * I, 2 * I, 1, 0),
                      make_conv_block(kg, 2 * I, 3 * I, 3)],
        "branch1_2": make_conv_block(kg, 6 * I, 6 * I, 3),
    }


def stem_fwd(p, x, conv, pool):
    out = conv(p["conv1"], x)
    out = conv(p["conv2"], out)
    out = conv(p["conv3"], out)
    b1 = conv(p["branch1"], out)
    b2 = pool(out, "max")
    out = jnp.concatenate([b1, b2], axis=-1)
    b1 = out
    for q in p["branch1_1"]:
        b1 = conv(q, b1)
    b2 = out
    for q in p["branch2_1"]:
        b2 = conv(q, b2)
    out = jnp.concatenate([b1, b2], axis=-1)
    b1 = conv(p["branch1_2"], out)
    b2 = pool(out, "max")
    return jnp.concatenate([b1, b2], axis=-1)


def make_inceptionA(kg, in_ch, I):
    return {
        "branch1": [make_conv_block(kg, in_ch, 2 * I, 1, 0),
                    make_conv_block(kg, 2 * I, 3 * I, 3),
                    make_conv_block(kg, 3 * I, 3 * I, 3)],
        "branch2": [make_conv_block(kg, in_ch, 2 * I, 1, 0),
                    make_conv_block(kg, 2 * I, 3 * I, 3)],
        "branch3": make_conv_block(kg, in_ch, 3 * I, 1, 0),
        "branch4": make_conv_block(kg, in_ch, 3 * I, 1, 0),
    }


def inceptionA_fwd(p, x, conv, pool):
    b1 = x
    for q in p["branch1"]:
        b1 = conv(q, b1)
    b2 = x
    for q in p["branch2"]:
        b2 = conv(q, b2)
    b3 = conv(p["branch3"], pool(x, "max"))
    b4 = conv(p["branch4"], x)
    return jnp.concatenate([b1, b2, b3, b4], axis=-1)


def make_inceptionB(kg, in_ch, I):
    return {
        "branch1": [make_conv_block(kg, in_ch, 6 * I, 1, 0),
                    make_conv_block(kg, 6 * I, 6 * I, (7, 1), (3, 0)),
                    make_conv_block(kg, 6 * I, 7 * I, (1, 7), (0, 3)),
                    make_conv_block(kg, 7 * I, 7 * I, (7, 1), (3, 0)),
                    make_conv_block(kg, 7 * I, 8 * I, (1, 7), (0, 3))],
        "branch2": [make_conv_block(kg, in_ch, 6 * I, 1, 0),
                    make_conv_block(kg, 6 * I, 7 * I, (1, 7), (0, 3)),
                    make_conv_block(kg, 7 * I, 8 * I, (7, 1), (3, 0))],
        "branch3": make_conv_block(kg, in_ch, 4 * I, 1, 0),
        "branch4": make_conv_block(kg, in_ch, 12 * I, 1, 0),
    }


def inceptionB_fwd(p, x, conv, pool):
    b1 = x
    for q in p["branch1"]:
        b1 = conv(q, b1)
    b2 = x
    for q in p["branch2"]:
        b2 = conv(q, b2)
    b3 = conv(p["branch3"], pool(x, "avg"))
    b4 = conv(p["branch4"], x)
    return jnp.concatenate([b1, b2, b3, b4], axis=-1)


def make_inceptionC(kg, in_ch, I):
    return {
        "branch1": [make_conv_block(kg, in_ch, 12 * I, 1, 0),
                    make_conv_block(kg, 12 * I, 14 * I, (3, 1), (1, 0)),
                    make_conv_block(kg, 14 * I, 16 * I, (1, 3), (0, 1))],
        "branch1_1": make_conv_block(kg, 16 * I, 8 * I, (1, 3), (0, 1)),
        "branch1_2": make_conv_block(kg, 16 * I, 8 * I, (3, 1), (1, 0)),
        "branch2": make_conv_block(kg, in_ch, 12 * I, 1, 0),
        "branch2_1": make_conv_block(kg, 12 * I, 8 * I, (1, 3), (0, 1)),
        "branch2_2": make_conv_block(kg, 12 * I, 8 * I, (3, 1), (1, 0)),
        "branch3": make_conv_block(kg, in_ch, 8 * I, 3),          # default padding=1
        "branch4": make_conv_block(kg, in_ch, 8 * I, 1, 0),
    }


def inceptionC_fwd(p, x, conv, pool):
    b1 = x
    for q in p["branch1"]:
        b1 = conv(q, b1)
    b1 = jnp.concatenate([conv(p["branch1_1"], b1), conv(p["branch1_2"], b1)], axis=-1)
    b2 = conv(p["branch2"], x)
    b2 = jnp.concatenate([conv(p["branch2_1"], b2), conv(p["branch2_2"], b2)], axis=-1)
    b3 = conv(p["branch3"], pool(x, "max"))
    b4 = conv(p["branch4"], x)
    return jnp.concatenate([b1, b2, b3, b4], axis=-1)


def make_reductionA(kg, in_ch, I):
    return {
        "branch1": [make_conv_block(kg, in_ch, 6 * I, 1, 0),
                    make_conv_block(kg, 6 * I, 7 * I, 3),
                    make_conv_block(kg, 7 * I, 8 * I, 3, 1)],
        "branch2": make_conv_block(kg, in_ch, 12 * I, 3),
    }


def reductionA_fwd(p, x, conv, pool):
    b1 = x
    for q in p["branch1"]:
        b1 = conv(q, b1)
    b2 = conv(p["branch2"], x)
    b3 = pool(x, "max")
    return jnp.concatenate([b1, b2, b3], axis=-1)


def make_reductionB(kg, in_ch, I):
    return {
        "branch1": [make_conv_block(kg, in_ch, 8 * I, 1, 0),
                    make_conv_block(kg, 8 * I, 8 * I, (1, 7), (0, 3)),
                    make_conv_block(kg, 8 * I, 10 * I, (7, 1), (3, 0)),
                    make_conv_block(kg, 10 * I, 10 * I, 3, 1)],
        "branch2": [make_conv_block(kg, in_ch, 6 * I, 1, 0),
                    make_conv_block(kg, 6 * I, 6 * I, 3, 1)],
    }


def reductionB_fwd(p, x, conv, pool):
    b1 = x
    for q in p["branch1"]:
        b1 = conv(q, b1)
    b2 = x
    for q in p["branch2"]:
        b2 = conv(q, b2)
    b3 = pool(x, "max")
    return jnp.concatenate([b1, b2, b3], axis=-1)


def make_inceptionv4(key, I):
    kg = _keygen(key)
    return {
        "stem": make_stem(kg, 3, I),
        "inceptionA": make_inceptionA(kg, 12 * I, I),
        "reductionA": make_reductionA(kg, 12 * I, I),
        "inceptionB": make_inceptionB(kg, 32 * I, I),
        "reductionB": make_reductionB(kg, 32 * I, I),
        "inceptionC": make_inceptionC(kg, 48 * I, I),
    }


def inceptionv4_fwd(params, x_nchw, conv, pool):
    """Full InceptionV4.forward (NCHW in/out); blocks reuse the same params as in PyTorch."""
    x = jnp.transpose(x_nchw, (0, 2, 3, 1))    # NCHW -> NHWC (channels on lanes)
    out = stem_fwd(params["stem"], x, conv, pool)
    for _ in range(4):
        out = inceptionA_fwd(params["inceptionA"], out, conv, pool)
    out = reductionA_fwd(params["reductionA"], out, conv, pool)
    for _ in range(7):
        out = inceptionB_fwd(params["inceptionB"], out, conv, pool)
    out = reductionB_fwd(params["reductionB"], out, conv, pool)
    for _ in range(3):
        out = inceptionC_fwd(params["inceptionC"], out, conv, pool)
    return jnp.transpose(out, (0, 3, 1, 2))    # NHWC -> NCHW


if __name__ == "__main__":
    I = 4                      # initial_size
    N, C, H, W = 2, 3, 16, 16

    key = jax.random.PRNGKey(0)
    k_x, k_p = jax.random.split(key)
    x = jax.random.normal(k_x, (N, C, H, W), jnp.float32)
    params = make_inceptionv4(k_p, I)

    out = jax.block_until_ready(inceptionv4_fwd(params, x, conv_pallas, pool_pallas))
    assert out.shape == (N, 48 * I, H, W), out.shape
    assert bool(jnp.all(jnp.isfinite(out))), "non-finite values in Pallas output"

    ref = jax.block_until_ready(inceptionv4_fwd(params, x, conv_ref, pool_ref))
    denom = float(jnp.max(jnp.abs(ref))) + 1e-12
    rel_err = float(jnp.max(jnp.abs(out - ref))) / denom
    if rel_err > 2e-2:
        raise AssertionError(f"Pallas kernel mismatch vs JAX reference, rel_err={rel_err}")
    print("KERNEL_OK")
</pallas_src>

<mosaic_0001>
module attributes {stable_mosaic.version = 11 : i64} {
  func.func @kernel(%arg0: memref<2x16x16x3xf32, #tpu.memory_space<vmem>>, %arg1: memref<3x3x3x4xf32, #tpu.memory_space<vmem>>, %arg2: memref<2x4xf32, #tpu.memory_space<vmem>>, %arg3: memref<1xf32, #tpu.memory_space<smem>>, %arg4: memref<512x4xf32, #tpu.memory_space<vmem>>, %arg5: memref<2x18x18x3xf32, #tpu.memory_space<vmem>>) attributes {dimension_semantics = [], scalar_prefetch = 0 : i64, scratch_operands = 1 : i64, tpu.core_type = #tpu.core_type<tc>} {
    %cst = arith.constant 0.000000e+00 : f32
    %0 = vector.broadcast %cst : f32 to vector<2x18x18x3xf32>
    %c0 = arith.constant 0 : index
    %c0_0 = arith.constant 0 : index
    %c0_1 = arith.constant 0 : index
    %c0_2 = arith.constant 0 : index
    %1 = vector.load %arg5[%c0, %c0_0, %c0_1, %c0_2] : memref<2x18x18x3xf32, #tpu.memory_space<vmem>>, vector<2x18x18x3xf32>
    tpu.vector_store %arg5[%c0, %c0_0, %c0_1, %c0_2], %0 {strides = array<i32>} : memref<2x18x18x3xf32, #tpu.memory_space<vmem>>, vector<2x18x18x3xf32>,
    %c0_3 = arith.constant 0 : index
    %c0_4 = arith.constant 0 : index
    %c0_5 = arith.constant 0 : index
    %c0_6 = arith.constant 0 : index
    %2 = vector.load %arg0[%c0_3, %c0_4, %c0_5, %c0_6] : memref<2x16x16x3xf32, #tpu.memory_space<vmem>>, vector<2x16x16x3xf32>
    %c0_7 = arith.constant 0 : index
    %c1 = arith.constant 1 : index
    %c1_8 = arith.constant 1 : index
    %c0_9 = arith.constant 0 : index
    %3 = vector.load %arg5[%c0_7, %c1, %c1_8, %c0_9] : memref<2x18x18x3xf32, #tpu.memory_space<vmem>>, vector<2x16x16x3xf32>
    tpu.vector_store %arg5[%c0_7, %c1, %c1_8, %c0_9], %2 {strides = array<i32>} : memref<2x18x18x3xf32, #tpu.memory_space<vmem>>, vector<2x16x16x3xf32>,
    %cst_10 = arith.constant 0.000000e+00 : f32
    %4 = vector.broadcast %cst_10 : f32 to vector<512x4xf32>
    %c0_11 = arith.constant 0 : index
    %c0_12 = arith.constant 0 : index
    %c0_13 = arith.constant 0 : index
    %c0_14 = arith.constant 0 : index
    %5 = vector.load %arg5[%c0_11, %c0_12, %c0_13, %c0_14] : memref<2x18x18x3xf32, #tpu.memory_space<vmem>>, vector<2x16x16x3xf32>
    %6 = vector.shape_cast %5 : vector<2x16x16x3xf32> to vector<512x3xf32>
    %c0_15 = arith.constant 0 : index
    %c0_16 = arith.constant 0 : index
    %c0_17 = arith.constant 0 : index
    %c0_18 = arith.constant 0 : index
    %7 = vector.load %arg1[%c0_15, %c0_16, %c0_17, %c0_18] : memref<3x3x3x4xf32, #tpu.memory_space<vmem>>, vector<1x1x3x4xf32>
    %8 = vector.shape_cast %7 : vector<1x1x3x4xf32> to vector<3x4xf32>
    %cst_19 = arith.constant dense<0.000000e+00> : vector<512x4xf32>
    %9 = tpu.matmul %6, %8, %cst_19 {dimension_numbers = #tpu.dot_dimension_numbers<[1], [0], [0], [1], [0, 0, 1, 1], [], []>} : vector<512x3xf32>, vector<3x4xf32>, vector<512x4xf32> -> vector<512x4xf32>
    %10 = arith.addf %4, %9 : vector<512x4xf32>
    %c0_20 = arith.constant 0 : index
    %c0_21 = arith.constant 0 : index
    %c1_22 = arith.constant 1 : index
    %c0_23 = arith.constant 0 : index
    %11 = vector.load %arg5[%c0_20, %c0_21, %c1_22, %c0_23] : memref<2x18x18x3xf32, #tpu.memory_space<vmem>>, vector<2x16x16x3xf32>
    %12 = vector.shape_cast %11 : vector<2x16x16x3xf32> to vector<512x3xf32>
    %c0_24 = arith.constant 0 : index
    %c1_25 = arith.constant 1 : index
    %c0_26 = arith.constant 0 : index
    %c0_27 = arith.constant 0 : index
    %13 = vector.load %arg1[%c0_24, %c1_25, %c0_26, %c0_27] : memref<3x3x3x4xf32, #tpu.memory_space<vmem>>, vector<1x1x3x4xf32>
    %14 = vector.shape_cast %13 : vector<1x1x3x4xf32> to vector<3x4xf32>
    %cst_28 = arith.constant dense<0.000000e+00> : vector<512x4xf32>
    %15 = tpu.matmul %12, %14, %cst_28 {dimension_numbers = #tpu.dot_dimension_numbers<[1], [0], [0], [1], [0, 0, 1, 1], [], []>} : vector<512x3xf32>, vector<3x4xf32>, vector<512x4xf32> -> vector<512x4xf32>
    %16 = arith.addf %10, %15 : vector<512x4xf32>
    %c0_29 = arith.constant 0 : index
    %c0_30 = arith.constant 0 : index
    %c2 = arith.constant 2 : index
    %c0_31 = arith.constant 0 : index
    %17 = vector.load %arg5[%c0_29, %c0_30, %c2, %c0_31] : memref<2x18x18x3xf32, #tpu.memory_space<vmem>>, vector<2x16x16x3xf32>
    %18 = vector.shape_cast %17 : vector<2x16x16x3xf32> to vector<512x3xf32>
    %c0_32 = arith.constant 0 : index
    %c2_33 = arith.constant 2 : index
    %c0_34 = arith.constant 0 : index
    %c0_35 = arith.constant 0 : index
    %19 = vector.load %arg1[%c0_32, %c2_33, %c0_34, %c0_35] : memref<3x3x3x4xf32, #tpu.memory_space<vmem>>, vector<1x1x3x4xf32>
    %20 = vector.shape_cast %19 : vector<1x1x3x4xf32> to vector<3x4xf32>
    %cst_36 = arith.constant dense<0.000000e+00> : vector<512x4xf32>
    %21 = tpu.matmul %18, %20, %cst_36 {dimension_numbers = #tpu.dot_dimension_numbers<[1], [0], [0], [1], [0, 0, 1, 1], [], []>} : vector<512x3xf32>, vector<3x4xf32>, vector<512x4xf32> -> vector<512x4xf32>
    %22 = arith.addf %16, %21 : vector<512x4xf32>
    %c0_37 = arith.constant 0 : index
    %c1_38 = arith.constant 1 : index
    %c0_39 = arith.constant 0 : index
    %c0_40 = arith.constant 0 : index
    %23 = vector.load %arg5[%c0_37, %c1_38, %c0_39, %c0_40] : memref<2x18x18x3xf32, #tpu.memory_space<vmem>>, vector<2x16x16x3xf32>
    %24 = vector.shape_cast %23 : vector<2x16x16x3xf32> to vector<512x3xf32>
    %c1_41 = arith.constant 1 : index
    %c0_42 = arith.constant 0 : index
    %c0_43 = arith.constant 0 : index
    %c0_44 = arith.constant 0 : index
    %25 = vector.load %arg1[%c1_41, %c0_42, %c0_43, %c0_44] : memref<3x3x3x4xf32, #tpu.memory_space<vmem>>, vector<1x1x3x4xf32>
    %26 = vector.shape_cast %25 : vector<1x1x3x4xf32> to vector<3x4xf32>
    %cst_45 = arith.constant dense<0.000000e+00> : vector<512x4xf32>
    %27 = tpu.matmul %24, %26, %cst_45 {dimension_numbers = #tpu.dot_dimension_numbers<[1], [0], [0], [1], [0, 0, 1, 1], [], []>} : vector<512x3xf32>, vector<3x4xf32>, vector<512x4xf32> -> vector<512x4xf32>
    %28 = arith.addf %22, %27 : vector<512x4xf32>
    %c0_46 = arith.constant 0 : index
    %c1_47 = arith.constant 1 : index
    %c1_48 = arith.constant 1 : index
    %c0_49 = arith.constant 0 : index
    %29 = vector.load %arg5[%c0_46, %c1_47, %c1_48, %c0_49] : memref<2x18x18x3xf32, #tpu.memory_space<vmem>>, vector<2x16x16x3xf32>
    %30 = vector.shape_cast %29 : vector<2x16x16x3xf32> to vector<512x3xf32>
    %c1_50 = arith.constant 1 : index
    %c1_51 = arith.constant 1 : index
    %c0_52 = arith.constant 0 : index
    %c0_53 = arith.constant 0 : index
    %31 = vector.load %arg1[%c1_50, %c1_51, %c0_52, %c0_53] : memref<3x3x3x4xf32, #tpu.memory_space<vmem>>, vector<1x1x3x4xf32>
    %32 = vector.shape_cast %31 : vector<1x1x3x4xf32> to vector<3x4xf32>
    %cst_54 = arith.constant dense<0.000000e+00> : vector<512x4xf32>
    %33 = tpu.matmul %30, %32, %cst_54 {dimension_numbers = #tpu.dot_dimension_numbers<[1], [0], [0], [1], [0, 0, 1, 1], [], []>} : vector<512x3xf32>, vector<3x4xf32>, vector<512x4xf32> -> vector<512x4xf32>
    %34 = arith.addf %28, %33 : vector<512x4xf32>
    %c0_55 = arith.constant 0 : index
    %c1_56 = arith.constant 1 : index
    %c2_57 = arith.constant 2 : index
    %c0_58 = arith.constant 0 : index
    %35 = vector.load %arg5[%c0_55, %c1_56, %c2_57, %c0_58] : memref<2x18x18x3xf32, #tpu.memory_space<vmem>>, vector<2x16x16x3xf32>
    %36 = vector.shape_cast %35 : vector<2x16x16x3xf32> to vector<512x3xf32>
    %c1_59 = arith.constant 1 : index
    %c2_60 = arith.constant 2 : index
    %c0_61 = arith.constant 0 : index
    %c0_62 = arith.constant 0 : index
    %37 = vector.load %arg1[%c1_59, %c2_60, %c0_61, %c0_62] : memref<3x3x3x4xf32, #tpu.memory_space<vmem>>, vector<1x1x3x4xf32>
    %38 = vector.shape_cast %37 : vector<1x1x3x4xf32> to vector<3x4xf32>
    %cst_63 = arith.constant dense<0.000000e+00> : vector<512x4xf32>
    %39 = tpu.matmul %36, %38, %cst_63 {dimension_numbers = #tpu.dot_dimension_numbers<[1], [0], [0], [1], [0, 0, 1, 1], [], []>} : vector<512x3xf32>, vector<3x4xf32>, vector<512x4xf32> -> vector<512x4xf32>
    %40 = arith.addf %34, %39 : vector<512x4xf32>
    %c0_64 = arith.constant 0 : index
    %c2_65 = arith.constant 2 : index
    %c0_66 = arith.constant 0 : index
    %c0_67 = arith.constant 0 : index
    %41 = vector.load %arg5[%c0_64, %c2_65, %c0_66, %c0_67] : memref<2x18x18x3xf32, #tpu.memory_space<vmem>>, vector<2x16x16x3xf32>
    %42 = vector.shape_cast %41 : vector<2x16x16x3xf32> to vector<512x3xf32>
    %c2_68 = arith.constant 2 : index
    %c0_69 = arith.constant 0 : index
    %c0_70 = arith.constant 0 : index
    %c0_71 = arith.constant 0 : index
    %43 = vector.load %arg1[%c2_68, %c0_69, %c0_70, %c0_71] : memref<3x3x3x4xf32, #tpu.memory_space<vmem>>, vector<1x1x3x4xf32>
    %44 = vector.shape_cast %43 : vector<1x1x3x4xf32> to vector<3x4xf32>
    %cst_72 = arith.constant dense<0.000000e+00> : vector<512x4xf32>
    %45 = tpu.matmul %42, %44, %cst_72 {dimension_numbers = #tpu.dot_dimension_numbers<[1], [0], [0], [1], [0, 0, 1, 1], [], []>} : vector<512x3xf32>, vector<3x4xf32>, vector<512x4xf32> -> vector<512x4xf32>
    %46 = arith.addf %40, %45 : vector<512x4xf32>
    %c0_73 = arith.constant 0 : index
    %c2_74 = arith.constant 2 : index
    %c1_75 = arith.constant 1 : index
    %c0_76 = arith.constant 0 : index
    %47 = vector.load %arg5[%c0_73, %c2_74, %c1_75, %c0_76] : memref<2x18x18x3xf32, #tpu.memory_space<vmem>>, vector<2x16x16x3xf32>
    %48 = vector.shape_cast %47 : vector<2x16x16x3xf32> to vector<512x3xf32>
    %c2_77 = arith.constant 2 : index
    %c1_78 = arith.constant 1 : index
    %c0_79 = arith.constant 0 : index
    %c0_80 = arith.constant 0 : index
    %49 = vector.load %arg1[%c2_77, %c1_78, %c0_79, %c0_80] : memref<3x3x3x4xf32, #tpu.memory_space<vmem>>, vector<1x1x3x4xf32>
    %50 = vector.shape_cast %49 : vector<1x1x3x4xf32> to vector<3x4xf32>
    %cst_81 = arith.constant dense<0.000000e+00> : vector<512x4xf32>
    %51 = tpu.matmul %48, %50, %cst_81 {dimension_numbers = #tpu.dot_dimension_numbers<[1], [0], [0], [1], [0, 0, 1, 1], [], []>} : vector<512x3xf32>, vector<3x4xf32>, vector<512x4xf32> -> vector<512x4xf32>
    %52 = arith.addf %46, %51 : vector<512x4xf32>
    %c0_82 = arith.constant 0 : index
    %c2_83 = arith.constant 2 : index
    %c2_84 = arith.constant 2 : index
    %c0_85 = arith.constant 0 : index
    %53 = vector.load %arg5[%c0_82, %c2_83, %c2_84, %c0_85] : memref<2x18x18x3xf32, #tpu.memory_space<vmem>>, vector<2x16x16x3xf32>
    %54 = vector.shape_cast %53 : vector<2x16x16x3xf32> to vector<512x3xf32>
    %c2_86 = arith.constant 2 : index
    %c2_87 = arith.constant 2 : index
    %c0_88 = arith.constant 0 : index
    %c0_89 = arith.constant 0 : index
    %55 = vector.load %arg1[%c2_86, %c2_87, %c0_88, %c0_89] : memref<3x3x3x4xf32, #tpu.memory_space<vmem>>, vector<1x1x3x4xf32>
    %56 = vector.shape_cast %55 : vector<1x1x3x4xf32> to vector<3x4xf32>
    %cst_90 = arith.constant dense<0.000000e+00> : vector<512x4xf32>
    %57 = tpu.matmul %54, %56, %cst_90 {dimension_numbers = #tpu.dot_dimension_numbers<[1], [0], [0], [1], [0, 0, 1, 1], [], []>} : vector<512x3xf32>, vector<3x4xf32>, vector<512x4xf32> -> vector<512x4xf32>
    %58 = arith.addf %52, %57 : vector<512x4xf32>
    %c0_91 = arith.constant 0 : index
    %c0_92 = arith.constant 0 : index
    %59 = vector.load %arg2[%c0_91, %c0_92] : memref<2x4xf32, #tpu.memory_space<vmem>>, vector<1x4xf32>
    %c1_93 = arith.constant 1 : index
    %c0_94 = arith.constant 0 : index
    %60 = vector.load %arg2[%c1_93, %c0_94] : memref<2x4xf32, #tpu.memory_space<vmem>>, vector<1x4xf32>
    %61 = vector.broadcast %59 : vector<1x4xf32> to vector<512x4xf32>
    %62 = arith.mulf %58, %61 : vector<512x4xf32>
    %63 = vector.broadcast %60 : vector<1x4xf32> to vector<512x4xf32>
    %64 = arith.addf %62, %63 : vector<512x4xf32>
    %c0_95 = arith.constant 0 : index
    %65 = memref.load %arg3[%c0_95] : memref<1xf32, #tpu.memory_space<smem>>
    %cst_96 = arith.constant 0.000000e+00 : f32
    %66 = vector.broadcast %cst_96 : f32 to vector<512x4xf32>
    %67 = arith.cmpf oge, %64, %66 : vector<512x4xf32>
    %68 = vector.broadcast %65 : f32 to vector<512x4xf32>
    %69 = arith.mulf %68, %64 : vector<512x4xf32>
    %70 = arith.select %67, %64, %69 : vector<512x4xi1>, vector<512x4xf32>
    %c0_97 = arith.constant 0 : index
    %c0_98 = arith.constant 0 : index
    %71 = vector.load %arg4[%c0_97, %c0_98] : memref<512x4xf32, #tpu.memory_space<vmem>>, vector<512x4xf32>
    tpu.vector_store %arg4[%c0_97, %c0_98], %70 {strides = array<i32>} : memref<512x4xf32, #tpu.memory_space<vmem>>, vector<512x4xf32>,
    return
  }
}

</mosaic_0001>

<bundles_post_ra>
// kernel: run.1
= control target key start
LH: loop header
LB: loop body
LE: loop exit
PB: predicated region body
PF: predicated region fallthrough
CT: control target
= control target key end

     0   :  { %vm580_vm0 = vcmask 1042432   ;;  %vm18_vm1 = vcmask 23552   ;;  %v5934_v1 = vmov 0.0   ;;  %vm21_vm2 = vcmask 17408   ;;  %s8034_s1 = inlined_call_operand.vmem [shape: f32[3,3,3,4], index: 1, kind: input, shape index: {}]   ;;  %s8035_s0 = inlined_call_operand.vmem [shape: f32[2,16,16,3], index: 0, kind: input, shape index: {}]   ;;  %s8036_s2 = inlined_call_operand.vmem [shape: f32[2,4], index: 2, kind: input, shape index: {}]   ;;  %s8037_s3 = inlined_call_operand.<no memory space> [shape: f32[1], index: 3, kind: input, shape index: {}]   ;;  %s8038_s4 = inlined_call_operand.vmem [shape: f32[512,4], index: 4, kind: output, shape index: {}]  }
   0x1   :  { %v5331_v0 = vld [vmem:[%s8034_s1 + $0x4] sm:$0x7]  ;;  %74 = vst.msk [vmem:[#allocation2 + $0x1b0] sm:$0xff] %vm18_vm1, %v5934_v1  ;;  %v5462_v3 = vld [vmem:[%s8034_s1 + $0x8] sm:$0x7]  ;;  %v142_v6 = vld [vmem:[%s8035_s0 + $0x70] sm:$0xff] }
   0x2   :  { %5925 = vmatpush.msk.msra.mxu2 %vm580_vm0, %v5331_v0  ;;  %5924 = vmatpush.msk.msra.mxu1 %vm580_vm0, %v5331_v0  ;;  %75 = vst.msk [vmem:[#allocation2 + $0x1b8] sm:$0xff] %vm18_vm1, %v5934_v1  ;;  %v5528_v4 = vld [vmem:[%s8034_s1 + $0xc] sm:$0x7]  ;;  %v321_v5 = vld [vmem:[%s8034_s1] sm:$0x7]  ;;  %v174_v7 = vld [vmem:[%s8035_s0 + $0x170] sm:$0xff] }
   0x3   :  { %19 = vst.msk [vmem:[#allocation2] sm:$0xff] %vm18_vm1, %v5934_v1  ;;  %5926 = vmatpush.msk.msra.mxu3 %vm580_vm0, %v5331_v0  ;;  %5332 = vmatpush.msk.msra.mxu0 %vm580_vm0, %v5331_v0  ;;  %v5594_v12 = vld [vmem:[%s8034_s1 + $0x10] sm:$0x7]  ;;  %v143_v14 = vld [vmem:[%s8035_s0 + $0x78] sm:$0xff]  ;;  %v160_v16 = vld [vmem:[%s8035_s0 + $0x100] sm:$0xff]  ;;  %vm5262_vm4 = vcmask 31744  }
   0x4   :  { %20 = vst.msk [vmem:[#allocation2 + $0x8] sm:$0xff] %vm18_vm1, %v5934_v1  ;;  %5463 = vmatpush.msk.msrb.mxu2 %vm580_vm0, %v5462_v3  ;;  %5397 = vmatpush.msk.msrb.mxu1 %vm580_vm0, %v321_v5  ;;  %v175_v15 = vld [vmem:[%s8035_s0 + $0x178] sm:$0xff]  ;;  %v144_v17 = vld [vmem:[%s8035_s0 + $0x80] sm:$0xff]  ;;  %v161_v19 = vld [vmem:[%s8035_s0 + $0x108] sm:$0xff] }
   0x5   :  { %23 = vst.msk [vmem:[#allocation2 + $0x18] sm:$0xff] %vm18_vm1, %v5934_v1  ;;  %5529 = vmatpush.msk.msrb.mxu3 %vm580_vm0, %v5528_v4  ;;  %5595 = vmatpush.msk.msrb.mxu0 %vm580_vm0, %v5594_v12  ;;  %v176_v18 = vld [vmem:[%s8035_s0 + $0x180] sm:$0xff]  ;;  %v145_v20 = vld [vmem:[%s8035_s0 + $0x88] sm:$0xff]  ;;  %v162_v23 = vld [vmem:[%s8035_s0 + $0x110] sm:$0xff] }
   0x6   :  { %24 = vst.msk [vmem:[#allocation2 + $0x20] sm:$0xff] %vm18_vm1, %v5934_v1  ;;  %v128_v21 = vld [vmem:[%s8035_s0] sm:$0xff]  ;;  %v177_v22 = vld [vmem:[%s8035_s0 + $0x188] sm:$0xff]  ;;  %v146_v25 = vld [vmem:[%s8035_s0 + $0x90] sm:$0xff] }
   0x7   :  { %26 = vst.msk [vmem:[#allocation2 + $0x30] sm:$0xff] %vm18_vm1, %v5934_v1  ;;  %v129_v27 = vld [vmem:[%s8035_s0 + $0x8] sm:$0xff]  ;;  %v178_v29 = vld [vmem:[%s8035_s0 + $0x190] sm:$0xff]  ;;  %v163_v30 = vld [vmem:[%s8035_s0 + $0x118] sm:$0xff] }
   0x8   :  { %27 = vst.msk [vmem:[#allocation2 + $0x38] sm:$0xff] %vm18_vm1, %v5934_v1  ;;  %v147_v31 = vld [vmem:[%s8035_s0 + $0x98] sm:$0xff]  ;;  %v130_v32 = vld [vmem:[%s8035_s0 + $0x10] sm:$0xff]  ;;  %v164_v37 = vld [vmem:[%s8035_s0 + $0x120] sm:$0xff] }
   0x9   :  { %v354_v2 = vld [vmem:[#allocation2 + $0x1b1] sm:$0xff]  ;;  %29 = vst.msk [vmem:[#allocation2 + $0x48] sm:$0xff] %vm18_vm1, %v5934_v1  ;;  %v148_v39 = vld [vmem:[%s8035_s0 + $0xa0] sm:$0xff]  ;;  %v165_v42 = vld [vmem:[%s8035_s0 + $0x128] sm:$0xff] }
   0xa   :  { %5365 = vmatmul.msk.f32.vlgmr.msra.gmra.mxu2 %vm18_vm1, %v354_v2  ;;  %30 = vst.msk [vmem:[#allocation2 + $0x50] sm:$0xff] %vm18_vm1, %v5934_v1  ;;  %v179_v34 = vld [vmem:[%s8035_s0 + $0x198] sm:$0xff]  ;;  %v180_v41 = vld [vmem:[%s8035_s0 + $0x1a0] sm:$0xff]  ;;  %v149_v43 = vld [vmem:[%s8035_s0 + $0xa8] sm:$0xff] }
   0xb   :  { %32 = vst.msk [vmem:[#allocation2 + $0x60] sm:$0xff] %vm18_vm1, %v5934_v1  ;;  %v322_v11 = vld [vmem:[#allocation2 + $0x1] sm:$0xff]  ;;  %v131_v40 = vld [vmem:[%s8035_s0 + $0x18] sm:$0xff]  ;;  %v166_v49 = vld [vmem:[%s8035_s0 + $0x130] sm:$0xff] }
   0xc   :  { %33 = vst.msk [vmem:[#allocation2 + $0x68] sm:$0xff] %vm18_vm1, %v5934_v1  ;;  %5333 = vmatmul.msk.f32.vlgmr.msra.gmra.mxu0 %vm18_vm1, %v322_v11  ;;  %v132_v45 = vld [vmem:[%s8035_s0 + $0x20] sm:$0xff]  ;;  %v181_v47 = vld [vmem:[%s8035_s0 + $0x1a8] sm:$0xff]  ;;  %v150_v51 = vld [vmem:[%s8035_s0 + $0xb0] sm:$0xff] }
   0xd   :  { %35 = vst.msk [vmem:[#allocation2 + $0x78] sm:$0xff] %vm18_vm1, %v5934_v1  ;;  %v133_v52 = vld [vmem:[%s8035_s0 + $0x28] sm:$0xff]  ;;  %v182_v53 = vld [vmem:[%s8035_s0 + $0x1b0] sm:$0xff]  ;;  %v167_v57 = vld [vmem:[%s8035_s0 + $0x138] sm:$0xff] }
   0xe   :  { %36 = vst.msk [vmem:[#allocation2 + $0x80] sm:$0xff] %vm18_vm1, %v5934_v1  ;;  %v151_v59 = vld [vmem:[%s8035_s0 + $0xb8] sm:$0xff]  ;;  %v134_v60 = vld [vmem:[%s8035_s0 + $0x30] sm:$0xff]  ;;  %v152_v3 = vld [vmem:[%s8035_s0 + $0xc0] sm:$0xff] }
   0xf   :  { %38 = vst.msk [vmem:[#allocation2 + $0x90] sm:$0xff] %vm18_vm1, %v5934_v1  ;;  %v183_v61 = vld [vmem:[%s8035_s0 + $0x1b8] sm:$0xff]  ;;  %v184_v5 = vld [vmem:[%s8035_s0 + $0x1c0] sm:$0xff]  ;;  %v153_v12 = vld [vmem:[%s8035_s0 + $0xc8] sm:$0xff] }
  0x10   :  { %39 = vst.msk [vmem:[#allocation2 + $0x98] sm:$0xff] %vm18_vm1, %v5934_v1  ;;  %v135_v4 = vld [vmem:[%s8035_s0 + $0x38] sm:$0xff] }
  0x11   :  { %41 = vst.msk [vmem:[#allocation2 + $0xa8] sm:$0xff] %vm18_vm1, %v5934_v1 }
  0x12   :  { %42 = vst.msk [vmem:[#allocation2 + $0xb0] sm:$0xff] %vm18_vm1, %v5934_v1 }
  0x13   :  { %44 = vst.msk [vmem:[#allocation2 + $0xc0] sm:$0xff] %vm18_vm1, %v5934_v1 }
  0x14   :  { %45 = vst.msk [vmem:[#allocation2 + $0xc8] sm:$0xff] %vm18_vm1, %v5934_v1 }
  0x15   :  { %47 = vst.msk [vmem:[#allocation2 + $0xd8] sm:$0xff] %vm18_vm1, %v5934_v1 }
  0x16   :  { %48 = vst.msk [vmem:[#allocation2 + $0xe0] sm:$0xff] %vm18_vm1, %v5934_v1 }
  0x17   :  { %50 = vst.msk [vmem:[#allocation2 + $0xf0] sm:$0xff] %vm18_vm1, %v5934_v1 }
  0x18   :  { %51 = vst.msk [vmem:[#allocation2 + $0xf8] sm:$0xff] %vm18_vm1, %v5934_v1 }
  0x19   :  { %53 = vst.msk [vmem:[#allocation2 + $0x108] sm:$0xff] %vm18_vm1, %v5934_v1 }
  0x1a   :  { %54 = vst.msk [vmem:[#allocation2 + $0x110] sm:$0xff] %vm18_vm1, %v5934_v1 }
  0x1b   :  { %56 = vst.msk [vmem:[#allocation2 + $0x120] sm:$0xff] %vm18_vm1, %v5934_v1 }
  0x1c   :  { %57 = vst.msk [vmem:[#allocation2 + $0x128] sm:$0xff] %vm18_vm1, %v5934_v1 }
  0x1d   :  { %59 = vst.msk [vmem:[#allocation2 + $0x138] sm:$0xff] %vm18_vm1, %v5934_v1 }
  0x1e   :  { %60 = vst.msk [vmem:[#allocation2 + $0x140] sm:$0xff] %vm18_vm1, %v5934_v1 }
  0x1f   :  { %62 = vst.msk [vmem:[#allocation2 + $0x150] sm:$0xff] %vm18_vm1, %v5934_v1 }
  0x20   :  { %63 = vst.msk [vmem:[#allocation2 + $0x158] sm:$0xff] %vm18_vm1, %v5934_v1 }
  0x21   :  { %65 = vst.msk [vmem:[#allocation2 + $0x168] sm:$0xff] %vm18_vm1, %v5934_v1 }
  0x22   :  { %66 = vst.msk [vmem:[#allocation2 + $0x170] sm:$0xff] %vm18_vm1, %v5934_v1 }
  0x23   :  { %68 = vst.msk [vmem:[#allocation2 + $0x180] sm:$0xff] %vm18_vm1, %v5934_v1 }
  0x24   :  { %69 = vst.msk [vmem:[#allocation2 + $0x188] sm:$0xff] %vm18_vm1, %v5934_v1 }
  0x25   :  { %71 = vst.msk [vmem:[#allocation2 + $0x198] sm:$0xff] %vm18_vm1, %v5934_v1 }
  0x26   :  { %72 = vst.msk [vmem:[#allocation2 + $0x1a0] sm:$0xff] %vm18_vm1, %v5934_v1 }
  0x27   :  { %77 = vst.msk [vmem:[#allocation2 + $0x1c8] sm:$0xff] %vm18_vm1, %v5934_v1 }
  0x28   :  { %78 = vst.msk [vmem:[#allocation2 + $0x1d0] sm:$0xff] %vm18_vm1, %v5934_v1 }
  0x29   :  { %80 = vst.msk [vmem:[#allocation2 + $0x1e0] sm:$0xff] %vm18_vm1, %v5934_v1 }
  0x2a   :  { %81 = vst.msk [vmem:[#allocation2 + $0x1e8] sm:$0xff] %vm18_vm1, %v5934_v1 }
  0x2b   :  { %83 = vst.msk [vmem:[#allocation2 + $0x1f8] sm:$0xff] %vm18_vm1, %v5934_v1 }
  0x2c   :  { %84 = vst.msk [vmem:[#allocation2 + $0x200] sm:$0xff] %vm18_vm1, %v5934_v1 }
  0x2d   :  { %86 = vst.msk [vmem:[#allocation2 + $0x210] sm:$0xff] %vm18_vm1, %v5934_v1 }
  0x2e   :  { %87 = vst.msk [vmem:[#allocation2 + $0x218] sm:$0xff] %vm18_vm1, %v5934_v1 }
  0x2f   :  { %89 = vst.msk [vmem:[#allocation2 + $0x228] sm:$0xff] %vm18_vm1, %v5934_v1 }
  0x30   :  { %90 = vst.msk [vmem:[#allocation2 + $0x230] sm:$0xff] %vm18_vm1, %v5934_v1 }
  0x31   :  { %92 = vst.msk [vmem:[#allocation2 + $0x240] sm:$0xff] %vm18_vm1, %v5934_v1 }
  0x32   :  { %93 = vst.msk [vmem:[#allocation2 + $0x248] sm:$0xff] %vm18_vm1, %v5934_v1 }
  0x33   :  { %95 = vst.msk [vmem:[#allocation2 + $0x258] sm:$0xff] %vm18_vm1, %v5934_v1 }
  0x34   :  { %96 = vst.msk [vmem:[#allocation2 + $0x260] sm:$0xff] %vm18_vm1, %v5934_v1 }
  0x35   :  { %98 = vst.msk [vmem:[#allocation2 + $0x270] sm:$0xff] %vm18_vm1, %v5934_v1 }
  0x36   :  { %99 = vst.msk [vmem:[#allocation2 + $0x278] sm:$0xff] %vm18_vm1, %v5934_v1 }
  0x37   :  { %101 = vst.msk [vmem:[#allocation2 + $0x288] sm:$0xff] %vm18_vm1, %v5934_v1 }
  0x38   :  { %102 = vst.msk [vmem:[#allocation2 + $0x290] sm:$0xff] %vm18_vm1, %v5934_v1 }
  0x39   :  { %104 = vst.msk [vmem:[#allocation2 + $0x2a0] sm:$0xff] %vm18_vm1, %v5934_v1 }
  0x3a   :  { %105 = vst.msk [vmem:[#allocation2 + $0x2a8] sm:$0xff] %vm18_vm1, %v5934_v1 }
  0x3b   :  { %107 = vst.msk [vmem:[#allocation2 + $0x2b8] sm:$0xff] %vm18_vm1, %v5934_v1 }
  0x3c   :  { %108 = vst.msk [vmem:[#allocation2 + $0x2c0] sm:$0xff] %vm18_vm1, %v5934_v1 }
  0x3d   :  { %110 = vst.msk [vmem:[#allocation2 + $0x2d0] sm:$0xff] %vm18_vm1, %v5934_v1 }
  0x3e   :  { %111 = vst.msk [vmem:[#allocation2 + $0x2d8] sm:$0xff] %vm18_vm1, %v5934_v1 }
  0x3f   :  { %113 = vst.msk [vmem:[#allocation2 + $0x2e8] sm:$0xff] %vm18_vm1, %v5934_v1 }
  0x40   :  { %114 = vst.msk [vmem:[#allocation2 + $0x2f0] sm:$0xff] %vm18_vm1, %v5934_v1 }
  0x41   :  { %116 = vst.msk [vmem:[#allocation2 + $0x300] sm:$0xff] %vm18_vm1, %v5934_v1 }
  0x42   :  { %117 = vst.msk [vmem:[#allocation2 + $0x308] sm:$0xff] %vm18_vm1, %v5934_v1 }
  0x43   :  { %119 = vst.msk [vmem:[#allocation2 + $0x318] sm:$0xff] %vm18_vm1, %v5934_v1 }
  0x44   :  { %120 = vst.msk [vmem:[#allocation2 + $0x320] sm:$0xff] %vm18_vm1, %v5934_v1 }
  0x45   :  { %122 = vst.msk [vmem:[#allocation2 + $0x330] sm:$0xff] %vm18_vm1, %v5934_v1 }
  0x46   :  { %123 = vst.msk [vmem:[#allocation2 + $0x338] sm:$0xff] %vm18_vm1, %v5934_v1 }
  0x47   :  { %125 = vst.msk [vmem:[#allocation2 + $0x348] sm:$0xff] %vm18_vm1, %v5934_v1 }
  0x48   :  { %126 = vst.msk [vmem:[#allocation2 + $0x350] sm:$0xff] %vm18_vm1, %v5934_v1 }
  0x49   :  { %207 = vst.msk [vmem:[#allocation2 + $0xc1] sm:$0xff] %vm18_vm1, %v142_v6 }
  0x4a   :  { %239 = vst.msk [vmem:[#allocation2 + $0x271] sm:$0xff] %vm18_vm1, %v174_v7 }
  0x4b   :  { %76 = vst.msk [vmem:[#allocation2 + $0x1c0] sm:$0x3] %vm21_vm2, %v5934_v1 }
  0x4c   :  { %22 = vst.msk [vmem:[#allocation2 + $0x10] sm:$0x3] %vm21_vm2, %v5934_v1 }
  0x4d   :  { %25 = vst.msk [vmem:[#allocation2 + $0x28] sm:$0x3] %vm21_vm2, %v5934_v1 }
  0x4e   :  { %28 = vst.msk [vmem:[#allocation2 + $0x40] sm:$0x3] %vm21_vm2, %v5934_v1 }
  0x4f   :  { %31 = vst.msk [vmem:[#allocation2 + $0x58] sm:$0x3] %vm21_vm2, %v5934_v1 }
  0x50   :  { %v6142_v8 = vld [vmem:[#allocation2 + $0xc1] sm:$0xff]  ;;  %34 = vst.msk [vmem:[#allocation2 + $0x70] sm:$0x3] %vm21_vm2, %v5934_v1 }
  0x51   :  { %5349 = vmatmul.msk.f32.vlgmr.msra.gmra.mxu1 %vm18_vm1, %v6142_v8  ;;  %v370_v9 = vld [vmem:[#allocation2 + $0x271] sm:$0xff]  ;;  %37 = vst.msk [vmem:[#allocation2 + $0x88] sm:$0x3] %vm21_vm2, %v5934_v1 }
  0x52   :  { %5381 = vmatmul.msk.f32.vlgmr.msra.gmra.mxu3 %vm18_vm1, %v370_v9  ;;  %v355_v10 = vld [vmem:[#allocation2 + $0x1b9] sm:$0xff]  ;;  %40 = vst.msk [vmem:[#allocation2 + $0xa0] sm:$0x3] %vm21_vm2, %v5934_v1 }
  0x53   :  { %5366 = vmatmul.msk.f32.gmra.mxu2 %vm18_vm1, %v355_v10  ;;  %43 = vst.msk [vmem:[#allocation2 + $0xb8] sm:$0x3] %vm21_vm2, %v5934_v1  ;;  %v323_v13 = vld [vmem:[#allocation2 + $0x9] sm:$0xff] }
  0x54   :  { %46 = vst.msk [vmem:[#allocation2 + $0xd0] sm:$0x3] %vm21_vm2, %v5934_v1  ;;  %5334 = vmatmul.msk.f32.gmra.mxu0 %vm18_vm1, %v323_v13  ;;  %v169_v10 = vld [vmem:[%s8035_s0 + $0x148] sm:$0xff]  ;;  %v136_v13 = vld [vmem:[%s8035_s0 + $0x40] sm:$0xff] }
  0x55   :  { %49 = vst.msk [vmem:[#allocation2 + $0xe8] sm:$0x3] %vm21_vm2, %v5934_v1 }
  0x56   :  { %52 = vst.msk [vmem:[#allocation2 + $0x100] sm:$0x3] %vm21_vm2, %v5934_v1 }
  0x57   :  { %55 = vst.msk [vmem:[#allocation2 + $0x118] sm:$0x3] %vm21_vm2, %v5934_v1 }
  0x58   :  { %58 = vst.msk [vmem:[#allocation2 + $0x130] sm:$0x3] %vm21_vm2, %v5934_v1 }
  0x59   :  { %61 = vst.msk [vmem:[#allocation2 + $0x148] sm:$0x3] %vm21_vm2, %v5934_v1 }
  0x5a   :  { %64 = vst.msk [vmem:[#allocation2 + $0x160] sm:$0x3] %vm21_vm2, %v5934_v1 }
  0x5b   :  { %67 = vst.msk [vmem:[#allocation2 + $0x178] sm:$0x3] %vm21_vm2, %v5934_v1 }
  0x5c   :  { %70 = vst.msk [vmem:[#allocation2 + $0x190] sm:$0x3] %vm21_vm2, %v5934_v1 }
  0x5d   :  { %73 = vst.msk [vmem:[#allocation2 + $0x1a8] sm:$0x3] %vm21_vm2, %v5934_v1 }
  0x5e   :  { %79 = vst.msk [vmem:[#allocation2 + $0x1d8] sm:$0x3] %vm21_vm2, %v5934_v1 }
  0x5f   :  { %82 = vst.msk [vmem:[#allocation2 + $0x1f0] sm:$0x3] %vm21_vm2, %v5934_v1 }
  0x60   :  { %85 = vst.msk [vmem:[#allocation2 + $0x208] sm:$0x3] %vm21_vm2, %v5934_v1 }
  0x61   :  { %88 = vst.msk [vmem:[#allocation2 + $0x220] sm:$0x3] %vm21_vm2, %v5934_v1 }
  0x62   :  { %91 = vst.msk [vmem:[#allocation2 + $0x238] sm:$0x3] %vm21_vm2, %v5934_v1 }
  0x63   :  { %94 = vst.msk [vmem:[#allocation2 + $0x250] sm:$0x3] %vm21_vm2, %v5934_v1 }
  0x64   :  { %97 = vst.msk [vmem:[#allocation2 + $0x268] sm:$0x3] %vm21_vm2, %v5934_v1 }
  0x65   :  { %100 = vst.msk [vmem:[#allocation2 + $0x280] sm:$0x3] %vm21_vm2, %v5934_v1 }
  0x66   :  { %103 = vst.msk [vmem:[#allocation2 + $0x298] sm:$0x3] %vm21_vm2, %v5934_v1 }
  0x67   :  { %106 = vst.msk [vmem:[#allocation2 + $0x2b0] sm:$0x3] %vm21_vm2, %v5934_v1 }
  0x68   :  { %109 = vst.msk [vmem:[#allocation2 + $0x2c8] sm:$0x3] %vm21_vm2, %v5934_v1 }
  0x69   :  { %112 = vst.msk [vmem:[#allocation2 + $0x2e0] sm:$0x3] %vm21_vm2, %v5934_v1 }
  0x6a   :  { %115 = vst.msk [vmem:[#allocation2 + $0x2f8] sm:$0x3] %vm21_vm2, %v5934_v1 }
  0x6b   :  { %118 = vst.msk [vmem:[#allocation2 + $0x310] sm:$0x3] %vm21_vm2, %v5934_v1 }
  0x6c   :  { %121 = vst.msk [vmem:[#allocation2 + $0x328] sm:$0x3] %vm21_vm2, %v5934_v1 }
  0x6d   :  { %124 = vst.msk [vmem:[#allocation2 + $0x340] sm:$0x3] %vm21_vm2, %v5934_v1 }
  0x6e   :  { %127 = vst.msk [vmem:[#allocation2 + $0x358] sm:$0x3] %vm21_vm2, %v5934_v1  ;;  %v168_v1 = vld [vmem:[%s8035_s0 + $0x140] sm:$0xff] }
  0x6f   :  { %208 = vst.msk [vmem:[#allocation2 + $0xc9] sm:$0xff] %vm18_vm1, %v143_v14  ;;  %v185_v14 = vld [vmem:[%s8035_s0 + $0x1c8] sm:$0xff] }
  0x70   :  { %240 = vst.msk [vmem:[#allocation2 + $0x279] sm:$0xff] %vm18_vm1, %v175_v15 }
  0x71   :  { %225 = vst.msk [vmem:[#allocation2 + $0x1c9] sm:$0xff] %vm18_vm1, %v160_v16 }
  0x72   :  { %209 = vst.msk [vmem:[#allocation2 + $0xd9] sm:$0xff] %vm18_vm1, %v144_v17 }
  0x73   :  { %241 = vst.msk [vmem:[#allocation2 + $0x289] sm:$0xff] %vm18_vm1, %v176_v18  ;;  %v170_v18 = vld [vmem:[%s8035_s0 + $0x150] sm:$0xff] }
  0x74   :  { %226 = vst.msk [vmem:[#allocation2 + $0x1d1] sm:$0xff] %vm18_vm1, %v161_v19 }
  0x75   :  { %210 = vst.msk [vmem:[#allocation2 + $0xe1] sm:$0xff] %vm18_vm1, %v145_v20  ;;  %v154_v20 = vld [vmem:[%s8035_s0 + $0xd0] sm:$0xff] }
  0x76   :  { %v6253_v24 = vld [vmem:[#allocation2 + $0xc9] sm:$0xff]  ;;  %193 = vst.msk [vmem:[#allocation2 + $0x19] sm:$0xff] %vm18_vm1, %v128_v21 }
  0x77   :  { %5350 = vmatmul.msk.f32.gmra.mxu1 %vm18_vm1, %v6253_v24  ;;  %v371_v26 = vld [vmem:[#allocation2 + $0x279] sm:$0xff]  ;;  %242 = vst.msk [vmem:[#allocation2 + $0x291] sm:$0xff] %vm18_vm1, %v177_v22  ;;  %v137_v21 = vld [vmem:[%s8035_s0 + $0x48] sm:$0xff]  ;;  %v186_v22 = vld [vmem:[%s8035_s0 + $0x1d0] sm:$0xff] }
  0x78   :  { %5382 = vmatmul.msk.f32.gmra.mxu3 %vm18_vm1, %v371_v26  ;;  %v356_v28 = vld [vmem:[#allocation2 + $0x1c9] sm:$0xff]  ;;  %227 = vst.msk [vmem:[#allocation2 + $0x1e1] sm:$0xff] %vm18_vm1, %v162_v23 }
  0x79   :  { %5367 = vmatmul.msk.f32.gmra.mxu2 %vm18_vm1, %v356_v28  ;;  %211 = vst.msk [vmem:[#allocation2 + $0xf1] sm:$0xff] %vm18_vm1, %v146_v25  ;;  %v6283_v33 = vld [vmem:[#allocation2 + $0xd9] sm:$0xff] }
  0x7a   :  { %194 = vst.msk [vmem:[#allocation2 + $0x21] sm:$0xff] %vm18_vm1, %v129_v27  ;;  %v372_v35 = vld [vmem:[#allocation2 + $0x289] sm:$0xff]  ;;  %v171_v27 = vld [vmem:[%s8035_s0 + $0x158] sm:$0xff] }
  0x7b   :  { %243 = vst.msk [vmem:[#allocation2 + $0x2a1] sm:$0xff] %vm18_vm1, %v178_v29  ;;  %v357_v38 = vld [vmem:[#allocation2 + $0x1d1] sm:$0xff] }
  0x7c   :  { %228 = vst.msk [vmem:[#allocation2 + $0x1e9] sm:$0xff] %vm18_vm1, %v163_v30  ;;  %v6327_v46 = vld [vmem:[#allocation2 + $0xe1] sm:$0xff]  ;;  %v155_v29 = vld [vmem:[%s8035_s0 + $0xd8] sm:$0xff]  ;;  %v138_v30 = vld [vmem:[%s8035_s0 + $0x50] sm:$0xff] }
  0x7d   :  { %v6289_v36 = vld [vmem:[#allocation2 + $0x19] sm:$0xff]  ;;  %212 = vst.msk [vmem:[#allocation2 + $0xf9] sm:$0xff] %vm18_vm1, %v147_v31 }
  0x7e   :  { %5335 = vmatmul.msk.f32.gmra.mxu0 %vm18_vm1, %v6289_v36  ;;  %195 = vst.msk [vmem:[#allocation2 + $0x31] sm:$0xff] %vm18_vm1, %v130_v32  ;;  %v373_v48 = vld [vmem:[#allocation2 + $0x291] sm:$0xff] }
  0x7f   :  { %5351 = vmatmul.msk.f32.gmra.mxu1 %vm18_vm1, %v6283_v33  ;;  %244 = vst.msk [vmem:[#allocation2 + $0x2a9] sm:$0xff] %vm18_vm1, %v179_v34  ;;  %v358_v50 = vld [vmem:[#allocation2 + $0x1e1] sm:$0xff]  ;;  %v187_v31 = vld [vmem:[%s8035_s0 + $0x1d8] sm:$0xff] }
  0x80   :  { %5383 = vmatmul.msk.f32.gmra.mxu3 %vm18_vm1, %v372_v35  ;;  %229 = vst.msk [vmem:[#allocation2 + $0x1f9] sm:$0xff] %vm18_vm1, %v164_v37  ;;  %v6360_v55 = vld [vmem:[#allocation2 + $0xf1] sm:$0xff]  ;;  %v172_v37 = vld [vmem:[%s8035_s0 + $0x160] sm:$0xff] }
  0x81   :  { %5368 = vmatmul.msk.f32.gmra.mxu2 %vm18_vm1, %v357_v38  ;;  %213 = vst.msk [vmem:[#allocation2 + $0x109] sm:$0xff] %vm18_vm1, %v148_v39  ;;  %v6321_v44 = vld [vmem:[#allocation2 + $0x21] sm:$0xff] }
  0x82   :  { %196 = vst.msk [vmem:[#allocation2 + $0x39] sm:$0xff] %vm18_vm1, %v131_v40  ;;  %v374_v56 = vld [vmem:[#allocation2 + $0x2a1] sm:$0xff]  ;;  %v139_v40 = vld [vmem:[%s8035_s0 + $0x58] sm:$0xff] }
  0x83   :  { %245 = vst.msk [vmem:[#allocation2 + $0x2b9] sm:$0xff] %vm18_vm1, %v180_v41  ;;  %v359_v58 = vld [vmem:[#allocation2 + $0x1e9] sm:$0xff]  ;;  %v156_v39 = vld [vmem:[%s8035_s0 + $0xe0] sm:$0xff] }
  0x84   :  { %230 = vst.msk [vmem:[#allocation2 + $0x201] sm:$0xff] %vm18_vm1, %v165_v42  ;;  %v6386_v63 = vld [vmem:[#allocation2 + $0xf9] sm:$0xff] }
  0x85   :  { %214 = vst.msk [vmem:[#allocation2 + $0x111] sm:$0xff] %vm18_vm1, %v149_v43  ;;  %v6357_v54 = vld [vmem:[#allocation2 + $0x31] sm:$0xff]  ;;  %v188_v41 = vld [vmem:[%s8035_s0 + $0x1e0] sm:$0xff] }
  0x86   :  { %5336 = vmatmul.msk.f32.gmra.mxu0 %vm18_vm1, %v6321_v44  ;;  %197 = vst.msk [vmem:[#allocation2 + $0x49] sm:$0xff] %vm18_vm1, %v132_v45  ;;  %v375_v0 = vld [vmem:[#allocation2 + $0x2a9] sm:$0xff] }
  0x87   :  { %5352 = vmatmul.msk.f32.gmra.mxu1 %vm18_vm1, %v6327_v46  ;;  %246 = vst.msk [vmem:[#allocation2 + $0x2c1] sm:$0xff] %vm18_vm1, %v181_v47  ;;  %v360_v2 = vld [vmem:[#allocation2 + $0x1f9] sm:$0xff]  ;;  %v173_v47 = vld [vmem:[%s8035_s0 + $0x168] sm:$0xff] }
  0x88   :  { %5384 = vmatmul.msk.f32.gmra.mxu3 %vm18_vm1, %v373_v48  ;;  %231 = vst.msk [vmem:[#allocation2 + $0x211] sm:$0xff] %vm18_vm1, %v166_v49  ;;  %v6412_v7 = vld [vmem:[#allocation2 + $0x109] sm:$0xff] }
  0x89   :  { %5369 = vmatmul.msk.f32.gmra.mxu2 %vm18_vm1, %v358_v50  ;;  %215 = vst.msk [vmem:[#allocation2 + $0x121] sm:$0xff] %vm18_vm1, %v150_v51  ;;  %v6384_v62 = vld [vmem:[#allocation2 + $0x39] sm:$0xff]  ;;  %v157_v49 = vld [vmem:[%s8035_s0 + $0xe8] sm:$0xff] }
  0x8a   :  { %198 = vst.msk [vmem:[#allocation2 + $0x51] sm:$0xff] %vm18_vm1, %v133_v52  ;;  %v376_v9 = vld [vmem:[#allocation2 + $0x2b9] sm:$0xff]  ;;  %v189_v51 = vld [vmem:[%s8035_s0 + $0x1e8] sm:$0xff] }
  0x8b   :  { %247 = vst.msk [vmem:[#allocation2 + $0x2d1] sm:$0xff] %vm18_vm1, %v182_v53  ;;  %v361_v11 = vld [vmem:[#allocation2 + $0x201] sm:$0xff] }
  0x8c   :  { %232 = vst.msk [vmem:[#allocation2 + $0x219] sm:$0xff] %vm18_vm1, %v167_v57  ;;  %v6438_v16 = vld [vmem:[#allocation2 + $0x111] sm:$0xff]  ;;  %v140_v50 = vld [vmem:[%s8035_s0 + $0x60] sm:$0xff] }
  0x8d   :  { %216 = vst.msk [vmem:[#allocation2 + $0x129] sm:$0xff] %vm18_vm1, %v151_v59  ;;  %v6410_v6 = vld [vmem:[#allocation2 + $0x49] sm:$0xff]  ;;  %v5726_v59 = vld [vmem:[%s8034_s1 + $0x18] sm:$0x7] }
  0x8e   :  { %5337 = vmatmul.msk.f32.gmra.mxu0 %vm18_vm1, %v6357_v54  ;;  %199 = vst.msk [vmem:[#allocation2 + $0x61] sm:$0xff] %vm18_vm1, %v134_v60  ;;  %v377_v17 = vld [vmem:[#allocation2 + $0x2c1] sm:$0xff]  ;;  %5727 = vmatpush.msk.msra.mxu2 %vm580_vm0, %v5726_v59  ;;  %v1201_v59 = vld [vmem:[#allocation2 + $0x32] sm:$0xff] }
  0x8f   :  { %5353 = vmatmul.msk.f32.gmra.mxu1 %vm18_vm1, %v6360_v55  ;;  %248 = vst.msk [vmem:[#allocation2 + $0x2d9] sm:$0xff] %vm18_vm1, %v183_v61  ;;  %v362_v19 = vld [vmem:[#allocation2 + $0x211] sm:$0xff] }
  0x90   :  { %5385 = vmatmul.msk.f32.gmra.mxu3 %vm18_vm1, %v374_v56  ;;  %233 = vst.msk [vmem:[#allocation2 + $0x229] sm:$0xff] %vm18_vm1, %v168_v1  ;;  %v6464_v25 = vld [vmem:[#allocation2 + $0x121] sm:$0xff] }
  0x91   :  { %5370 = vmatmul.msk.f32.gmra.mxu2 %vm18_vm1, %v359_v58  ;;  %217 = vst.msk [vmem:[#allocation2 + $0x139] sm:$0xff] %vm18_vm1, %v152_v3  ;;  %v6436_v15 = vld [vmem:[#allocation2 + $0x51] sm:$0xff]  ;;  %v141_v58 = vld [vmem:[%s8035_s0 + $0x68] sm:$0xff] }
  0x92   :  { %200 = vst.msk [vmem:[#allocation2 + $0x69] sm:$0xff] %vm18_vm1, %v135_v4  ;;  %v378_v26 = vld [vmem:[#allocation2 + $0x2d1] sm:$0xff] }
  0x93   :  { %249 = vst.msk [vmem:[#allocation2 + $0x2e9] sm:$0xff] %vm18_vm1, %v184_v5  ;;  %v363_v28 = vld [vmem:[#allocation2 + $0x219] sm:$0xff]  ;;  %v5660_v3 = vld [vmem:[%s8034_s1 + $0x14] sm:$0x7] }
  0x94   :  { %234 = vst.msk [vmem:[#allocation2 + $0x231] sm:$0xff] %vm18_vm1, %v169_v10  ;;  %v6490_v34 = vld [vmem:[#allocation2 + $0x129] sm:$0xff]  ;;  %5661 = vmatpush.msk.msra.mxu1 %vm580_vm0, %v5660_v3 }
  0x95   :  { %218 = vst.msk [vmem:[#allocation2 + $0x141] sm:$0xff] %vm18_vm1, %v153_v12  ;;  %v6462_v23 = vld [vmem:[#allocation2 + $0x61] sm:$0xff] }
  0x96   :  { %5338 = vmatmul.msk.f32.gmra.mxu0 %vm18_vm1, %v6384_v62  ;;  %201 = vst.msk [vmem:[#allocation2 + $0x79] sm:$0xff] %vm18_vm1, %v136_v13  ;;  %v379_v35 = vld [vmem:[#allocation2 + $0x2d9] sm:$0xff]  ;;  %v1735_v3 = vld [vmem:[#allocation2 + $0x48] sm:$0xff] }
  0x97   :  { %5354 = vmatmul.msk.f32.gmra.mxu1 %vm18_vm1, %v6386_v63  ;;  %250 = vst.msk [vmem:[#allocation2 + $0x2f1] sm:$0xff] %vm18_vm1, %v185_v14  ;;  %v364_v38 = vld [vmem:[#allocation2 + $0x229] sm:$0xff] }
  0x98   :  { %5386 = vmatmul.msk.f32.gmra.mxu3 %vm18_vm1, %v375_v0  ;;  %235 = vst.msk [vmem:[#allocation2 + $0x241] sm:$0xff] %vm18_vm1, %v170_v18  ;;  %v6516_v43 = vld [vmem:[#allocation2 + $0x139] sm:$0xff] }
  0x99   :  { %5371 = vmatmul.msk.f32.gmra.mxu2 %vm18_vm1, %v360_v2  ;;  %219 = vst.msk [vmem:[#allocation2 + $0x151] sm:$0xff] %vm18_vm1, %v154_v20  ;;  %v6488_v32 = vld [vmem:[#allocation2 + $0x69] sm:$0xff]  ;;  %v5792_v2 = vld [vmem:[%s8034_s1 + $0x1c] sm:$0x7] }
  0x9a   :  { %202 = vst.msk [vmem:[#allocation2 + $0x81] sm:$0xff] %vm18_vm1, %v137_v21  ;;  %v380_v45 = vld [vmem:[#allocation2 + $0x2e9] sm:$0xff]  ;;  %5793 = vmatpush.msk.msra.mxu3 %vm580_vm0, %v5792_v2 }
  0x9b   :  { %251 = vst.msk [vmem:[#allocation2 + $0x301] sm:$0xff] %vm18_vm1, %v186_v22  ;;  %v365_v48 = vld [vmem:[#allocation2 + $0x231] sm:$0xff]  ;;  %v1197_v21 = vld [vmem:[#allocation2 + $0x2] sm:$0xff]  ;;  %v6608_v22 = vpop.f32.mrf.mxu0 }
  0x9c   :  { %236 = vst.msk [vmem:[#allocation2 + $0x249] sm:$0xff] %vm18_vm1, %v171_v27  ;;  %v6542_v53 = vld [vmem:[#allocation2 + $0x141] sm:$0xff] }
  0x9d   :  { %220 = vst.msk [vmem:[#allocation2 + $0x159] sm:$0xff] %vm18_vm1, %v155_v29  ;;  %v6514_v42 = vld [vmem:[#allocation2 + $0x79] sm:$0xff] }
  0x9e   :  { %5339 = vmatmul.msk.f32.gmra.mxu0 %vm18_vm1, %v6410_v6  ;;  %203 = vst.msk [vmem:[#allocation2 + $0x91] sm:$0xff] %vm18_vm1, %v138_v30  ;;  %v381_v56 = vld [vmem:[#allocation2 + $0x2f1] sm:$0xff] }
  0x9f   :  { %5355 = vmatmul.msk.f32.gmra.mxu1 %vm18_vm1, %v6412_v7  ;;  %252 = vst.msk [vmem:[#allocation2 + $0x309] sm:$0xff] %vm18_vm1, %v187_v31  ;;  %v366_v57 = vld [vmem:[#allocation2 + $0x241] sm:$0xff]  ;;  %v1731_v29 = vld [vmem:[#allocation2 + $0x18] sm:$0xff]  ;;  %v1198_v30 = vld [vmem:[#allocation2 + $0xa] sm:$0xff] }
  0xa0   :  { %5387 = vmatmul.msk.f32.gmra.mxu3 %vm18_vm1, %v376_v9  ;;  %237 = vst.msk [vmem:[#allocation2 + $0x259] sm:$0xff] %vm18_vm1, %v172_v37  ;;  %v6560_v61 = vld [vmem:[#allocation2 + $0x151] sm:$0xff] }
  0xa1   :  { %5372 = vmatmul.msk.f32.gmra.mxu2 %vm18_vm1, %v361_v11  ;;  %221 = vst.msk [vmem:[#allocation2 + $0x169] sm:$0xff] %vm18_vm1, %v156_v39  ;;  %v6540_v52 = vld [vmem:[#allocation2 + $0x81] sm:$0xff] }
  0xa2   :  { %204 = vst.msk [vmem:[#allocation2 + $0x99] sm:$0xff] %vm18_vm1, %v139_v40  ;;  %v382_v0 = vld [vmem:[#allocation2 + $0x301] sm:$0xff] }
  0xa3   :  { %253 = vst.msk [vmem:[#allocation2 + $0x319] sm:$0xff] %vm18_vm1, %v188_v41  ;;  %v367_v1 = vld [vmem:[#allocation2 + $0x249] sm:$0xff]  ;;  %v5858_v11 = vld [vmem:[%s8034_s1 + $0x20] sm:$0x7] }
  0xa4   :  { %238 = vst.msk [vmem:[#allocation2 + $0x261] sm:$0xff] %vm18_vm1, %v173_v47  ;;  %v6578_v5 = vld [vmem:[#allocation2 + $0x159] sm:$0xff]  ;;  %5859 = vmatpush.msk.msra.mxu0 %vm580_vm0, %v5858_v11  ;;  %v258_v39 = vld [vmem:[#allocation2 + $0x8] sm:$0xff] }
  0xa5   :  { %222 = vst.msk [vmem:[#allocation2 + $0x171] sm:$0xff] %vm18_vm1, %v157_v49  ;;  %v6558_v60 = vld [vmem:[#allocation2 + $0x91] sm:$0xff]  ;;  %v1732_v40 = vld [vmem:[#allocation2 + $0x20] sm:$0xff] }
  0xa6   :  { %5340 = vmatmul.msk.f32.gmra.mxu0 %vm18_vm1, %v6436_v15  ;;  %205 = vst.msk [vmem:[#allocation2 + $0xa9] sm:$0xff] %vm18_vm1, %v140_v50  ;;  %v383_v9 = vld [vmem:[#allocation2 + $0x309] sm:$0xff]  ;;  %v1199_v41 = vld [vmem:[#allocation2 + $0x1a] sm:$0xff] }
  0xa7   :  { %5356 = vmatmul.msk.f32.gmra.mxu1 %vm18_vm1, %v6438_v16  ;;  %254 = vst.msk [vmem:[#allocation2 + $0x321] sm:$0xff] %vm18_vm1, %v189_v51  ;;  %v368_v10 = vld [vmem:[#allocation2 + $0x259] sm:$0xff]  ;;  %v1733_v49 = vld [vmem:[#allocation2 + $0x30] sm:$0xff]  ;;  %v1200_v50 = vld [vmem:[#allocation2 + $0x22] sm:$0xff] }
  0xa8   :  { %5388 = vmatmul.msk.f32.gmra.mxu3 %vm18_vm1, %v377_v17  ;;  %206 = vst.msk [vmem:[#allocation2 + $0xb1] sm:$0xff] %vm18_vm1, %v141_v58  ;;  %v6592_v13 = vld [vmem:[#allocation2 + $0x169] sm:$0xff]  ;;  %v1734_v58 = vld [vmem:[#allocation2 + $0x38] sm:$0xff] }
  0xa9   :  { %5373 = vmatmul.msk.f32.gmra.mxu2 %vm18_vm1, %v362_v19  ;;  %v6576_v4 = vld [vmem:[#allocation2 + $0x99] sm:$0xff] }
  0xaa   :  { %v384_v14 = vld [vmem:[#allocation2 + $0x319] sm:$0xff] }
  0xab   :  { %v369_v17 = vld [vmem:[#allocation2 + $0x261] sm:$0xff] }
  0xac   :  { %v6602_v19 = vld [vmem:[#allocation2 + $0x171] sm:$0xff] }
  0xad   :  { %v6590_v12 = vld [vmem:[#allocation2 + $0xa9] sm:$0xff] }
  0xae   :  { %5341 = vmatmul.msk.f32.gmra.mxu0 %vm18_vm1, %v6462_v23  ;;  %v385_v20 = vld [vmem:[#allocation2 + $0x321] sm:$0xff] }
  0xaf   :  { %5357 = vmatmul.msk.f32.gmra.mxu1 %vm18_vm1, %v6464_v25  ;;  %v6600_v18 = vld [vmem:[#allocation2 + $0xb1] sm:$0xff] }
  0xb0   :  { %5389 = vmatmul.msk.f32.gmra.mxu3 %vm18_vm1, %v378_v26  ;;  %v6611_v26 = vpop.f32.mrf.mxu2 }
  0xb1   :  { %5374 = vmatmul.msk.f32.gmra.mxu2 %vm18_vm1, %v363_v28  ;;  %v257_v28 = vld [vmem:[#allocation2] sm:$0xff] }
  0xb6   :  { %5342 = vmatmul.msk.f32.gmra.mxu0 %vm18_vm1, %v6488_v32 }
  0xb7   :  { %5358 = vmatmul.msk.f32.gmra.mxu1 %vm18_vm1, %v6490_v34 }
  0xb8   :  { %5390 = vmatmul.msk.f32.gmra.mxu3 %vm18_vm1, %v379_v35 }
  0xb9   :  { %5375 = vmatmul.msk.f32.gmra.mxu2 %vm18_vm1, %v364_v38 }
  0xbe   :  { %5343 = vmatmul.msk.f32.gmra.mxu0 %vm18_vm1, %v6514_v42 }
  0xbf   :  { %5359 = vmatmul.msk.f32.gmra.mxu1 %vm18_vm1, %v6516_v43 }
  0xc0   :  { %5391 = vmatmul.msk.f32.gmra.mxu3 %vm18_vm1, %v380_v45 }
  0xc1   :  { %5376 = vmatmul.msk.f32.gmra.mxu2 %vm18_vm1, %v365_v48 }
  0xc6   :  { %5344 = vmatmul.msk.f32.gmra.mxu0 %vm18_vm1, %v6540_v52 }
  0xc7   :  { %5360 = vmatmul.msk.f32.gmra.mxu1 %vm18_vm1, %v6542_v53 }
  0xc8   :  { %5392 = vmatmul.msk.f32.gmra.mxu3 %vm18_vm1, %v381_v56 }
  0xc9   :  { %5377 = vmatmul.msk.f32.gmra.mxu2 %vm18_vm1, %v366_v57 }
  0xce   :  { %5345 = vmatmul.msk.f32.gmra.mxu0 %vm18_vm1, %v6558_v60  ;;  %v6614_v27 = vpop.f32.mrf.mxu1 }
  0xcf   :  { %5361 = vmatmul.msk.f32.gmra.mxu1 %vm18_vm1, %v6560_v61 }
  0xd0   :  { %5393 = vmatmul.msk.f32.gmra.mxu3 %vm18_vm1, %v382_v0 }
  0xd1   :  { %5378 = vmatmul.msk.f32.gmra.mxu2 %vm18_vm1, %v367_v1  ;;  %v6623_v35 = vpop.f32.mrf.mxu0 }
  0xd5   :  { %v6620_v31 = vpop.f32.mrf.mxu3 }
  0xd6   :  { %5346 = vmatmul.msk.f32.gmra.mxu0 %vm18_vm1, %v6576_v4  ;;  %8039 = vst [vmem:[#allocation4_spill] sm:$0xff] %v6620_v31  ;;  %v6625_v37 = vpop.f32.mrf.mxu2  ;;  %v1743_v31 = vld [vmem:[#allocation2 + $0xa8] sm:$0xff] }
  0xd7   :  { %5362 = vmatmul.msk.f32.gmra.mxu1 %vm18_vm1, %v6578_v5 }
  0xd8   :  { %5394 = vmatmul.msk.f32.gmra.mxu3 %vm18_vm1, %v383_v9  ;;  %v1202_v9 = vld [vmem:[#allocation2 + $0x3a] sm:$0xff] }
  0xd9   :  { %5379 = vmatmul.msk.f32.gmra.mxu2 %vm18_vm1, %v368_v10 }
  0xde   :  { %5347 = vmatmul.msk.f32.gmra.mxu0 %vm18_vm1, %v6590_v12 }
  0xdf   :  { %5363 = vmatmul.msk.f32.gmra.mxu1 %vm18_vm1, %v6592_v13 }
  0xe0   :  { %5395 = vmatmul.msk.f32.gmra.mxu3 %vm18_vm1, %v384_v14 }
  0xe1   :  { %5380 = vmatmul.msk.f32.gmra.mxu2 %vm18_vm1, %v369_v17  ;;  %v1736_v17 = vld [vmem:[#allocation2 + $0x50] sm:$0xff] }
  0xe6   :  { %5348 = vmatmul.msk.f32.gmra.mxu0 %vm18_vm1, %v6600_v18 }
  0xe7   :  { %5364 = vmatmul.msk.f32.gmra.mxu1 %vm18_vm1, %v6602_v19 }
  0xe8   :  { %5396 = vmatmul.msk.f32.gmra.mxu3 %vm18_vm1, %v385_v20  ;;  %v1203_v20 = vld [vmem:[#allocation2 + $0x4a] sm:$0xff] }
  0xe9   :  { %5464 = vmatmul.msk.f32.vlgmr.msrb.gmra.mxu2 %vm18_vm1, %v1197_v21 }
  0xee   :  { %5596 = vmatmul.msk.f32.vlgmr.msrb.gmra.mxu0 %vm18_vm1, %v6289_v36 }
  0xef   :  { %5398 = vmatmul.msk.f32.vlgmr.msrb.gmra.mxu1 %vm18_vm1, %v257_v28 }
  0xf0   :  { %5530 = vmatmul.msk.f32.vlgmr.msrb.gmra.mxu3 %vm18_vm1, %v1731_v29 }
  0xf1   :  { %5465 = vmatmul.msk.f32.gmra.mxu2 %vm18_vm1, %v1198_v30  ;;  %v1737_v30 = vld [vmem:[#allocation2 + $0x60] sm:$0xff] }
  0xf4   :  { %v6627_v38 = vpop.f32.mrf.mxu1 }
  0xf6   :  { %5597 = vmatmul.msk.f32.gmra.mxu0 %vm18_vm1, %v6321_v44 }
  0xf7   :  { %5399 = vmatmul.msk.f32.gmra.mxu1 %vm18_vm1, %v258_v39  ;;  %v1204_v39 = vld [vmem:[#allocation2 + $0x52] sm:$0xff] }
  0xf8   :  { %5531 = vmatmul.msk.f32.gmra.mxu3 %vm18_vm1, %v1732_v40 }
  0xf9   :  { %5466 = vmatmul.msk.f32.gmra.mxu2 %vm18_vm1, %v1199_v41 }
  0xfb   :  { %v6634_v36 = vpop.f32.mrf.mxu3  ;;  %v6636_v45 = vpop.f32.mrf.mxu0 }
  0xfc   :  { %8040 = vst [vmem:[#allocation5_spill] sm:$0xff] %v6634_v36  ;;  %v6638_v47 = vpop.f32.mrf.mxu1  ;;  %v6640_v48 = vpop.f32.mrf.mxu2  ;;  %v1209_v36 = vld [vmem:[#allocation2 + $0x92] sm:$0xff] }
  0xfd   :  { %8041 = vst [vmem:[#allocation6_spill] sm:$0xff] %v6640_v48 }
  0xfe   :  { %5598 = vmatmul.msk.f32.gmra.mxu0 %vm18_vm1, %v6357_v54 }
  0xff   :  { %5400 = vmatmul.msk.f32.gmra.mxu1 %vm18_vm1, %v1731_v29 }
 0x100   :  { %5532 = vmatmul.msk.f32.gmra.mxu3 %vm18_vm1, %v1733_v49 }
 0x101   :  { %5467 = vmatmul.msk.f32.gmra.mxu2 %vm18_vm1, %v1200_v50  ;;  %v1738_v50 = vld [vmem:[#allocation2 + $0x68] sm:$0xff] }
 0x103   :  { %v6647_v44 = vpop.f32.mrf.mxu3  ;;  %v6649_v51 = vpop.f32.mrf.mxu0 }
 0x104   :  { %8042 = vst [vmem:[#allocation7_spill] sm:$0xff] %v6647_v44  ;;  %v6651_v56 = vpop.f32.mrf.mxu1  ;;  %v6653_v57 = vpop.f32.mrf.mxu2  ;;  %v1742_v44 = vld [vmem:[#allocation2 + $0x98] sm:$0xff] }
 0x105   :  { %8043 = vst [vmem:[#allocation8_spill] sm:$0xff] %v6653_v57  ;;  %v1748_v57 = vld [vmem:[#allocation2 + $0xe0] sm:$0xff] }
 0x106   :  { %5599 = vmatmul.msk.f32.gmra.mxu0 %vm18_vm1, %v6384_v62 }
 0x107   :  { %5401 = vmatmul.msk.f32.gmra.mxu1 %vm18_vm1, %v1732_v40 }
 0x108   :  { %5533 = vmatmul.msk.f32.gmra.mxu3 %vm18_vm1, %v1734_v58 }
 0x109   :  { %5468 = vmatmul.msk.f32.gmra.mxu2 %vm18_vm1, %v1201_v59 }
 0x10b   :  { %v6660_v54 = vpop.f32.mrf.mxu3  ;;  %v6662_v0 = vpop.f32.mrf.mxu0 }
 0x10c   :  { %8044 = vst [vmem:[#allocation9_spill] sm:$0xff] %v6660_v54  ;;  %v6664_v1 = vpop.f32.mrf.mxu1  ;;  %v6666_v2 = vpop.f32.mrf.mxu2  ;;  %v1208_v54 = vld [vmem:[#allocation2 + $0x82] sm:$0xff] }
 0x10d   :  { %8045 = vst [vmem:[#allocation10_spill] sm:$0xff] %v6666_v2 }
 0x10e   :  { %5600 = vmatmul.msk.f32.gmra.mxu0 %vm18_vm1, %v6410_v6 }
 0x10f   :  { %5402 = vmatmul.msk.f32.gmra.mxu1 %vm18_vm1, %v1733_v49 }
 0x110   :  { %5534 = vmatmul.msk.f32.gmra.mxu3 %vm18_vm1, %v1735_v3 }
 0x111   :  { %5469 = vmatmul.msk.f32.gmra.mxu2 %vm18_vm1, %v1202_v9 }
 0x113   :  { %v6673_v62 = vpop.f32.mrf.mxu3  ;;  %v6675_v10 = vpop.f32.mrf.mxu0 }
 0x114   :  { %8046 = vst [vmem:[#allocation11_spill] sm:$0xff] %v6673_v62  ;;  %v6677_v11 = vpop.f32.mrf.mxu1  ;;  %v6679_v14 = vpop.f32.mrf.mxu2  ;;  %v1741_v62 = vld [vmem:[#allocation2 + $0x90] sm:$0xff] }
 0x115   :  { %8047 = vst [vmem:[#allocation12_spill] sm:$0xff] %v6679_v14 }
 0x116   :  { %5601 = vmatmul.msk.f32.gmra.mxu0 %vm18_vm1, %v6436_v15 }
 0x117   :  { %5403 = vmatmul.msk.f32.gmra.mxu1 %vm18_vm1, %v1734_v58  ;;  %v1205_v58 = vld [vmem:[#allocation2 + $0x62] sm:$0xff] }
 0x118   :  { %5535 = vmatmul.msk.f32.gmra.mxu3 %vm18_vm1, %v1736_v17 }
 0x119   :  { %5470 = vmatmul.msk.f32.gmra.mxu2 %vm18_vm1, %v1203_v20  ;;  %v1739_v20 = vld [vmem:[#allocation2 + $0x78] sm:$0xff] }
 0x11b   :  { %v6686_v6 = vpop.f32.mrf.mxu3  ;;  %v6688_v21 = vpop.f32.mrf.mxu0 }
 0x11c   :  { %8048 = vst [vmem:[#allocation13_spill] sm:$0xff] %v6686_v6  ;;  %v6690_v28 = vpop.f32.mrf.mxu1  ;;  %v6692_v29 = vpop.f32.mrf.mxu2  ;;  %v1207_v6 = vld [vmem:[#allocation2 + $0x7a] sm:$0xff] }
 0x11d   :  { %8049 = vst [vmem:[#allocation14_spill] sm:$0xff] %v6692_v29 }
 0x11e   :  { %5602 = vmatmul.msk.f32.gmra.mxu0 %vm18_vm1, %v6462_v23 }
 0x11f   :  { %5404 = vmatmul.msk.f32.gmra.mxu1 %vm18_vm1, %v1735_v3 }
 0x120   :  { %5536 = vmatmul.msk.f32.gmra.mxu3 %vm18_vm1, %v1737_v30 }
 0x121   :  { %5471 = vmatmul.msk.f32.gmra.mxu2 %vm18_vm1, %v1204_v39  ;;  %v1206_v39 = vld [vmem:[#allocation2 + $0x6a] sm:$0xff] }
 0x123   :  { %v6699_v15 = vpop.f32.mrf.mxu3  ;;  %v6701_v40 = vpop.f32.mrf.mxu0 }
 0x124   :  { %8050 = vst [vmem:[#allocation15_spill] sm:$0xff] %v6699_v15  ;;  %v6703_v41 = vpop.f32.mrf.mxu1  ;;  %v6705_v49 = vpop.f32.mrf.mxu2  ;;  %v1740_v15 = vld [vmem:[#allocation2 + $0x80] sm:$0xff] }
 0x125   :  { %8051 = vst [vmem:[#allocation16_spill] sm:$0xff] %v6705_v49  ;;  %v1747_v49 = vld [vmem:[#allocation2 + $0xd8] sm:$0xff] }
 0x126   :  { %5603 = vmatmul.msk.f32.gmra.mxu0 %vm18_vm1, %v6488_v32 }
 0x127   :  { %5405 = vmatmul.msk.f32.gmra.mxu1 %vm18_vm1, %v1736_v17 }
 0x128   :  { %5537 = vmatmul.msk.f32.gmra.mxu3 %vm18_vm1, %v1738_v50 }
 0x129   :  { %5472 = vmatmul.msk.f32.gmra.mxu2 %vm18_vm1, %v1205_v58 }
 0x12b   :  { %v6712_v23 = vpop.f32.mrf.mxu3  ;;  %v6714_v59 = vpop.f32.mrf.mxu0 }
 0x12c   :  { %8052 = vst [vmem:[#allocation17_spill] sm:$0xff] %v6712_v23  ;;  %v6716_v3 = vpop.f32.mrf.mxu1  ;;  %v6718_v9 = vpop.f32.mrf.mxu2 }
 0x12d   :  { %8053 = vst [vmem:[#allocation18_spill] sm:$0xff] %v6718_v9  ;;  %v1213_v9 = vld [vmem:[#allocation2 + $0xc2] sm:$0xff] }
 0x12e   :  { %5604 = vmatmul.msk.f32.gmra.mxu0 %vm18_vm1, %v6514_v42 }
 0x12f   :  { %5406 = vmatmul.msk.f32.gmra.mxu1 %vm18_vm1, %v1737_v30 }
 0x130   :  { %5538 = vmatmul.msk.f32.gmra.mxu3 %vm18_vm1, %v1739_v20 }
 0x131   :  { %5473 = vmatmul.msk.f32.gmra.mxu2 %vm18_vm1, %v1206_v39 }
 0x133   :  { %v6725_v32 = vpop.f32.mrf.mxu3  ;;  %v6727_v17 = vpop.f32.mrf.mxu0 }
 0x134   :  { %8054 = vst [vmem:[#allocation19_spill] sm:$0xff] %v6725_v32  ;;  %v6729_v58 = vpop.f32.mrf.mxu1  ;;  %v6731_v23 = vpop.f32.mrf.mxu2 }
 0x135   :  { %8055 = vst [vmem:[#allocation20_spill] sm:$0xff] %v6731_v23  ;;  %v1212_v23 = vld [vmem:[#allocation2 + $0xb2] sm:$0xff] }
 0x136   :  { %5605 = vmatmul.msk.f32.gmra.mxu0 %vm18_vm1, %v6540_v52 }
 0x137   :  { %5407 = vmatmul.msk.f32.gmra.mxu1 %vm18_vm1, %v1738_v50 }
 0x138   :  { %5539 = vmatmul.msk.f32.gmra.mxu3 %vm18_vm1, %v1740_v15 }
 0x139   :  { %5474 = vmatmul.msk.f32.gmra.mxu2 %vm18_vm1, %v1207_v6 }
 0x13b   :  { %v6738_v42 = vpop.f32.mrf.mxu3  ;;  %v6740_v30 = vpop.f32.mrf.mxu0 }
 0x13c   :  { %8056 = vst [vmem:[#allocation21_spill] sm:$0xff] %v6738_v42  ;;  %v6742_v39 = vpop.f32.mrf.mxu1  ;;  %v6744_v32 = vpop.f32.mrf.mxu2 }
 0x13d   :  { %8057 = vst [vmem:[#allocation22_spill] sm:$0xff] %v6744_v32  ;;  %v1211_v32 = vld [vmem:[#allocation2 + $0xaa] sm:$0xff] }
 0x13e   :  { %5606 = vmatmul.msk.f32.gmra.mxu0 %vm18_vm1, %v6558_v60 }
 0x13f   :  { %5408 = vmatmul.msk.f32.gmra.mxu1 %vm18_vm1, %v1739_v20 }
 0x140   :  { %5540 = vmatmul.msk.f32.gmra.mxu3 %vm18_vm1, %v1741_v62 }
 0x141   :  { %5475 = vmatmul.msk.f32.gmra.mxu2 %vm18_vm1, %v1208_v54 }
 0x143   :  { %v6751_v52 = vpop.f32.mrf.mxu3  ;;  %v6753_v6 = vpop.f32.mrf.mxu0 }
 0x144   :  { %8058 = vst [vmem:[#allocation23_spill] sm:$0xff] %v6751_v52  ;;  %v6755_v50 = vpop.f32.mrf.mxu1  ;;  %v6757_v42 = vpop.f32.mrf.mxu2 }
 0x145   :  { %8059 = vst [vmem:[#allocation24_spill] sm:$0xff] %v6757_v42  ;;  %v1210_v42 = vld [vmem:[#allocation2 + $0x9a] sm:$0xff] }
 0x146   :  { %5607 = vmatmul.msk.f32.gmra.mxu0 %vm18_vm1, %v6576_v4 }
 0x147   :  { %5409 = vmatmul.msk.f32.gmra.mxu1 %vm18_vm1, %v1740_v15 }
 0x148   :  { %5541 = vmatmul.msk.f32.gmra.mxu3 %vm18_vm1, %v1742_v44 }
 0x149   :  { %5476 = vmatmul.msk.f32.gmra.mxu2 %vm18_vm1, %v1209_v36 }
 0x14b   :  { %v6764_v60 = vpop.f32.mrf.mxu3  ;;  %v6766_v54 = vpop.f32.mrf.mxu0 }
 0x14c   :  { %8060 = vst [vmem:[#allocation25_spill] sm:$0xff] %v6764_v60  ;;  %v6768_v20 = vpop.f32.mrf.mxu1  ;;  %v6770_v52 = vpop.f32.mrf.mxu2 }
 0x14d   :  { %8061 = vst [vmem:[#allocation26_spill] sm:$0xff] %v6770_v52  ;;  %v1744_v52 = vld [vmem:[#allocation2 + $0xb0] sm:$0xff] }
 0x14e   :  { %5608 = vmatmul.msk.f32.gmra.mxu0 %vm18_vm1, %v6590_v12 }
 0x14f   :  { %5410 = vmatmul.msk.f32.gmra.mxu1 %vm18_vm1, %v1741_v62 }
 0x150   :  { %5542 = vmatmul.msk.f32.gmra.mxu3 %vm18_vm1, %v1743_v31 }
 0x151   :  { %5477 = vmatmul.msk.f32.gmra.mxu2 %vm18_vm1, %v1210_v42 }
 0x153   :  { %v6777_v4 = vpop.f32.mrf.mxu3  ;;  %v6779_v36 = vpop.f32.mrf.mxu0 }
 0x154   :  { %8062 = vst [vmem:[#allocation27_spill] sm:$0xff] %v6777_v4  ;;  %v6781_v15 = vpop.f32.mrf.mxu1  ;;  %v6783_v60 = vpop.f32.mrf.mxu2 }
 0x155   :  { %8063 = vst [vmem:[#allocation28_spill] sm:$0xff] %v6783_v60  ;;  %v1745_v60 = vld [vmem:[#allocation2 + $0xc0] sm:$0xff] }
 0x156   :  { %5609 = vmatmul.msk.f32.gmra.mxu0 %vm18_vm1, %v6600_v18 }
 0x157   :  { %5411 = vmatmul.msk.f32.gmra.mxu1 %vm18_vm1, %v1742_v44 }
 0x158   :  { %5543 = vmatmul.msk.f32.gmra.mxu3 %vm18_vm1, %v1744_v52 }
 0x159   :  { %5478 = vmatmul.msk.f32.gmra.mxu2 %vm18_vm1, %v1211_v32 }
 0x15b   :  { %v6790_v12 = vpop.f32.mrf.mxu3  ;;  %v6792_v62 = vpop.f32.mrf.mxu0 }
 0x15c   :  { %8064 = vst [vmem:[#allocation29_spill] sm:$0xff] %v6790_v12  ;;  %v6794_v42 = vpop.f32.mrf.mxu1  ;;  %v6796_v4 = vpop.f32.mrf.mxu2 }
 0x15d   :  { %8065 = vst [vmem:[#allocation30_spill] sm:$0xff] %v6796_v4  ;;  %v1746_v4 = vld [vmem:[#allocation2 + $0xc8] sm:$0xff] }
 0x15e   :  { %5610 = vmatmul.msk.f32.gmra.mxu0 %vm18_vm1, %v6142_v8 }
 0x15f   :  { %5412 = vmatmul.msk.f32.gmra.mxu1 %vm18_vm1, %v1743_v31 }
 0x160   :  { %5544 = vmatmul.msk.f32.gmra.mxu3 %vm18_vm1, %v1745_v60 }
 0x161   :  { %5479 = vmatmul.msk.f32.gmra.mxu2 %vm18_vm1, %v1212_v23 }
 0x163   :  { %v6803_v18 = vpop.f32.mrf.mxu3  ;;  %v6805_v44 = vpop.f32.mrf.mxu0 }
 0x164   :  { %8066 = vst [vmem:[#allocation31_spill] sm:$0xff] %v6803_v18  ;;  %v6807_v32 = vpop.f32.mrf.mxu1  ;;  %v6809_v12 = vpop.f32.mrf.mxu2 }
 0x165   :  { %8067 = vst [vmem:[#allocation32_spill] sm:$0xff] %v6809_v12  ;;  %v1214_v12 = vld [vmem:[#allocation2 + $0xca] sm:$0xff] }
 0x166   :  { %5611 = vmatmul.msk.f32.gmra.mxu0 %vm18_vm1, %v6253_v24 }
 0x167   :  { %5413 = vmatmul.msk.f32.gmra.mxu1 %vm18_vm1, %v1744_v52 }
 0x168   :  { %5545 = vmatmul.msk.f32.gmra.mxu3 %vm18_vm1, %v1746_v4 }
 0x169   :  { %5480 = vmatmul.msk.f32.gmra.mxu2 %vm18_vm1, %v1213_v9 }
 0x16b   :  { %v6816_v8 = vpop.f32.mrf.mxu3  ;;  %v2543_v31 = vpop.f32.mrf.mxu0 }
 0x16c   :  { %8068 = vst [vmem:[#allocation33_spill] sm:$0xff] %v6816_v8  ;;  %v1005_v23 = vpop.f32.mrf.mxu1  ;;  %v1475_v18 = vpop.f32.mrf.mxu2 }
 0x16d   :  { %v1006_v29 = vadd.f32 %v1005_v23, %v6608_v22  ;;  %v1215_v23 = vld [vmem:[#allocation2 + $0xda] sm:$0xff] }
 0x16e   :  { %5612 = vmatmul.msk.f32.gmra.mxu0 %vm18_vm1, %v6283_v33 }
 0x16f   :  { %5414 = vmatmul.msk.f32.gmra.mxu1 %vm18_vm1, %v1745_v60  ;;  %v1667_v24 = vadd.f32 %v1475_v18, %v1006_v29 }
 0x170   :  { %5546 = vmatmul.msk.f32.gmra.mxu3 %vm18_vm1, %v1747_v49 }
 0x171   :  { %5481 = vmatmul.msk.f32.gmra.mxu2 %vm18_vm1, %v1214_v12 }
 0x173   :  { %v2009_v9 = vpop.f32.mrf.mxu3  ;;  %v2546_v52 = vpop.f32.mrf.mxu0 }
 0x174   :  { %v2201_v8 = vadd.f32 %v2009_v9, %v1667_v24  ;;  %v1008_v14 = vpop.f32.mrf.mxu1  ;;  %v1478_v2 = vpop.f32.mrf.mxu2  ;;  %v1749_v9 = vld [vmem:[#allocation2 + $0xf0] sm:$0xff] }
 0x175   :  { %v1009_v48 = vadd.f32 %v1008_v14, %v6623_v35 }
 0x176   :  { %v6825_v22 = vadd.f32 %v2543_v31, %v2201_v8  ;;  %5613 = vmatmul.msk.f32.gmra.mxu0 %vm18_vm1, %v6327_v46  ;;  %v1216_v8 = vld [vmem:[#allocation2 + $0xe2] sm:$0xff] }
 0x177   :  { %5415 = vmatmul.msk.f32.gmra.mxu1 %vm18_vm1, %v1746_v4  ;;  %v1668_v33 = vadd.f32 %v1478_v2, %v1009_v48 }
 0x178   :  { %5547 = vmatmul.msk.f32.gmra.mxu3 %vm18_vm1, %v1748_v57 }
 0x179   :  { %5482 = vmatmul.msk.f32.gmra.mxu2 %vm18_vm1, %v1215_v23 }
 0x17b   :  { %v2012_v29 = vpop.f32.mrf.mxu3  ;;  %v2549_v60 = vpop.f32.mrf.mxu0 }
 0x17c   :  { %v2202_v12 = vadd.f32 %v2012_v29, %v1668_v33  ;;  %v1011_v18 = vpop.f32.mrf.mxu1  ;;  %v1481_v24 = vpop.f32.mrf.mxu2  ;;  %v1750_v33 = vld [vmem:[#allocation2 + $0xf8] sm:$0xff] }
 0x17d   :  { %v1012_v35 = vadd.f32 %v1011_v18, %v6636_v45  ;;  %v1217_v29 = vld [vmem:[#allocation2 + $0xf2] sm:$0xff] }
 0x17e   :  { %v6833_v14 = vadd.f32 %v2546_v52, %v2202_v12  ;;  %5614 = vmatmul.msk.f32.gmra.mxu0 %vm18_vm1, %v6360_v55 }
 0x17f   :  { %5416 = vmatmul.msk.f32.gmra.mxu1 %vm18_vm1, %v1747_v49  ;;  %v1669_v46 = vadd.f32 %v1481_v24, %v1012_v35 }
 0x180   :  { %5548 = vmatmul.msk.f32.gmra.mxu3 %vm18_vm1, %v1749_v9 }
 0x181   :  { %5483 = vmatmul.msk.f32.gmra.mxu2 %vm18_vm1, %v1216_v8  ;;  %v1751_v8 = vld [vmem:[#allocation2 + $0x108] sm:$0xff] }
 0x183   :  { %v2015_v48 = vpop.f32.mrf.mxu3  ;;  %v2552_v2 = vpop.f32.mrf.mxu0 }
 0x184   :  { %v2203_v4 = vadd.f32 %v2015_v48, %v1669_v46  ;;  %v1014_v31 = vpop.f32.mrf.mxu1  ;;  %v1484_v23 = vpop.f32.mrf.mxu2  ;;  %v1218_v46 = vld [vmem:[#allocation2 + $0xfa] sm:$0xff] }
 0x185   :  { %v1015_v45 = vadd.f32 %v1014_v31, %v6649_v51 }
 0x186   :  { %v6841_v52 = vadd.f32 %v2549_v60, %v2203_v4  ;;  %5615 = vmatmul.msk.f32.gmra.mxu0 %vm18_vm1, %v6386_v63 }
 0x187   :  { %5417 = vmatmul.msk.f32.gmra.mxu1 %vm18_vm1, %v1748_v57  ;;  %v1670_v55 = vadd.f32 %v1484_v23, %v1015_v45  ;;  %v1752_v45 = vld [vmem:[#allocation2 + $0x110] sm:$0xff] }
 0x188   :  { %5549 = vmatmul.msk.f32.gmra.mxu3 %vm18_vm1, %v1750_v33 }
 0x189   :  { %5484 = vmatmul.msk.f32.gmra.mxu2 %vm18_vm1, %v1217_v29  ;;  %v1219_v29 = vld [vmem:[#allocation2 + $0x10a] sm:$0xff] }
 0x18b   :  { %v2018_v49 = vpop.f32.mrf.mxu3  ;;  %v2555_v12 = vpop.f32.mrf.mxu0 }
 0x18c   :  { %v2204_v18 = vadd.f32 %v2018_v49, %v1670_v55  ;;  %v1017_v24 = vpop.f32.mrf.mxu1  ;;  %v1487_v35 = vpop.f32.mrf.mxu2 }
 0x18d   :  { %v1018_v51 = vadd.f32 %v1017_v24, %v6662_v0 }
 0x18e   :  { %v6849_v60 = vadd.f32 %v2552_v2, %v2204_v18  ;;  %5616 = vmatmul.msk.f32.gmra.mxu0 %vm18_vm1, %v6412_v7 }
 0x18f   :  { %5418 = vmatmul.msk.f32.gmra.mxu1 %vm18_vm1, %v1749_v9  ;;  %v1671_v63 = vadd.f32 %v1487_v35, %v1018_v51  ;;  %v1753_v35 = vld [vmem:[#allocation2 + $0x120] sm:$0xff]  ;;  %v1220_v51 = vld [vmem:[#allocation2 + $0x112] sm:$0xff] }
 0x190   :  { %5550 = vmatmul.msk.f32.gmra.mxu3 %vm18_vm1, %v1751_v8 }
 0x191   :  { %5485 = vmatmul.msk.f32.gmra.mxu2 %vm18_vm1, %v1218_v46 }
 0x193   :  { %v2021_v57 = vpop.f32.mrf.mxu3  ;;  %v2558_v48 = vpop.f32.mrf.mxu0 }
 0x194   :  { %v2205_v4 = vadd.f32 %v2021_v57, %v1671_v63  ;;  %v1020_v31 = vpop.f32.mrf.mxu1  ;;  %v1490_v23 = vpop.f32.mrf.mxu2 }
 0x195   :  { %v1021_v0 = vadd.f32 %v1020_v31, %v6675_v10  ;;  %v1754_v31 = vld [vmem:[#allocation2 + $0x128] sm:$0xff] }
 0x196   :  { %v6857_v2 = vadd.f32 %v2555_v12, %v2205_v4  ;;  %5617 = vmatmul.msk.f32.gmra.mxu0 %vm18_vm1, %v6438_v16 }
 0x197   :  { %5419 = vmatmul.msk.f32.gmra.mxu1 %vm18_vm1, %v1750_v33  ;;  %v1672_v7 = vadd.f32 %v1490_v23, %v1021_v0  ;;  %v1221_v23 = vld [vmem:[#allocation2 + $0x122] sm:$0xff] }
 0x198   :  { %5551 = vmatmul.msk.f32.gmra.mxu3 %vm18_vm1, %v1752_v45 }
 0x199   :  { %5486 = vmatmul.msk.f32.gmra.mxu2 %vm18_vm1, %v1219_v29 }
 0x19b   :  { %v2024_v9 = vpop.f32.mrf.mxu3  ;;  %v2561_v55 = vpop.f32.mrf.mxu0 }
 0x19c   :  { %v2206_v49 = vadd.f32 %v2024_v9, %v1672_v7  ;;  %v1023_v18 = vpop.f32.mrf.mxu1  ;;  %v1493_v24 = vpop.f32.mrf.mxu2 }
 0x19d   :  { %v1024_v10 = vadd.f32 %v1023_v18, %v6688_v21  ;;  %v1222_v18 = vld [vmem:[#allocation2 + $0x12a] sm:$0xff] }
 0x19e   :  { %v6865_v12 = vadd.f32 %v2558_v48, %v2206_v49  ;;  %5618 = vmatmul.msk.f32.gmra.mxu0 %vm18_vm1, %v6464_v25  ;;  %v1755_v49 = vld [vmem:[#allocation2 + $0x138] sm:$0xff] }
 0x19f   :  { %5420 = vmatmul.msk.f32.gmra.mxu1 %vm18_vm1, %v1751_v8  ;;  %v1673_v16 = vadd.f32 %v1493_v24, %v1024_v10 }
 0x1a0   :  { %5552 = vmatmul.msk.f32.gmra.mxu3 %vm18_vm1, %v1753_v35 }
 0x1a1   :  { %5487 = vmatmul.msk.f32.gmra.mxu2 %vm18_vm1, %v1220_v51 }
 0x1a3   :  { %v2027_v33 = vpop.f32.mrf.mxu3  ;;  %v2564_v46 = vpop.f32.mrf.mxu0 }
 0x1a4   :  { %v2207_v63 = vadd.f32 %v2027_v33, %v1673_v16  ;;  %v1026_v57 = vpop.f32.mrf.mxu1  ;;  %v1496_v4 = vpop.f32.mrf.mxu2  ;;  %v1756_v33 = vld [vmem:[#allocation2 + $0x140] sm:$0xff] }
 0x1a5   :  { %v1027_v21 = vadd.f32 %v1026_v57, %v6701_v40 }
 0x1a6   :  { %v6873_v48 = vadd.f32 %v2561_v55, %v2207_v63  ;;  %5619 = vmatmul.msk.f32.gmra.mxu0 %vm18_vm1, %v6490_v34  ;;  %v1223_v63 = vld [vmem:[#allocation2 + $0x13a] sm:$0xff] }
 0x1a7   :  { %5421 = vmatmul.msk.f32.gmra.mxu1 %vm18_vm1, %v1752_v45  ;;  %v1674_v25 = vadd.f32 %v1496_v4, %v1027_v21 }
 0x1a8   :  { %5553 = vmatmul.msk.f32.gmra.mxu3 %vm18_vm1, %v1754_v31 }
 0x1a9   :  { %5488 = vmatmul.msk.f32.gmra.mxu2 %vm18_vm1, %v1221_v23 }
 0x1ab   :  { %v2030_v8 = vpop.f32.mrf.mxu3  ;;  %v2567_v0 = vpop.f32.mrf.mxu0 }
 0x1ac   :  { %v2208_v29 = vadd.f32 %v2030_v8, %v1674_v25  ;;  %v1029_v7 = vpop.f32.mrf.mxu1  ;;  %v1499_v9 = vpop.f32.mrf.mxu2  ;;  %v1757_v25 = vld [vmem:[#allocation2 + $0x150] sm:$0xff]  ;;  %v1224_v8 = vld [vmem:[#allocation2 + $0x142] sm:$0xff] }
 0x1ad   :  { %v1030_v40 = vadd.f32 %v1029_v7, %v6714_v59 }
 0x1ae   :  { %v6881_v55 = vadd.f32 %v2564_v46, %v2208_v29  ;;  %5620 = vmatmul.msk.f32.gmra.mxu0 %vm18_vm1, %v6516_v43  ;;  %v158_v43 = vld [vmem:[%s8035_s0 + $0xf0] sm:$0xff] }
 0x1af   :  { %5422 = vmatmul.msk.f32.gmra.mxu1 %vm18_vm1, %v1753_v35  ;;  %v1675_v34 = vadd.f32 %v1499_v9, %v1030_v40  ;;  %223 = vst.msk [vmem:[#allocation2 + $0x181] sm:$0xff] %vm18_vm1, %v158_v43  ;;  %v1759_v43 = vld [vmem:[#allocation2 + $0x168] sm:$0xff] }
 0x1b0   :  { %5554 = vmatmul.msk.f32.gmra.mxu3 %vm18_vm1, %v1755_v49 }
 0x1b1   :  { %5489 = vmatmul.msk.f32.gmra.mxu2 %vm18_vm1, %v1222_v18 }
 0x1b3   :  { %v2033_v45 = vpop.f32.mrf.mxu3  ;;  %v2570_v24 = vpop.f32.mrf.mxu0 }
 0x1b4   :  { %v2209_v10 = vadd.f32 %v2033_v45, %v1675_v34  ;;  %v1032_v51 = vpop.f32.mrf.mxu1  ;;  %v1502_v16 = vpop.f32.mrf.mxu2  ;;  %v1758_v34 = vld [vmem:[#allocation2 + $0x158] sm:$0xff] }
 0x1b5   :  { %v1033_v59 = vadd.f32 %v1032_v51, %v6727_v17  ;;  %v1225_v45 = vld [vmem:[#allocation2 + $0x152] sm:$0xff] }
 0x1b6   :  { %v6889_v46 = vadd.f32 %v2567_v0, %v2209_v10  ;;  %5621 = vmatmul.msk.f32.gmra.mxu0 %vm18_vm1, %v6542_v53  ;;  %v159_v0 = vld [vmem:[%s8035_s0 + $0xf8] sm:$0xff] }
 0x1b7   :  { %5423 = vmatmul.msk.f32.gmra.mxu1 %vm18_vm1, %v1754_v31  ;;  %v1676_v35 = vadd.f32 %v1502_v16, %v1033_v59  ;;  %224 = vst.msk [vmem:[#allocation2 + $0x189] sm:$0xff] %vm18_vm1, %v159_v0  ;;  %v1227_v0 = vld [vmem:[#allocation2 + $0x16a] sm:$0xff] }
 0x1b8   :  { %5555 = vmatmul.msk.f32.gmra.mxu3 %vm18_vm1, %v1756_v33 }
 0x1b9   :  { %5490 = vmatmul.msk.f32.gmra.mxu2 %vm18_vm1, %v1223_v63 }
 0x1bb   :  { %v2036_v17 = vpop.f32.mrf.mxu3  ;;  %v2573_v57 = vpop.f32.mrf.mxu0 }
 0x1bc   :  { %v2210_v4 = vadd.f32 %v2036_v17, %v1676_v35  ;;  %v1035_v21 = vpop.f32.mrf.mxu1  ;;  %v1505_v23 = vpop.f32.mrf.mxu2  ;;  %v1226_v17 = vld [vmem:[#allocation2 + $0x15a] sm:$0xff] }
 0x1bd   :  { %v1036_v53 = vadd.f32 %v1035_v21, %v6740_v30 }
 0x1be   :  { %v6901_v31 = vadd.f32 %v2570_v24, %v2210_v4  ;;  %5622 = vmatmul.msk.f32.gmra.mxu0 %vm18_vm1, %v6560_v61 }
 0x1bf   :  { %5424 = vmatmul.msk.f32.gmra.mxu1 %vm18_vm1, %v1755_v49  ;;  %v1677_v29 = vadd.f32 %v1505_v23, %v1036_v53  ;;  %v1760_v53 = vld [vmem:[#allocation2 + $0x170] sm:$0xff] }
 0x1c0   :  { %5556 = vmatmul.msk.f32.gmra.mxu3 %vm18_vm1, %v1757_v25 }
 0x1c1   :  { %5491 = vmatmul.msk.f32.gmra.mxu2 %vm18_vm1, %v1224_v8 }
 0x1c3   :  { %v2039_v30 = vpop.f32.mrf.mxu3  ;;  %v2576_v7 = vpop.f32.mrf.mxu0 }
 0x1c4   :  { %v2211_v9 = vadd.f32 %v2039_v30, %v1677_v29  ;;  %v1038_v40 = vpop.f32.mrf.mxu1  ;;  %v1508_v18 = vpop.f32.mrf.mxu2  ;;  %v2295_v30 = vld [vmem:[#allocation2 + $0x181] sm:$0xff] }
 0x1c5   :  { %v1039_v61 = vadd.f32 %v1038_v40, %v6753_v6 }
 0x1c6   :  { %v6913_v49 = vadd.f32 %v2573_v57, %v2211_v9  ;;  %5623 = vmatmul.msk.f32.gmra.mxu0 %vm18_vm1, %v6578_v5 }
 0x1c7   :  { %5425 = vmatmul.msk.f32.gmra.mxu1 %vm18_vm1, %v1756_v33  ;;  %v1678_v24 = vadd.f32 %v1508_v18, %v1039_v61 }
 0x1c8   :  { %5557 = vmatmul.msk.f32.gmra.mxu3 %vm18_vm1, %v1758_v34 }
 0x1c9   :  { %5492 = vmatmul.msk.f32.gmra.mxu2 %vm18_vm1, %v1225_v45  ;;  %v1228_v45 = vld [vmem:[#allocation2 + $0x172] sm:$0xff] }
 0x1cb   :  { %v2042_v10 = vpop.f32.mrf.mxu3  ;;  %v2579_v51 = vpop.f32.mrf.mxu0 }
 0x1cc   :  { %v2212_v16 = vadd.f32 %v2042_v10, %v1678_v24  ;;  %v1041_v59 = vpop.f32.mrf.mxu1  ;;  %v1511_v63 = vpop.f32.mrf.mxu2  ;;  %v2296_v10 = vld [vmem:[#allocation2 + $0x189] sm:$0xff] }
 0x1cd   :  { %v1042_v6 = vadd.f32 %v1041_v59, %v6766_v54 }
 0x1ce   :  { %v6921_v35 = vadd.f32 %v2576_v7, %v2212_v16  ;;  %5624 = vmatmul.msk.f32.gmra.mxu0 %vm18_vm1, %v6592_v13 }
 0x1cf   :  { %5426 = vmatmul.msk.f32.gmra.mxu1 %vm18_vm1, %v1757_v25  ;;  %v1679_v5 = vadd.f32 %v1511_v63, %v1042_v6  ;;  %v1762_v63 = vld [vmem:[#allocation2 + $0x188] sm:$0xff] }
 0x1d0   :  { %5558 = vmatmul.msk.f32.gmra.mxu3 %vm18_vm1, %v1759_v43 }
 0x1d1   :  { %5493 = vmatmul.msk.f32.gmra.mxu2 %vm18_vm1, %v1226_v17  ;;  %v1229_v17 = vld [vmem:[#allocation2 + $0x1b2] sm:$0xff] }
 0x1d3   :  { %v2045_v33 = vpop.f32.mrf.mxu3  ;;  %v2582_v57 = vpop.f32.mrf.mxu0 }
 0x1d4   :  { %v2213_v4 = vadd.f32 %v2045_v33, %v1679_v5  ;;  %v1044_v21 = vpop.f32.mrf.mxu1  ;;  %v1514_v23 = vpop.f32.mrf.mxu2 }
 0x1d5   :  { %v1045_v54 = vadd.f32 %v1044_v21, %v6779_v36  ;;  %v1761_v36 = vld [vmem:[#allocation2 + $0x180] sm:$0xff] }
 0x1d6   :  { %v6929_v8 = vadd.f32 %v2579_v51, %v2213_v4  ;;  %5625 = vmatmul.msk.f32.gmra.mxu0 %vm18_vm1, %v6602_v19 }
 0x1d7   :  { %5427 = vmatmul.msk.f32.gmra.mxu1 %vm18_vm1, %v1758_v34  ;;  %v1680_v13 = vadd.f32 %v1514_v23, %v1045_v54  ;;  %v289_v23 = vld [vmem:[#allocation2 + $0x1b0] sm:$0xff] }
 0x1d8   :  { %5559 = vmatmul.msk.f32.gmra.mxu3 %vm18_vm1, %v1760_v53 }
 0x1d9   :  { %5494 = vmatmul.msk.f32.gmra.mxu2 %vm18_vm1, %v1227_v0 }
 0x1db   :  { %v2048_v25 = vpop.f32.mrf.mxu3  ;;  %v2585_v29 = vpop.f32.mrf.mxu0 }
 0x1dc   :  { %v2214_v7 = vadd.f32 %v2048_v25, %v1680_v13  ;;  %v1047_v9 = vpop.f32.mrf.mxu1  ;;  %v1517_v40 = vpop.f32.mrf.mxu2  ;;  %v1230_v25 = vld [vmem:[#allocation2 + $0x1ba] sm:$0xff] }
 0x1dd   :  { %v1048_v18 = vadd.f32 %v1047_v9, %v6792_v62 }
 0x1de   :  { %v6937_v61 = vadd.f32 %v2582_v57, %v2214_v7  ;;  %5626 = vmatmul.msk.f32.gmra.mxu0 %vm18_vm1, %v2295_v30  ;;  %v2297_v57 = vld [vmem:[#allocation2 + $0x1c9] sm:$0xff]  ;;  %v2298_v7 = vld [vmem:[#allocation2 + $0x1d1] sm:$0xff] }
 0x1df   :  { %5428 = vmatmul.msk.f32.gmra.mxu1 %vm18_vm1, %v1759_v43  ;;  %v1681_v19 = vadd.f32 %v1517_v40, %v1048_v18 }
 0x1e0   :  { %5560 = vmatmul.msk.f32.gmra.mxu3 %vm18_vm1, %v1761_v36  ;;  %v290_v36 = vld [vmem:[#allocation2 + $0x1b8] sm:$0xff] }
 0x1e1   :  { %5495 = vmatmul.msk.f32.gmra.mxu2 %vm18_vm1, %v1228_v45 }
 0x1e3   :  { %v2051_v34 = vpop.f32.mrf.mxu3  ;;  %v2588_v24 = vpop.f32.mrf.mxu0 }
 0x1e4   :  { %v2215_v51 = vadd.f32 %v2051_v34, %v1681_v19  ;;  %v1050_v16 = vpop.f32.mrf.mxu1  ;;  %v1520_v59 = vpop.f32.mrf.mxu2  ;;  %v1231_v34 = vld [vmem:[#allocation2 + $0x1ca] sm:$0xff] }
 0x1e5   :  { %v1051_v62 = vadd.f32 %v1050_v16, %v6805_v44  ;;  %v1763_v44 = vld [vmem:[#allocation2 + $0x1c8] sm:$0xff] }
 0x1e6   :  { %v6944_v6 = vadd.f32 %v2585_v29, %v2215_v51  ;;  %5627 = vmatmul.msk.f32.gmra.mxu0 %vm18_vm1, %v2296_v10  ;;  %v2299_v16 = vld [vmem:[#allocation2 + $0x1e1] sm:$0xff] }
 0x1e7   :  { %5429 = vmatmul.msk.f32.gmra.mxu1 %vm18_vm1, %v1760_v53  ;;  %v1682_v43 = vadd.f32 %v1520_v59, %v1051_v62 }
 0x1e8   :  { %5561 = vmatmul.msk.f32.gmra.mxu3 %vm18_vm1, %v1762_v63 }
 0x1e9   :  { %5496 = vmatmul.msk.f32.gmra.mxu2 %vm18_vm1, %v1229_v17  ;;  %v1765_v17 = vld [vmem:[#allocation2 + $0x1e0] sm:$0xff] }
 0x1eb   :  { %v2054_v5 = vpop.f32.mrf.mxu3  ;;  %v2591_v33 = vpop.f32.mrf.mxu0 }
 0x1ec   :  { %v2216_v4 = vadd.f32 %v2054_v5, %v1682_v43  ;;  %v1053_v21 = vpop.f32.mrf.mxu1  ;;  %v1523_v54 = vpop.f32.mrf.mxu2  ;;  %v1232_v5 = vld [vmem:[#allocation2 + $0x1d2] sm:$0xff] }
 0x1ed   :  { %v1054_v0 = vadd.f32 %v1053_v21, %v6614_v27  ;;  %v1764_v27 = vld [vmem:[#allocation2 + $0x1d0] sm:$0xff] }
 0x1ee   :  { %v6951_v13 = vadd.f32 %v2588_v24, %v2216_v4  ;;  %5628 = vmatmul.msk.f32.gmra.mxu0 %vm18_vm1, %v2297_v57  ;;  %v2300_v21 = vld [vmem:[#allocation2 + $0x1e9] sm:$0xff] }
 0x1ef   :  { %5430 = vmatmul.msk.f32.gmra.mxu1 %vm18_vm1, %v289_v23  ;;  %v1683_v53 = vadd.f32 %v1523_v54, %v1054_v0 }
 0x1f0   :  { %5562 = vmatmul.msk.f32.gmra.mxu3 %vm18_vm1, %v1763_v44 }
 0x1f1   :  { %5497 = vmatmul.msk.f32.gmra.mxu2 %vm18_vm1, %v1230_v25  ;;  %v1766_v25 = vld [vmem:[#allocation2 + $0x1e8] sm:$0xff] }
 0x1f3   :  { %v2057_v29 = vpop.f32.mrf.mxu3  ;;  %v2594_v30 = vpop.f32.mrf.mxu0 }
 0x1f4   :  { %v2217_v9 = vadd.f32 %v2057_v29, %v1683_v53  ;;  %v1056_v40 = vpop.f32.mrf.mxu1  ;;  %v1526_v18 = vpop.f32.mrf.mxu2  ;;  %v1233_v29 = vld [vmem:[#allocation2 + $0x1e2] sm:$0xff] }
 0x1f5   :  { %v1057_v45 = vadd.f32 %v1056_v40, %v6627_v38 }
 0x1f6   :  { %v6958_v19 = vadd.f32 %v2591_v33, %v2217_v9  ;;  %5629 = vmatmul.msk.f32.gmra.mxu0 %vm18_vm1, %v2298_v7  ;;  %v2301_v9 = vld [vmem:[#allocation2 + $0x1f9] sm:$0xff] }
 0x1f7   :  { %5431 = vmatmul.msk.f32.gmra.mxu1 %vm18_vm1, %v290_v36  ;;  %v1684_v24 = vadd.f32 %v1526_v18, %v1057_v45  ;;  %v1767_v45 = vld [vmem:[#allocation2 + $0x1f8] sm:$0xff] }
 0x1f8   :  { %5563 = vmatmul.msk.f32.gmra.mxu3 %vm18_vm1, %v1764_v27 }
 0x1f9   :  { %5498 = vmatmul.msk.f32.gmra.mxu2 %vm18_vm1, %v1231_v34 }
 0x1fb   :  { %v2060_v10 = vpop.f32.mrf.mxu3  ;;  %v2597_v51 = vpop.f32.mrf.mxu0 }
 0x1fc   :  { %v2218_v59 = vadd.f32 %v2060_v10, %v1684_v24  ;;  %v1059_v63 = vpop.f32.mrf.mxu1  ;;  %v1529_v62 = vpop.f32.mrf.mxu2  ;;  %v1234_v24 = vld [vmem:[#allocation2 + $0x1ea] sm:$0xff] }
 0x1fd   :  { %v1060_v38 = vadd.f32 %v1059_v63, %v6638_v47 }
 0x1fe   :  { %v6965_v43 = vadd.f32 %v2594_v30, %v2218_v59  ;;  %5630 = vmatmul.msk.f32.gmra.mxu0 %vm18_vm1, %v2299_v16  ;;  %v2302_v16 = vld [vmem:[#allocation2 + $0x201] sm:$0xff] }
 0x1ff   :  { %5432 = vmatmul.msk.f32.gmra.mxu1 %vm18_vm1, %v1763_v44  ;;  %v1685_v33 = vadd.f32 %v1529_v62, %v1060_v38  ;;  %v1768_v38 = vld [vmem:[#allocation2 + $0x200] sm:$0xff] }
 0x200   :  { %5564 = vmatmul.msk.f32.gmra.mxu3 %vm18_vm1, %v1765_v17 }
 0x201   :  { %5499 = vmatmul.msk.f32.gmra.mxu2 %vm18_vm1, %v1232_v5 }
 0x203   :  { %v2063_v57 = vpop.f32.mrf.mxu3  ;;  %v2600_v4 = vpop.f32.mrf.mxu0 }
 0x204   :  { %v2219_v23 = vadd.f32 %v2063_v57, %v1685_v33  ;;  %v1062_v54 = vpop.f32.mrf.mxu1  ;;  %v1532_v0 = vpop.f32.mrf.mxu2  ;;  %v1235_v33 = vld [vmem:[#allocation2 + $0x1fa] sm:$0xff] }
 0x205   :  { %v1063_v47 = vadd.f32 %v1062_v54, %v6651_v56 }
 0x206   :  { %v6972_v53 = vadd.f32 %v2597_v51, %v2219_v23  ;;  %5631 = vmatmul.msk.f32.gmra.mxu0 %vm18_vm1, %v2300_v21  ;;  %v2303_v21 = vld [vmem:[#allocation2 + $0x211] sm:$0xff] }
 0x207   :  { %5433 = vmatmul.msk.f32.gmra.mxu1 %vm18_vm1, %v1764_v27  ;;  %v1686_v44 = vadd.f32 %v1532_v0, %v1063_v47  ;;  %v1769_v47 = vld [vmem:[#allocation2 + $0x210] sm:$0xff] }
 0x208   :  { %5565 = vmatmul.msk.f32.gmra.mxu3 %vm18_vm1, %v1766_v25 }
 0x209   :  { %5500 = vmatmul.msk.f32.gmra.mxu2 %vm18_vm1, %v1233_v29 }
 0x20b   :  { %v2066_v30 = vpop.f32.mrf.mxu3  ;;  %v2603_v7 = vpop.f32.mrf.mxu0 }
 0x20c   :  { %v2220_v40 = vadd.f32 %v2066_v30, %v1686_v44  ;;  %v1065_v36 = vpop.f32.mrf.mxu1  ;;  %v1535_v18 = vpop.f32.mrf.mxu2  ;;  %v1236_v44 = vld [vmem:[#allocation2 + $0x202] sm:$0xff] }
 0x20d   :  { %v1066_v56 = vadd.f32 %v1065_v36, %v6664_v1 }
 0x20e   :  { %v6979_v34 = vadd.f32 %v2600_v4, %v2220_v40  ;;  %5632 = vmatmul.msk.f32.gmra.mxu0 %vm18_vm1, %v2301_v9  ;;  %v2304_v9 = vld [vmem:[#allocation2 + $0x219] sm:$0xff] }
 0x20f   :  { %5434 = vmatmul.msk.f32.gmra.mxu1 %vm18_vm1, %v1765_v17  ;;  %v1687_v27 = vadd.f32 %v1535_v18, %v1066_v56  ;;  %v1770_v56 = vld [vmem:[#allocation2 + $0x218] sm:$0xff] }
 0x210   :  { %5566 = vmatmul.msk.f32.gmra.mxu3 %vm18_vm1, %v1767_v45 }
 0x211   :  { %5501 = vmatmul.msk.f32.gmra.mxu2 %vm18_vm1, %v1234_v24 }
 0x213   :  { %v2069_v10 = vpop.f32.mrf.mxu3  ;;  %v2606_v51 = vpop.f32.mrf.mxu0 }
 0x214   :  { %v2221_v59 = vadd.f32 %v2069_v10, %v1687_v27  ;;  %v1068_v63 = vpop.f32.mrf.mxu1  ;;  %v1538_v62 = vpop.f32.mrf.mxu2  ;;  %v1237_v27 = vld [vmem:[#allocation2 + $0x212] sm:$0xff] }
 0x215   :  { %v1069_v1 = vadd.f32 %v1068_v63, %v6677_v11 }
 0x216   :  { %v6986_v5 = vadd.f32 %v2603_v7, %v2221_v59  ;;  %5633 = vmatmul.msk.f32.gmra.mxu0 %vm18_vm1, %v2302_v16  ;;  %v2305_v16 = vld [vmem:[#allocation2 + $0x229] sm:$0xff] }
 0x217   :  { %5435 = vmatmul.msk.f32.gmra.mxu1 %vm18_vm1, %v1766_v25  ;;  %v1688_v17 = vadd.f32 %v1538_v62, %v1069_v1  ;;  %v1771_v1 = vld [vmem:[#allocation2 + $0x228] sm:$0xff] }
 0x218   :  { %5567 = vmatmul.msk.f32.gmra.mxu3 %vm18_vm1, %v1768_v38 }
 0x219   :  { %5502 = vmatmul.msk.f32.gmra.mxu2 %vm18_vm1, %v1235_v33 }
 0x21b   :  { %v2072_v57 = vpop.f32.mrf.mxu3  ;;  %v2609_v4 = vpop.f32.mrf.mxu0 }
 0x21c   :  { %v2222_v23 = vadd.f32 %v2072_v57, %v1688_v17  ;;  %v1071_v54 = vpop.f32.mrf.mxu1  ;;  %v1541_v0 = vpop.f32.mrf.mxu2  ;;  %v1238_v17 = vld [vmem:[#allocation2 + $0x21a] sm:$0xff] }
 0x21d   :  { %v1072_v11 = vadd.f32 %v1071_v54, %v6690_v28 }
 0x21e   :  { %v6993_v29 = vadd.f32 %v2606_v51, %v2222_v23  ;;  %5634 = vmatmul.msk.f32.gmra.mxu0 %vm18_vm1, %v2303_v21  ;;  %v2306_v21 = vld [vmem:[#allocation2 + $0x231] sm:$0xff] }
 0x21f   :  { %5436 = vmatmul.msk.f32.gmra.mxu1 %vm18_vm1, %v1767_v45  ;;  %v1689_v25 = vadd.f32 %v1541_v0, %v1072_v11  ;;  %v1772_v11 = vld [vmem:[#allocation2 + $0x230] sm:$0xff] }
 0x220   :  { %5568 = vmatmul.msk.f32.gmra.mxu3 %vm18_vm1, %v1769_v47 }
 0x221   :  { %5503 = vmatmul.msk.f32.gmra.mxu2 %vm18_vm1, %v1236_v44 }
 0x223   :  { %v2075_v30 = vpop.f32.mrf.mxu3  ;;  %v2612_v7 = vpop.f32.mrf.mxu0 }
 0x224   :  { %v2223_v40 = vadd.f32 %v2075_v30, %v1689_v25  ;;  %v1074_v36 = vpop.f32.mrf.mxu1  ;;  %v1544_v18 = vpop.f32.mrf.mxu2  ;;  %v1239_v25 = vld [vmem:[#allocation2 + $0x22a] sm:$0xff] }
 0x225   :  { %v1075_v28 = vadd.f32 %v1074_v36, %v6703_v41 }
 0x226   :  { %v7000_v24 = vadd.f32 %v2609_v4, %v2223_v40  ;;  %5635 = vmatmul.msk.f32.gmra.mxu0 %vm18_vm1, %v2304_v9  ;;  %v2307_v9 = vld [vmem:[#allocation2 + $0x241] sm:$0xff] }
 0x227   :  { %5437 = vmatmul.msk.f32.gmra.mxu1 %vm18_vm1, %v1768_v38  ;;  %v1690_v45 = vadd.f32 %v1544_v18, %v1075_v28  ;;  %v1773_v28 = vld [vmem:[#allocation2 + $0x240] sm:$0xff] }
 0x228   :  { %5569 = vmatmul.msk.f32.gmra.mxu3 %vm18_vm1, %v1770_v56 }
 0x229   :  { %5504 = vmatmul.msk.f32.gmra.mxu2 %vm18_vm1, %v1237_v27 }
 0x22b   :  { %v2078_v10 = vpop.f32.mrf.mxu3  ;;  %v2615_v51 = vpop.f32.mrf.mxu0 }
 0x22c   :  { %v2224_v59 = vadd.f32 %v2078_v10, %v1690_v45  ;;  %v1077_v63 = vpop.f32.mrf.mxu1  ;;  %v1547_v62 = vpop.f32.mrf.mxu2  ;;  %v1240_v45 = vld [vmem:[#allocation2 + $0x232] sm:$0xff] }
 0x22d   :  { %v1078_v41 = vadd.f32 %v1077_v63, %v6716_v3 }
 0x22e   :  { %v7007_v33 = vadd.f32 %v2612_v7, %v2224_v59  ;;  %5636 = vmatmul.msk.f32.gmra.mxu0 %vm18_vm1, %v2305_v16  ;;  %v2308_v16 = vld [vmem:[#allocation2 + $0x249] sm:$0xff] }
 0x22f   :  { %5438 = vmatmul.msk.f32.gmra.mxu1 %vm18_vm1, %v1769_v47  ;;  %v1691_v38 = vadd.f32 %v1547_v62, %v1078_v41  ;;  %v1774_v41 = vld [vmem:[#allocation2 + $0x248] sm:$0xff] }
 0x230   :  { %5570 = vmatmul.msk.f32.gmra.mxu3 %vm18_vm1, %v1771_v1 }
 0x231   :  { %5505 = vmatmul.msk.f32.gmra.mxu2 %vm18_vm1, %v1238_v17 }
 0x233   :  { %v2081_v57 = vpop.f32.mrf.mxu3  ;;  %v2618_v4 = vpop.f32.mrf.mxu0 }
 0x234   :  { %v2225_v23 = vadd.f32 %v2081_v57, %v1691_v38  ;;  %v1080_v54 = vpop.f32.mrf.mxu1  ;;  %v1550_v0 = vpop.f32.mrf.mxu2  ;;  %v1241_v38 = vld [vmem:[#allocation2 + $0x242] sm:$0xff] }
 0x235   :  { %v1081_v3 = vadd.f32 %v1080_v54, %v6729_v58 }
 0x236   :  { %v7014_v44 = vadd.f32 %v2615_v51, %v2225_v23  ;;  %5637 = vmatmul.msk.f32.gmra.mxu0 %vm18_vm1, %v2306_v21  ;;  %v2309_v21 = vld [vmem:[#allocation2 + $0x259] sm:$0xff] }
 0x237   :  { %5439 = vmatmul.msk.f32.gmra.mxu1 %vm18_vm1, %v1770_v56  ;;  %v1692_v47 = vadd.f32 %v1550_v0, %v1081_v3  ;;  %v1775_v3 = vld [vmem:[#allocation2 + $0x258] sm:$0xff] }
 0x238   :  { %5571 = vmatmul.msk.f32.gmra.mxu3 %vm18_vm1, %v1772_v11 }
 0x239   :  { %5506 = vmatmul.msk.f32.gmra.mxu2 %vm18_vm1, %v1239_v25 }
 0x23b   :  { %v2084_v30 = vpop.f32.mrf.mxu3  ;;  %v2621_v7 = vpop.f32.mrf.mxu0 }
 0x23c   :  { %v2226_v40 = vadd.f32 %v2084_v30, %v1692_v47  ;;  %v1083_v36 = vpop.f32.mrf.mxu1  ;;  %v1553_v18 = vpop.f32.mrf.mxu2  ;;  %v1242_v47 = vld [vmem:[#allocation2 + $0x24a] sm:$0xff] }
 0x23d   :  { %v1084_v58 = vadd.f32 %v1083_v36, %v6742_v39 }
 0x23e   :  { %v7021_v27 = vadd.f32 %v2618_v4, %v2226_v40  ;;  %5638 = vmatmul.msk.f32.gmra.mxu0 %vm18_vm1, %v2307_v9  ;;  %v2310_v9 = vld [vmem:[#allocation2 + $0x261] sm:$0xff] }
 0x23f   :  { %5440 = vmatmul.msk.f32.gmra.mxu1 %vm18_vm1, %v1771_v1  ;;  %v1693_v56 = vadd.f32 %v1553_v18, %v1084_v58  ;;  %v1776_v58 = vld [vmem:[#allocation2 + $0x260] sm:$0xff] }
 0x240   :  { %5572 = vmatmul.msk.f32.gmra.mxu3 %vm18_vm1, %v1773_v28 }
 0x241   :  { %5507 = vmatmul.msk.f32.gmra.mxu2 %vm18_vm1, %v1240_v45 }
 0x243   :  { %v2087_v10 = vpop.f32.mrf.mxu3  ;;  %v2624_v51 = vpop.f32.mrf.mxu0 }
 0x244   :  { %v2227_v59 = vadd.f32 %v2087_v10, %v1693_v56  ;;  %v1086_v63 = vpop.f32.mrf.mxu1  ;;  %v1556_v62 = vpop.f32.mrf.mxu2  ;;  %v1243_v56 = vld [vmem:[#allocation2 + $0x25a] sm:$0xff] }
 0x245   :  { %v1087_v39 = vadd.f32 %v1086_v63, %v6755_v50 }
 0x246   :  { %v7028_v17 = vadd.f32 %v2621_v7, %v2227_v59  ;;  %5639 = vmatmul.msk.f32.gmra.mxu0 %vm18_vm1, %v2308_v16  ;;  %v2311_v16 = vld [vmem:[#allocation2 + $0x271] sm:$0xff] }
 0x247   :  { %5441 = vmatmul.msk.f32.gmra.mxu1 %vm18_vm1, %v1772_v11  ;;  %v1694_v1 = vadd.f32 %v1556_v62, %v1087_v39  ;;  %v1777_v39 = vld [vmem:[#allocation2 + $0x270] sm:$0xff] }
 0x248   :  { %5573 = vmatmul.msk.f32.gmra.mxu3 %vm18_vm1, %v1774_v41 }
 0x249   :  { %5508 = vmatmul.msk.f32.gmra.mxu2 %vm18_vm1, %v1241_v38 }
 0x24b   :  { %v2090_v57 = vpop.f32.mrf.mxu3  ;;  %v2627_v4 = vpop.f32.mrf.mxu0 }
 0x24c   :  { %v2228_v23 = vadd.f32 %v2090_v57, %v1694_v1  ;;  %v1089_v54 = vpop.f32.mrf.mxu1  ;;  %v1559_v0 = vpop.f32.mrf.mxu2  ;;  %v1244_v1 = vld [vmem:[#allocation2 + $0x262] sm:$0xff] }
 0x24d   :  { %v1090_v50 = vadd.f32 %v1089_v54, %v6768_v20 }
 0x24e   :  { %v7035_v25 = vadd.f32 %v2624_v51, %v2228_v23  ;;  %5640 = vmatmul.msk.f32.gmra.mxu0 %vm18_vm1, %v2309_v21  ;;  %v2312_v21 = vld [vmem:[#allocation2 + $0x279] sm:$0xff] }
 0x24f   :  { %5442 = vmatmul.msk.f32.gmra.mxu1 %vm18_vm1, %v1773_v28  ;;  %v1695_v11 = vadd.f32 %v1559_v0, %v1090_v50  ;;  %v1778_v50 = vld [vmem:[#allocation2 + $0x278] sm:$0xff] }
 0x250   :  { %5574 = vmatmul.msk.f32.gmra.mxu3 %vm18_vm1, %v1775_v3 }
 0x251   :  { %5509 = vmatmul.msk.f32.gmra.mxu2 %vm18_vm1, %v1242_v47 }
 0x253   :  { %v2093_v30 = vpop.f32.mrf.mxu3  ;;  %v2630_v7 = vpop.f32.mrf.mxu0 }
 0x254   :  { %v2229_v40 = vadd.f32 %v2093_v30, %v1695_v11  ;;  %v1092_v36 = vpop.f32.mrf.mxu1  ;;  %v1562_v18 = vpop.f32.mrf.mxu2  ;;  %v1245_v11 = vld [vmem:[#allocation2 + $0x272] sm:$0xff] }
 0x255   :  { %v1093_v20 = vadd.f32 %v1092_v36, %v6781_v15 }
 0x256   :  { %v7042_v45 = vadd.f32 %v2627_v4, %v2229_v40  ;;  %5641 = vmatmul.msk.f32.gmra.mxu0 %vm18_vm1, %v2310_v9  ;;  %v2313_v9 = vld [vmem:[#allocation2 + $0x289] sm:$0xff] }
 0x257   :  { %5443 = vmatmul.msk.f32.gmra.mxu1 %vm18_vm1, %v1774_v41  ;;  %v1696_v28 = vadd.f32 %v1562_v18, %v1093_v20  ;;  %v1779_v20 = vld [vmem:[#allocation2 + $0x288] sm:$0xff] }
 0x258   :  { %5575 = vmatmul.msk.f32.gmra.mxu3 %vm18_vm1, %v1776_v58 }
 0x259   :  { %5510 = vmatmul.msk.f32.gmra.mxu2 %vm18_vm1, %v1243_v56 }
 0x25b   :  { %v2096_v10 = vpop.f32.mrf.mxu3  ;;  %v2633_v51 = vpop.f32.mrf.mxu0 }
 0x25c   :  { %v2230_v59 = vadd.f32 %v2096_v10, %v1696_v28  ;;  %v1095_v63 = vpop.f32.mrf.mxu1  ;;  %v1565_v62 = vpop.f32.mrf.mxu2  ;;  %v1246_v28 = vld [vmem:[#allocation2 + $0x27a] sm:$0xff] }
 0x25d   :  { %v1096_v15 = vadd.f32 %v1095_v63, %v6794_v42 }
 0x25e   :  { %v7049_v38 = vadd.f32 %v2630_v7, %v2230_v59  ;;  %5642 = vmatmul.msk.f32.gmra.mxu0 %vm18_vm1, %v2311_v16  ;;  %v2314_v16 = vld [vmem:[#allocation2 + $0x291] sm:$0xff] }
 0x25f   :  { %5444 = vmatmul.msk.f32.gmra.mxu1 %vm18_vm1, %v1775_v3  ;;  %v1697_v41 = vadd.f32 %v1565_v62, %v1096_v15  ;;  %v1780_v15 = vld [vmem:[#allocation2 + $0x290] sm:$0xff] }
 0x260   :  { %5576 = vmatmul.msk.f32.gmra.mxu3 %vm18_vm1, %v1777_v39 }
 0x261   :  { %5511 = vmatmul.msk.f32.gmra.mxu2 %vm18_vm1, %v1244_v1 }
 0x263   :  { %v2099_v57 = vpop.f32.mrf.mxu3  ;;  %v2636_v4 = vpop.f32.mrf.mxu0 }
 0x264   :  { %v2231_v23 = vadd.f32 %v2099_v57, %v1697_v41  ;;  %v1098_v54 = vpop.f32.mrf.mxu1  ;;  %v1568_v0 = vpop.f32.mrf.mxu2  ;;  %v1247_v41 = vld [vmem:[#allocation2 + $0x28a] sm:$0xff] }
 0x265   :  { %v1099_v42 = vadd.f32 %v1098_v54, %v6807_v32 }
 0x266   :  { %v7056_v47 = vadd.f32 %v2633_v51, %v2231_v23  ;;  %5643 = vmatmul.msk.f32.gmra.mxu0 %vm18_vm1, %v2312_v21  ;;  %v2315_v21 = vld [vmem:[#allocation2 + $0x2a1] sm:$0xff] }
 0x267   :  { %5445 = vmatmul.msk.f32.gmra.mxu1 %vm18_vm1, %v1776_v58  ;;  %v1698_v3 = vadd.f32 %v1568_v0, %v1099_v42  ;;  %v1781_v42 = vld [vmem:[#allocation2 + $0x2a0] sm:$0xff] }
 0x268   :  { %5577 = vmatmul.msk.f32.gmra.mxu3 %vm18_vm1, %v1778_v50 }
 0x269   :  { %5512 = vmatmul.msk.f32.gmra.mxu2 %vm18_vm1, %v1245_v11 }
 0x26b   :  { %v2102_v30 = vpop.f32.mrf.mxu3  ;;  %v2639_v7 = vpop.f32.mrf.mxu0 }
 0x26c   :  { %v2232_v40 = vadd.f32 %v2102_v30, %v1698_v3  ;;  %v1101_v36 = vpop.f32.mrf.mxu1  ;;  %v1571_v18 = vpop.f32.mrf.mxu2  ;;  %v1248_v30 = vld [vmem:[#allocation2 + $0x292] sm:$0xff] }
 0x26d   :  { %v1102_v32 = vadd.f32 %v1101_v36, %v6611_v26 }
 0x26e   :  { %v7063_v56 = vadd.f32 %v2636_v4, %v2232_v40  ;;  %5644 = vmatmul.msk.f32.gmra.mxu0 %vm18_vm1, %v2313_v9  ;;  %v2316_v40 = vld [vmem:[#allocation2 + $0x2a9] sm:$0xff] }
 0x26f   :  { %5446 = vmatmul.msk.f32.gmra.mxu1 %vm18_vm1, %v1777_v39  ;;  %v1699_v58 = vadd.f32 %v1571_v18, %v1102_v32 }
 0x270   :  { %5578 = vmatmul.msk.f32.gmra.mxu3 %vm18_vm1, %v1779_v20 }
 0x271   :  { %5513 = vmatmul.msk.f32.gmra.mxu2 %vm18_vm1, %v1246_v28  ;;  %v1782_v28 = vld [vmem:[#allocation2 + $0x2a8] sm:$0xff] }
 0x273   :  { %v2105_v10 = vpop.f32.mrf.mxu3  ;;  %v2642_v51 = vpop.f32.mrf.mxu0 }
 0x274   :  { %v2233_v59 = vadd.f32 %v2105_v10, %v1699_v58  ;;  %v1104_v63 = vpop.f32.mrf.mxu1  ;;  %v1574_v62 = vpop.f32.mrf.mxu2  ;;  %v8070_v58 = vld [vmem:[#allocation8_spill] sm:$0xff] }
 0x275   :  { %v1105_v26 = vadd.f32 %v1104_v63, %v6625_v37  ;;  %v8069_v37 = vld [vmem:[#allocation6_spill] sm:$0xff] }
 0x276   :  { %v7070_v1 = vadd.f32 %v2639_v7, %v2233_v59  ;;  %5645 = vmatmul.msk.f32.gmra.mxu0 %vm18_vm1, %v2314_v16  ;;  %v1249_v16 = vld [vmem:[#allocation2 + $0x2a2] sm:$0xff] }
 0x277   :  { %5447 = vmatmul.msk.f32.gmra.mxu1 %vm18_vm1, %v1778_v50  ;;  %v1700_v39 = vadd.f32 %v1574_v62, %v1105_v26  ;;  %v2317_v62 = vld [vmem:[#allocation2 + $0x2b9] sm:$0xff] }
 0x278   :  { %5579 = vmatmul.msk.f32.gmra.mxu3 %vm18_vm1, %v1780_v15 }
 0x279   :  { %5514 = vmatmul.msk.f32.gmra.mxu2 %vm18_vm1, %v1247_v41 }
 0x27b   :  { %v2108_v57 = vpop.f32.mrf.mxu3  ;;  %v2645_v4 = vpop.f32.mrf.mxu0 }
 0x27c   :  { %v2234_v23 = vadd.f32 %v2108_v57, %v1700_v39  ;;  %v1107_v54 = vpop.f32.mrf.mxu1  ;;  %v1577_v0 = vpop.f32.mrf.mxu2  ;;  %v1783_v57 = vld [vmem:[#allocation2 + $0x2b8] sm:$0xff] }
 0x27d   :  { %v1108_v11 = vadd.f32 %v1107_v54, %v8069_v37  ;;  %v1250_v54 = vld [vmem:[#allocation2 + $0x2aa] sm:$0xff] }
 0x27e   :  { %v7077_v3 = vadd.f32 %v2642_v51, %v2234_v23  ;;  %5646 = vmatmul.msk.f32.gmra.mxu0 %vm18_vm1, %v2315_v21  ;;  %v8071_v21 = vld [vmem:[#allocation10_spill] sm:$0xff] }
 0x27f   :  { %5448 = vmatmul.msk.f32.gmra.mxu1 %vm18_vm1, %v1779_v20  ;;  %v1701_v50 = vadd.f32 %v1577_v0, %v1108_v11  ;;  %v2318_v11 = vld [vmem:[#allocation2 + $0x2c1] sm:$0xff] }
 0x280   :  { %5580 = vmatmul.msk.f32.gmra.mxu3 %vm18_vm1, %v1781_v42 }
 0x281   :  { %5515 = vmatmul.msk.f32.gmra.mxu2 %vm18_vm1, %v1248_v30 }
 0x283   :  { %v2111_v7 = vpop.f32.mrf.mxu3  ;;  %v2648_v9 = vpop.f32.mrf.mxu0 }
 0x284   :  { %v2235_v36 = vadd.f32 %v2111_v7, %v1701_v50  ;;  %v1110_v18 = vpop.f32.mrf.mxu1  ;;  %v1580_v32 = vpop.f32.mrf.mxu2 }
 0x285   :  { %v1111_v10 = vadd.f32 %v1110_v18, %v8070_v58 }
 0x286   :  { %v7084_v51 = vadd.f32 %v2645_v4, %v2235_v36  ;;  %5647 = vmatmul.msk.f32.gmra.mxu0 %vm18_vm1, %v2316_v40  ;;  %v1784_v40 = vld [vmem:[#allocation2 + $0x2c0] sm:$0xff] }
 0x287   :  { %5449 = vmatmul.msk.f32.gmra.mxu1 %vm18_vm1, %v1780_v15  ;;  %v1702_v20 = vadd.f32 %v1580_v32, %v1111_v10  ;;  %v8072_v36 = vld [vmem:[#allocation12_spill] sm:$0xff] }
 0x288   :  { %5581 = vmatmul.msk.f32.gmra.mxu3 %vm18_vm1, %v1782_v28  ;;  %v1251_v32 = vld [vmem:[#allocation2 + $0x2ba] sm:$0xff] }
 0x289   :  { %5516 = vmatmul.msk.f32.gmra.mxu2 %vm18_vm1, %v1249_v16  ;;  %v2319_v16 = vld [vmem:[#allocation2 + $0x2d1] sm:$0xff] }
 0x28b   :  { %v2114_v59 = vpop.f32.mrf.mxu3  ;;  %v2651_v63 = vpop.f32.mrf.mxu0 }
 0x28c   :  { %v2236_v26 = vadd.f32 %v2114_v59, %v1702_v20  ;;  %v1113_v41 = vpop.f32.mrf.mxu1  ;;  %v1583_v39 = vpop.f32.mrf.mxu2 }
 0x28d   :  { %v1114_v4 = vadd.f32 %v1113_v41, %v8071_v21  ;;  %v8073_v41 = vld [vmem:[#allocation14_spill] sm:$0xff]  ;;  %v1252_v21 = vld [vmem:[#allocation2 + $0x2c2] sm:$0xff] }
 0x28e   :  { %v7091_v23 = vadd.f32 %v2648_v9, %v2236_v26  ;;  %5648 = vmatmul.msk.f32.gmra.mxu0 %vm18_vm1, %v2317_v62  ;;  %v1785_v26 = vld [vmem:[#allocation2 + $0x2d0] sm:$0xff] }
 0x28f   :  { %5450 = vmatmul.msk.f32.gmra.mxu1 %vm18_vm1, %v1781_v42  ;;  %v1703_v15 = vadd.f32 %v1583_v39, %v1114_v4 }
 0x290   :  { %5582 = vmatmul.msk.f32.gmra.mxu3 %vm18_vm1, %v1783_v57 }
 0x291   :  { %5517 = vmatmul.msk.f32.gmra.mxu2 %vm18_vm1, %v1250_v54 }
 0x293   :  { %v2117_v0 = vpop.f32.mrf.mxu3  ;;  %v2654_v37 = vpop.f32.mrf.mxu0 }
 0x294   :  { %v2237_v30 = vadd.f32 %v2117_v0, %v1703_v15  ;;  %v1116_v50 = vpop.f32.mrf.mxu1  ;;  %v1586_v7 = vpop.f32.mrf.mxu2  ;;  %v2320_v15 = vld [vmem:[#allocation2 + $0x2d9] sm:$0xff] }
 0x295   :  { %v1117_v9 = vadd.f32 %v1116_v50, %v8072_v36  ;;  %v1786_v50 = vld [vmem:[#allocation2 + $0x2d8] sm:$0xff] }
 0x296   :  { %v7098_v18 = vadd.f32 %v2651_v63, %v2237_v30  ;;  %5649 = vmatmul.msk.f32.gmra.mxu0 %vm18_vm1, %v2318_v11 }
 0x297   :  { %5451 = vmatmul.msk.f32.gmra.mxu1 %vm18_vm1, %v1782_v28  ;;  %v1704_v42 = vadd.f32 %v1586_v7, %v1117_v9  ;;  %v8074_v7 = vld [vmem:[#allocation16_spill] sm:$0xff]  ;;  %v1253_v9 = vld [vmem:[#allocation2 + $0x2d2] sm:$0xff] }
 0x298   :  { %5583 = vmatmul.msk.f32.gmra.mxu3 %vm18_vm1, %v1784_v40 }
 0x299   :  { %5518 = vmatmul.msk.f32.gmra.mxu2 %vm18_vm1, %v1251_v32 }
 0x29b   :  { %v2120_v58 = vpop.f32.mrf.mxu3  ;;  %v2657_v10 = vpop.f32.mrf.mxu0 }
 0x29c   :  { %v2238_v20 = vadd.f32 %v2120_v58, %v1704_v42  ;;  %v1119_v59 = vpop.f32.mrf.mxu1  ;;  %v1589_v62 = vpop.f32.mrf.mxu2  ;;  %v2321_v58 = vld [vmem:[#allocation2 + $0x2e9] sm:$0xff] }
 0x29d   :  { %v1120_v63 = vadd.f32 %v1119_v59, %v8073_v41  ;;  %v8075_v41 = vld [vmem:[#allocation18_spill] sm:$0xff] }
 0x29e   :  { %v7105_v39 = vadd.f32 %v2654_v37, %v2238_v20  ;;  %5650 = vmatmul.msk.f32.gmra.mxu0 %vm18_vm1, %v2319_v16 }
 0x29f   :  { %5452 = vmatmul.msk.f32.gmra.mxu1 %vm18_vm1, %v1783_v57  ;;  %v1705_v28 = vadd.f32 %v1589_v62, %v1120_v63  ;;  %v1787_v62 = vld [vmem:[#allocation2 + $0x2e8] sm:$0xff] }
 0x2a0   :  { %5584 = vmatmul.msk.f32.gmra.mxu3 %vm18_vm1, %v1785_v26 }
 0x2a1   :  { %5519 = vmatmul.msk.f32.gmra.mxu2 %vm18_vm1, %v1252_v21  ;;  %v1254_v21 = vld [vmem:[#allocation2 + $0x2da] sm:$0xff] }
 0x2a3   :  { %v2123_v4 = vpop.f32.mrf.mxu3  ;;  %v2660_v54 = vpop.f32.mrf.mxu0 }
 0x2a4   :  { %v2239_v0 = vadd.f32 %v2123_v4, %v1705_v28  ;;  %v1122_v11 = vpop.f32.mrf.mxu1  ;;  %v1592_v30 = vpop.f32.mrf.mxu2 }
 0x2a5   :  { %v1123_v37 = vadd.f32 %v1122_v11, %v8074_v7  ;;  %v1788_v7 = vld [vmem:[#allocation2 + $0x2f0] sm:$0xff] }
 0x2a6   :  { %v7112_v36 = vadd.f32 %v2657_v10, %v2239_v0  ;;  %5651 = vmatmul.msk.f32.gmra.mxu0 %vm18_vm1, %v2320_v15  ;;  %v2322_v15 = vld [vmem:[#allocation2 + $0x2f1] sm:$0xff] }
 0x2a7   :  { %5453 = vmatmul.msk.f32.gmra.mxu1 %vm18_vm1, %v1784_v40  ;;  %v1706_v57 = vadd.f32 %v1592_v30, %v1123_v37  ;;  %v8076_v37 = vld [vmem:[#allocation20_spill] sm:$0xff] }
 0x2a8   :  { %5585 = vmatmul.msk.f32.gmra.mxu3 %vm18_vm1, %v1786_v50 }
 0x2a9   :  { %5520 = vmatmul.msk.f32.gmra.mxu2 %vm18_vm1, %v1253_v9 }
 0x2ab   :  { %v2126_v32 = vpop.f32.mrf.mxu3  ;;  %v2663_v42 = vpop.f32.mrf.mxu0 }
 0x2ac   :  { %v2240_v16 = vadd.f32 %v2126_v32, %v1706_v57  ;;  %v1125_v20 = vpop.f32.mrf.mxu1  ;;  %v1595_v59 = vpop.f32.mrf.mxu2  ;;  %v1255_v57 = vld [vmem:[#allocation2 + $0x2ea] sm:$0xff] }
 0x2ad   :  { %v1126_v10 = vadd.f32 %v1125_v20, %v8075_v41 }
 0x2ae   :  { %v7119_v63 = vadd.f32 %v2660_v54, %v2240_v16  ;;  %5652 = vmatmul.msk.f32.gmra.mxu0 %vm18_vm1, %v2321_v58 }
 0x2af   :  { %5454 = vmatmul.msk.f32.gmra.mxu1 %vm18_vm1, %v1785_v26  ;;  %v1707_v40 = vadd.f32 %v1595_v59, %v1126_v10  ;;  %v190_v26 = vld [vmem:[%s8035_s0 + $0x1f0] sm:$0xff]  ;;  %v1789_v10 = vld [vmem:[#allocation2 + $0x300] sm:$0xff] }
 0x2b0   :  { %5586 = vmatmul.msk.f32.gmra.mxu3 %vm18_vm1, %v1787_v62  ;;  %255 = vst.msk [vmem:[#allocation2 + $0x331] sm:$0xff] %vm18_vm1, %v190_v26  ;;  %v1790_v26 = vld [vmem:[#allocation2 + $0x308] sm:$0xff] }
 0x2b1   :  { %5521 = vmatmul.msk.f32.gmra.mxu2 %vm18_vm1, %v1254_v21  ;;  %v8077_v21 = vld [vmem:[#allocation22_spill] sm:$0xff] }
 0x2b3   :  { %v2129_v28 = vpop.f32.mrf.mxu3  ;;  %v2666_v4 = vpop.f32.mrf.mxu0 }
 0x2b4   :  { %v2241_v0 = vadd.f32 %v2129_v28, %v1707_v40  ;;  %v1128_v11 = vpop.f32.mrf.mxu1  ;;  %v1598_v30 = vpop.f32.mrf.mxu2  ;;  %v1256_v28 = vld [vmem:[#allocation2 + $0x2f2] sm:$0xff] }
 0x2b5   :  { %v1129_v54 = vadd.f32 %v1128_v11, %v8076_v37 }
 0x2b6   :  { %v7126_v9 = vadd.f32 %v2663_v42, %v2241_v0  ;;  %5653 = vmatmul.msk.f32.gmra.mxu0 %vm18_vm1, %v2322_v15  ;;  %v2323_v42 = vld [vmem:[#allocation2 + $0x301] sm:$0xff]  ;;  %v191_v15 = vld [vmem:[%s8035_s0 + $0x1f8] sm:$0xff] }
 0x2b7   :  { %5455 = vmatmul.msk.f32.gmra.mxu1 %vm18_vm1, %v1786_v50  ;;  %v1708_v32 = vadd.f32 %v1598_v30, %v1129_v54  ;;  %256 = vst.msk [vmem:[#allocation2 + $0x339] sm:$0xff] %vm18_vm1, %v191_v15 }
 0x2b8   :  { %5587 = vmatmul.msk.f32.gmra.mxu3 %vm18_vm1, %v1788_v7 }
 0x2b9   :  { %5522 = vmatmul.msk.f32.gmra.mxu2 %vm18_vm1, %v1255_v57 }
 0x2bb   :  { %v2132_v58 = vpop.f32.mrf.mxu3  ;;  %v2669_v16 = vpop.f32.mrf.mxu0 }
 0x2bc   :  { %v2242_v20 = vadd.f32 %v2132_v58, %v1708_v32  ;;  %v1131_v59 = vpop.f32.mrf.mxu1  ;;  %v1601_v41 = vpop.f32.mrf.mxu2  ;;  %v8078_v32 = vld [vmem:[#allocation24_spill] sm:$0xff] }
 0x2bd   :  { %v1132_v50 = vadd.f32 %v1131_v59, %v8077_v21  ;;  %v2325_v21 = vld [vmem:[#allocation2 + $0x319] sm:$0xff] }
 0x2be   :  { %v7137_v40 = vadd.f32 %v2666_v4, %v2242_v20  ;;  %5654 = vmatmul.msk.f32.gmra.mxu0 %vm18_vm1, %v2323_v42  ;;  %v2324_v4 = vld [vmem:[#allocation2 + $0x309] sm:$0xff] }
 0x2bf   :  { %5456 = vmatmul.msk.f32.gmra.mxu1 %vm18_vm1, %v1787_v62  ;;  %v1709_v0 = vadd.f32 %v1601_v41, %v1132_v50  ;;  %v1257_v42 = vld [vmem:[#allocation2 + $0x302] sm:$0xff] }
 0x2c0   :  { %5588 = vmatmul.msk.f32.gmra.mxu3 %vm18_vm1, %v1789_v10 }
 0x2c1   :  { %5523 = vmatmul.msk.f32.gmra.mxu2 %vm18_vm1, %v1256_v28 }
 0x2c3   :  { %v2135_v11 = vpop.f32.mrf.mxu3  ;;  %v2672_v30 = vpop.f32.mrf.mxu0 }
 0x2c4   :  { %v2243_v37 = vadd.f32 %v2135_v11, %v1709_v0  ;;  %v1134_v54 = vpop.f32.mrf.mxu1  ;;  %v1604_v57 = vpop.f32.mrf.mxu2  ;;  %v1791_v0 = vld [vmem:[#allocation2 + $0x318] sm:$0xff]  ;;  %v8079_v11 = vld [vmem:[#allocation26_spill] sm:$0xff] }
 0x2c5   :  { %v1135_v62 = vadd.f32 %v1134_v54, %v8078_v32  ;;  %v1258_v54 = vld [vmem:[#allocation2 + $0x30a] sm:$0xff]  ;;  %v2326_v32 = vld [vmem:[#allocation2 + $0x321] sm:$0xff] }
 0x2c6   :  { %v7148_v58 = vadd.f32 %v2669_v16, %v2243_v37  ;;  %5655 = vmatmul.msk.f32.gmra.mxu0 %vm18_vm1, %v2324_v4 }
 0x2c7   :  { %5457 = vmatmul.msk.f32.gmra.mxu1 %vm18_vm1, %v1788_v7  ;;  %v1710_v20 = vadd.f32 %v1604_v57, %v1135_v62 }
 0x2c8   :  { %5589 = vmatmul.msk.f32.gmra.mxu3 %vm18_vm1, %v1790_v26 }
 0x2c9   :  { %5524 = vmatmul.msk.f32.gmra.mxu2 %vm18_vm1, %v1257_v42 }
 0x2cb   :  { %v2138_v59 = vpop.f32.mrf.mxu3  ;;  %v2675_v41 = vpop.f32.mrf.mxu0 }
 0x2cc   :  { %v2244_v50 = vadd.f32 %v2138_v59, %v1710_v20  ;;  %v1137_v28 = vpop.f32.mrf.mxu1  ;;  %v1607_v15 = vpop.f32.mrf.mxu2  ;;  %v1792_v59 = vld [vmem:[#allocation2 + $0x320] sm:$0xff] }
 0x2cd   :  { %v1138_v16 = vadd.f32 %v1137_v28, %v8079_v11  ;;  %v8081_v28 = vld [vmem:[#allocation28_spill] sm:$0xff] }
 0x2ce   :  { %v7155_v37 = vadd.f32 %v2672_v30, %v2244_v50  ;;  %5656 = vmatmul.msk.f32.gmra.mxu0 %vm18_vm1, %v2325_v21  ;;  %v1259_v11 = vld [vmem:[#allocation2 + $0x31a] sm:$0xff] }
 0x2cf   :  { %5458 = vmatmul.msk.f32.gmra.mxu1 %vm18_vm1, %v1789_v10  ;;  %v1711_v7 = vadd.f32 %v1607_v15, %v1138_v16  ;;  %v2327_v16 = vld [vmem:[#allocation2 + $0x331] sm:$0xff] }
 0x2d0   :  { %8080 = vst [vmem:[#allocation6_spill] sm:$0xff] %v7155_v37  ;;  %5590 = vmatmul.msk.f32.gmra.mxu3 %vm18_vm1, %v1791_v0  ;;  %v1793_v37 = vld [vmem:[#allocation2 + $0x330] sm:$0xff] }
 0x2d1   :  { %5525 = vmatmul.msk.f32.gmra.mxu2 %vm18_vm1, %v1258_v54 }
 0x2d3   :  { %v2141_v4 = vpop.f32.mrf.mxu3  ;;  %v2678_v57 = vpop.f32.mrf.mxu0 }
 0x2d4   :  { %v2245_v62 = vadd.f32 %v2141_v4, %v1711_v7  ;;  %v1140_v42 = vpop.f32.mrf.mxu1  ;;  %v1610_v20 = vpop.f32.mrf.mxu2 }
 0x2d5   :  { %v1141_v30 = vadd.f32 %v1140_v42, %v8081_v28  ;;  %v8083_v42 = vld [vmem:[#allocation30_spill] sm:$0xff]  ;;  %v1260_v28 = vld [vmem:[#allocation2 + $0x322] sm:$0xff] }
 0x2d6   :  { %v7162_v50 = vadd.f32 %v2675_v41, %v2245_v62  ;;  %5657 = vmatmul.msk.f32.gmra.mxu0 %vm18_vm1, %v2326_v32 }
 0x2d7   :  { %5459 = vmatmul.msk.f32.gmra.mxu1 %vm18_vm1, %v1790_v26  ;;  %v1712_v10 = vadd.f32 %v1610_v20, %v1141_v30  ;;  %v2328_v30 = vld [vmem:[#allocation2 + $0x339] sm:$0xff] }
 0x2d8   :  { %8082 = vst [vmem:[#allocation8_spill] sm:$0xff] %v7162_v50  ;;  %5591 = vmatmul.msk.f32.gmra.mxu3 %vm18_vm1, %v1792_v59  ;;  %v1794_v50 = vld [vmem:[#allocation2 + $0x338] sm:$0xff] }
 0x2d9   :  { %5526 = vmatmul.msk.f32.gmra.mxu2 %vm18_vm1, %v1259_v11 }
 0x2db   :  { %v2144_v21 = vpop.f32.mrf.mxu3  ;;  %v2681_v15 = vpop.f32.mrf.mxu0 }
 0x2dc   :  { %v2246_v54 = vadd.f32 %v2144_v21, %v1712_v10  ;;  %v1143_v7 = vpop.f32.mrf.mxu1  ;;  %v1613_v4 = vpop.f32.mrf.mxu2 }
 0x2dd   :  { %v1144_v41 = vadd.f32 %v1143_v7, %v8083_v42  ;;  %v8085_v7 = vld [vmem:[#allocation32_spill] sm:$0xff]  ;;  %v3334_v42 = vld [vmem:[#allocation2 + $0x30] sm:$0xff] }
 0x2de   :  { %v7169_v62 = vadd.f32 %v2678_v57, %v2246_v54  ;;  %5658 = vmatmul.msk.f32.gmra.mxu0 %vm18_vm1, %v2327_v16 }
 0x2df   :  { %5460 = vmatmul.msk.f32.gmra.mxu1 %vm18_vm1, %v1791_v0  ;;  %v1713_v26 = vadd.f32 %v1613_v4, %v1144_v41  ;;  %v4402_v4 = vld [vmem:[#allocation2 + $0x32] sm:$0xff] }
 0x2e0   :  { %8084 = vst [vmem:[#allocation10_spill] sm:$0xff] %v7169_v62  ;;  %5592 = vmatmul.msk.f32.gmra.mxu3 %vm18_vm1, %v1793_v37  ;;  %v3870_v62 = vld [vmem:[#allocation2 + $0x49] sm:$0xff] }
 0x2e1   :  { %5527 = vmatmul.msk.f32.gmra.mxu2 %vm18_vm1, %v1260_v28 }
 0x2e3   :  { %v2147_v32 = vpop.f32.mrf.mxu3  ;;  %v2684_v20 = vpop.f32.mrf.mxu0 }
 0x2e4   :  { %v2247_v11 = vadd.f32 %v2147_v32, %v1713_v26  ;;  %v1146_v10 = vpop.f32.mrf.mxu1  ;;  %v1616_v21 = vpop.f32.mrf.mxu2  ;;  %v2799_v26 = vld [vmem:[#allocation2 + $0x1a] sm:$0xff] }
 0x2e5   :  { %v1147_v57 = vadd.f32 %v1146_v10, %v8085_v7  ;;  %v3868_v10 = vld [vmem:[#allocation2 + $0x31] sm:$0xff] }
 0x2e6   :  { %v7176_v54 = vadd.f32 %v2681_v15, %v2247_v11  ;;  %5659 = vmatmul.msk.f32.gmra.mxu0 %vm18_vm1, %v2328_v30  ;;  %v8087_v15 = vld [vmem:[#allocation4_spill] sm:$0xff]  ;;  %v3335_v30 = vld [vmem:[#allocation2 + $0x38] sm:$0xff] }
 0x2e7   :  { %5461 = vmatmul.msk.f32.gmra.mxu1 %vm18_vm1, %v1792_v59  ;;  %v1714_v0 = vadd.f32 %v1616_v21, %v1147_v57  ;;  %v4403_v57 = vld [vmem:[#allocation2 + $0x3a] sm:$0xff] }
 0x2e8   :  { %8086 = vst [vmem:[#allocation12_spill] sm:$0xff] %v7176_v54  ;;  %5593 = vmatmul.msk.f32.gmra.mxu3 %vm18_vm1, %v1794_v50 }
 0x2e9   :  { %5728 = vmatmul.msk.f32.vlgmr.msra.gmra.mxu2 %vm18_vm1, %v3334_v42 }
 0x2eb   :  { %v2150_v37 = vpop.f32.mrf.mxu3  ;;  %v2687_v16 = vpop.f32.mrf.mxu0 }
 0x2ec   :  { %v2248_v41 = vadd.f32 %v2150_v37, %v1714_v0  ;;  %v1149_v28 = vpop.f32.mrf.mxu1  ;;  %v1619_v32 = vpop.f32.mrf.mxu2  ;;  %v2800_v37 = vld [vmem:[#allocation2 + $0x22] sm:$0xff] }
 0x2ed   :  { %v1150_v11 = vadd.f32 %v1149_v28, %v8087_v15  ;;  %v3869_v28 = vld [vmem:[#allocation2 + $0x39] sm:$0xff] }
 0x2ee   :  { %v7183_v7 = vadd.f32 %v2684_v20, %v2248_v41  ;;  %5860 = vmatmul.msk.f32.vlgmr.msra.gmra.mxu0 %vm18_vm1, %v4402_v4  ;;  %v8089_v20 = vld [vmem:[#allocation5_spill] sm:$0xff] }
 0x2ef   :  { %5662 = vmatmul.msk.f32.vlgmr.msra.gmra.mxu1 %vm18_vm1, %v2799_v26  ;;  %v1715_v59 = vadd.f32 %v1619_v32, %v1150_v11  ;;  %v4404_v11 = vld [vmem:[#allocation2 + $0x4a] sm:$0xff] }
 0x2f0   :  { %8088 = vst [vmem:[#allocation14_spill] sm:$0xff] %v7183_v7  ;;  %5794 = vmatmul.msk.f32.vlgmr.msra.gmra.mxu3 %vm18_vm1, %v3868_v10  ;;  %v3336_v7 = vld [vmem:[#allocation2 + $0x48] sm:$0xff] }
 0x2f1   :  { %5729 = vmatmul.msk.f32.gmra.mxu2 %vm18_vm1, %v3335_v30 }
 0x2f3   :  { %v2153_v50 = vpop.f32.mrf.mxu3  ;;  %v2690_v21 = vpop.f32.mrf.mxu0 }
 0x2f4   :  { %v2249_v42 = vadd.f32 %v2153_v50, %v1715_v59  ;;  %v1152_v0 = vpop.f32.mrf.mxu1  ;;  %v1622_v54 = vpop.f32.mrf.mxu2 }
 0x2f5   :  { %v1153_v41 = vadd.f32 %v1152_v0, %v8089_v20  ;;  %v8091_v0 = vld [vmem:[#allocation7_spill] sm:$0xff]  ;;  %v3337_v20 = vld [vmem:[#allocation2 + $0x50] sm:$0xff] }
 0x2f6   :  { %v7190_v15 = vadd.f32 %v2687_v16, %v2249_v42  ;;  %5861 = vmatmul.msk.f32.gmra.mxu0 %vm18_vm1, %v4403_v57 }
 0x2f7   :  { %5663 = vmatmul.msk.f32.gmra.mxu1 %vm18_vm1, %v2800_v37  ;;  %v1716_v26 = vadd.f32 %v1622_v54, %v1153_v41 }
 0x2f8   :  { %8090 = vst [vmem:[#allocation16_spill] sm:$0xff] %v7190_v15  ;;  %5795 = vmatmul.msk.f32.gmra.mxu3 %vm18_vm1, %v3869_v28  ;;  %v4405_v28 = vld [vmem:[#allocation2 + $0x52] sm:$0xff] }
 0x2f9   :  { %5730 = vmatmul.msk.f32.gmra.mxu2 %vm18_vm1, %v3336_v7  ;;  %v3871_v15 = vld [vmem:[#allocation2 + $0x51] sm:$0xff] }
 0x2fb   :  { %v2156_v32 = vpop.f32.mrf.mxu3  ;;  %v2693_v10 = vpop.f32.mrf.mxu0 }
 0x2fc   :  { %v2250_v30 = vadd.f32 %v2156_v32, %v1716_v26  ;;  %v1155_v59 = vpop.f32.mrf.mxu1  ;;  %v1625_v50 = vpop.f32.mrf.mxu2 }
 0x2fd   :  { %v1156_v16 = vadd.f32 %v1155_v59, %v8091_v0  ;;  %v8093_v59 = vld [vmem:[#allocation9_spill] sm:$0xff]  ;;  %v3338_v0 = vld [vmem:[#allocation2 + $0x60] sm:$0xff] }
 0x2fe   :  { %v7197_v42 = vadd.f32 %v2690_v21, %v2250_v30  ;;  %5862 = vmatmul.msk.f32.gmra.mxu0 %vm18_vm1, %v4404_v11 }
 0x2ff   :  { %5664 = vmatmul.msk.f32.gmra.mxu1 %vm18_vm1, %v4402_v4  ;;  %v1717_v54 = vadd.f32 %v1625_v50, %v1156_v16  ;;  %v4406_v16 = vld [vmem:[#allocation2 + $0x62] sm:$0xff] }
 0x300   :  { %8092 = vst [vmem:[#allocation18_spill] sm:$0xff] %v7197_v42  ;;  %5796 = vmatmul.msk.f32.gmra.mxu3 %vm18_vm1, %v3870_v62  ;;  %v3872_v42 = vld [vmem:[#allocation2 + $0x61] sm:$0xff] }
 0x301   :  { %5731 = vmatmul.msk.f32.gmra.mxu2 %vm18_vm1, %v3337_v20 }
 0x303   :  { %v2159_v7 = vpop.f32.mrf.mxu3  ;;  %v2696_v37 = vpop.f32.mrf.mxu0 }
 0x304   :  { %v2251_v41 = vadd.f32 %v2159_v7, %v1717_v54  ;;  %v1158_v26 = vpop.f32.mrf.mxu1  ;;  %v1628_v32 = vpop.f32.mrf.mxu2 }
 0x305   :  { %v1159_v21 = vadd.f32 %v1158_v26, %v8093_v59  ;;  %v8095_v26 = vld [vmem:[#allocation11_spill] sm:$0xff]  ;;  %v3339_v59 = vld [vmem:[#allocation2 + $0x68] sm:$0xff] }
 0x306   :  { %v7204_v30 = vadd.f32 %v2693_v10, %v2251_v41  ;;  %5863 = vmatmul.msk.f32.gmra.mxu0 %vm18_vm1, %v4405_v28 }
 0x307   :  { %5665 = vmatmul.msk.f32.gmra.mxu1 %vm18_vm1, %v4403_v57  ;;  %v1718_v62 = vadd.f32 %v1628_v32, %v1159_v21  ;;  %v4407_v21 = vld [vmem:[#allocation2 + $0x6a] sm:$0xff] }
 0x308   :  { %8094 = vst [vmem:[#allocation20_spill] sm:$0xff] %v7204_v30  ;;  %5797 = vmatmul.msk.f32.gmra.mxu3 %vm18_vm1, %v3871_v15  ;;  %v3873_v30 = vld [vmem:[#allocation2 + $0x69] sm:$0xff] }
 0x309   :  { %5732 = vmatmul.msk.f32.gmra.mxu2 %vm18_vm1, %v3338_v0 }
 0x30b   :  { %v2162_v4 = vpop.f32.mrf.mxu3  ;;  %v2699_v50 = vpop.f32.mrf.mxu0 }
 0x30c   :  { %v2252_v20 = vadd.f32 %v2162_v4, %v1718_v62  ;;  %v1161_v54 = vpop.f32.mrf.mxu1  ;;  %v1631_v7 = vpop.f32.mrf.mxu2 }
 0x30d   :  { %v1162_v10 = vadd.f32 %v1161_v54, %v8095_v26  ;;  %v8097_v54 = vld [vmem:[#allocation13_spill] sm:$0xff]  ;;  %v3340_v26 = vld [vmem:[#allocation2 + $0x78] sm:$0xff] }
 0x30e   :  { %v7211_v41 = vadd.f32 %v2696_v37, %v2252_v20  ;;  %5864 = vmatmul.msk.f32.gmra.mxu0 %vm18_vm1, %v4406_v16 }
 0x30f   :  { %5666 = vmatmul.msk.f32.gmra.mxu1 %vm18_vm1, %v4404_v11  ;;  %v1719_v57 = vadd.f32 %v1631_v7, %v1162_v10  ;;  %v4408_v10 = vld [vmem:[#allocation2 + $0x7a] sm:$0xff] }
 0x310   :  { %8096 = vst [vmem:[#allocation22_spill] sm:$0xff] %v7211_v41  ;;  %5798 = vmatmul.msk.f32.gmra.mxu3 %vm18_vm1, %v3872_v42  ;;  %v3874_v41 = vld [vmem:[#allocation2 + $0x79] sm:$0xff] }
 0x311   :  { %5733 = vmatmul.msk.f32.gmra.mxu2 %vm18_vm1, %v3339_v59 }
 0x313   :  { %v2165_v15 = vpop.f32.mrf.mxu3  ;;  %v2702_v32 = vpop.f32.mrf.mxu0 }
 0x314   :  { %v2253_v0 = vadd.f32 %v2165_v15, %v1719_v57  ;;  %v1164_v62 = vpop.f32.mrf.mxu1  ;;  %v1634_v4 = vpop.f32.mrf.mxu2 }
 0x315   :  { %v1165_v37 = vadd.f32 %v1164_v62, %v8097_v54  ;;  %v8099_v62 = vld [vmem:[#allocation15_spill] sm:$0xff]  ;;  %v3341_v54 = vld [vmem:[#allocation2 + $0x80] sm:$0xff] }
 0x316   :  { %v7218_v20 = vadd.f32 %v2699_v50, %v2253_v0  ;;  %5865 = vmatmul.msk.f32.gmra.mxu0 %vm18_vm1, %v4407_v21 }
 0x317   :  { %5667 = vmatmul.msk.f32.gmra.mxu1 %vm18_vm1, %v4405_v28  ;;  %v1720_v11 = vadd.f32 %v1634_v4, %v1165_v37  ;;  %v4409_v37 = vld [vmem:[#allocation2 + $0x82] sm:$0xff] }
 0x318   :  { %8098 = vst [vmem:[#allocation24_spill] sm:$0xff] %v7218_v20  ;;  %5799 = vmatmul.msk.f32.gmra.mxu3 %vm18_vm1, %v3873_v30  ;;  %v3875_v20 = vld [vmem:[#allocation2 + $0x81] sm:$0xff] }
 0x319   :  { %5734 = vmatmul.msk.f32.gmra.mxu2 %vm18_vm1, %v3340_v26 }
 0x31b   :  { %v2168_v42 = vpop.f32.mrf.mxu3  ;;  %v2705_v7 = vpop.f32.mrf.mxu0 }
 0x31c   :  { %v2254_v59 = vadd.f32 %v2168_v42, %v1720_v11  ;;  %v1167_v57 = vpop.f32.mrf.mxu1  ;;  %v1637_v15 = vpop.f32.mrf.mxu2 }
 0x31d   :  { %v1168_v50 = vadd.f32 %v1167_v57, %v8099_v62  ;;  %v8101_v57 = vld [vmem:[#allocation17_spill] sm:$0xff]  ;;  %v3342_v62 = vld [vmem:[#allocation2 + $0x90] sm:$0xff] }
 0x31e   :  { %v7225_v0 = vadd.f32 %v2702_v32, %v2254_v59  ;;  %5866 = vmatmul.msk.f32.gmra.mxu0 %vm18_vm1, %v4408_v10 }
 0x31f   :  { %5668 = vmatmul.msk.f32.gmra.mxu1 %vm18_vm1, %v4406_v16  ;;  %v1721_v28 = vadd.f32 %v1637_v15, %v1168_v50  ;;  %v4410_v50 = vld [vmem:[#allocation2 + $0x92] sm:$0xff] }
 0x320   :  { %8100 = vst [vmem:[#allocation26_spill] sm:$0xff] %v7225_v0  ;;  %5800 = vmatmul.msk.f32.gmra.mxu3 %vm18_vm1, %v3874_v41  ;;  %v3876_v0 = vld [vmem:[#allocation2 + $0x91] sm:$0xff] }
 0x321   :  { %5735 = vmatmul.msk.f32.gmra.mxu2 %vm18_vm1, %v3341_v54 }
 0x323   :  { %v2171_v30 = vpop.f32.mrf.mxu3  ;;  %v2708_v4 = vpop.f32.mrf.mxu0 }
 0x324   :  { %v2255_v26 = vadd.f32 %v2171_v30, %v1721_v28  ;;  %v1170_v11 = vpop.f32.mrf.mxu1  ;;  %v1640_v42 = vpop.f32.mrf.mxu2 }
 0x325   :  { %v1171_v32 = vadd.f32 %v1170_v11, %v8101_v57  ;;  %v8103_v11 = vld [vmem:[#allocation19_spill] sm:$0xff] }
 0x326   :  { %v7232_v59 = vadd.f32 %v2705_v7, %v2255_v26  ;;  %5867 = vmatmul.msk.f32.gmra.mxu0 %vm18_vm1, %v4409_v37  ;;  %v3343_v57 = vld [vmem:[#allocation2 + $0x98] sm:$0xff] }
 0x327   :  { %5669 = vmatmul.msk.f32.gmra.mxu1 %vm18_vm1, %v4407_v21  ;;  %v1722_v16 = vadd.f32 %v1640_v42, %v1171_v32  ;;  %v4411_v32 = vld [vmem:[#allocation2 + $0x9a] sm:$0xff] }
 0x328   :  { %8102 = vst [vmem:[#allocation28_spill] sm:$0xff] %v7232_v59  ;;  %5801 = vmatmul.msk.f32.gmra.mxu3 %vm18_vm1, %v3875_v20  ;;  %v3877_v59 = vld [vmem:[#allocation2 + $0x99] sm:$0xff] }
 0x329   :  { %5736 = vmatmul.msk.f32.gmra.mxu2 %vm18_vm1, %v3342_v62 }
 0x32b   :  { %v2174_v41 = vpop.f32.mrf.mxu3  ;;  %v2711_v15 = vpop.f32.mrf.mxu0 }
 0x32c   :  { %v2256_v54 = vadd.f32 %v2174_v41, %v1722_v16  ;;  %v1173_v28 = vpop.f32.mrf.mxu1  ;;  %v1643_v30 = vpop.f32.mrf.mxu2 }
 0x32d   :  { %v1174_v7 = vadd.f32 %v1173_v28, %v8103_v11  ;;  %v8105_v28 = vld [vmem:[#allocation21_spill] sm:$0xff] }
 0x32e   :  { %v7239_v26 = vadd.f32 %v2708_v4, %v2256_v54  ;;  %5868 = vmatmul.msk.f32.gmra.mxu0 %vm18_vm1, %v4410_v50  ;;  %v3344_v11 = vld [vmem:[#allocation2 + $0xa8] sm:$0xff] }
 0x32f   :  { %5670 = vmatmul.msk.f32.gmra.mxu1 %vm18_vm1, %v4408_v10  ;;  %v1723_v21 = vadd.f32 %v1643_v30, %v1174_v7  ;;  %v4412_v7 = vld [vmem:[#allocation2 + $0xaa] sm:$0xff] }
 0x330   :  { %8104 = vst [vmem:[#allocation30_spill] sm:$0xff] %v7239_v26  ;;  %5802 = vmatmul.msk.f32.gmra.mxu3 %vm18_vm1, %v3876_v0  ;;  %v3878_v26 = vld [vmem:[#allocation2 + $0xa9] sm:$0xff] }
 0x331   :  { %5737 = vmatmul.msk.f32.gmra.mxu2 %vm18_vm1, %v3343_v57 }
 0x333   :  { %v2177_v20 = vpop.f32.mrf.mxu3  ;;  %v2714_v42 = vpop.f32.mrf.mxu0 }
 0x334   :  { %v2257_v62 = vadd.f32 %v2177_v20, %v1723_v21  ;;  %v1176_v16 = vpop.f32.mrf.mxu1  ;;  %v1646_v41 = vpop.f32.mrf.mxu2 }
 0x335   :  { %v1177_v4 = vadd.f32 %v1176_v16, %v8105_v28  ;;  %v8107_v16 = vld [vmem:[#allocation23_spill] sm:$0xff]  ;;  %v3345_v28 = vld [vmem:[#allocation2 + $0xb0] sm:$0xff] }
 0x336   :  { %v7246_v54 = vadd.f32 %v2711_v15, %v2257_v62  ;;  %5869 = vmatmul.msk.f32.gmra.mxu0 %vm18_vm1, %v4411_v32 }
 0x337   :  { %5671 = vmatmul.msk.f32.gmra.mxu1 %vm18_vm1, %v4409_v37  ;;  %v1724_v10 = vadd.f32 %v1646_v41, %v1177_v4  ;;  %v4413_v4 = vld [vmem:[#allocation2 + $0xb2] sm:$0xff] }
 0x338   :  { %8106 = vst [vmem:[#allocation32_spill] sm:$0xff] %v7246_v54  ;;  %5803 = vmatmul.msk.f32.gmra.mxu3 %vm18_vm1, %v3877_v59  ;;  %v3879_v54 = vld [vmem:[#allocation2 + $0xb1] sm:$0xff] }
 0x339   :  { %5738 = vmatmul.msk.f32.gmra.mxu2 %vm18_vm1, %v3344_v11 }
 0x33b   :  { %v2180_v0 = vpop.f32.mrf.mxu3  ;;  %v2717_v30 = vpop.f32.mrf.mxu0 }
 0x33c   :  { %v2258_v57 = vadd.f32 %v2180_v0, %v1724_v10  ;;  %v1179_v21 = vpop.f32.mrf.mxu1  ;;  %v1649_v20 = vpop.f32.mrf.mxu2 }
 0x33d   :  { %v1180_v15 = vadd.f32 %v1179_v21, %v8107_v16  ;;  %v8109_v21 = vld [vmem:[#allocation25_spill] sm:$0xff]  ;;  %v3346_v16 = vld [vmem:[#allocation2 + $0xc0] sm:$0xff] }
 0x33e   :  { %v7253_v62 = vadd.f32 %v2714_v42, %v2258_v57  ;;  %5870 = vmatmul.msk.f32.gmra.mxu0 %vm18_vm1, %v4412_v7 }
 0x33f   :  { %5672 = vmatmul.msk.f32.gmra.mxu1 %vm18_vm1, %v4410_v50  ;;  %v1725_v37 = vadd.f32 %v1649_v20, %v1180_v15  ;;  %v4414_v15 = vld [vmem:[#allocation2 + $0xc2] sm:$0xff] }
 0x340   :  { %8108 = vst [vmem:[#allocation4_spill] sm:$0xff] %v7253_v62  ;;  %5804 = vmatmul.msk.f32.gmra.mxu3 %vm18_vm1, %v3878_v26  ;;  %v3880_v62 = vld [vmem:[#allocation2 + $0xc1] sm:$0xff] }
 0x341   :  { %5739 = vmatmul.msk.f32.gmra.mxu2 %vm18_vm1, %v3345_v28 }
 0x343   :  { %v2183_v59 = vpop.f32.mrf.mxu3  ;;  %v2720_v41 = vpop.f32.mrf.mxu0 }
 0x344   :  { %v2259_v11 = vadd.f32 %v2183_v59, %v1725_v37  ;;  %v1182_v10 = vpop.f32.mrf.mxu1  ;;  %v1652_v0 = vpop.f32.mrf.mxu2 }
 0x345   :  { %v1183_v42 = vadd.f32 %v1182_v10, %v8109_v21  ;;  %v8111_v10 = vld [vmem:[#allocation27_spill] sm:$0xff]  ;;  %v3347_v21 = vld [vmem:[#allocation2 + $0xc8] sm:$0xff] }
 0x346   :  { %v7260_v57 = vadd.f32 %v2717_v30, %v2259_v11  ;;  %5871 = vmatmul.msk.f32.gmra.mxu0 %vm18_vm1, %v4413_v4 }
 0x347   :  { %5673 = vmatmul.msk.f32.gmra.mxu1 %vm18_vm1, %v4411_v32  ;;  %v1726_v50 = vadd.f32 %v1652_v0, %v1183_v42  ;;  %v4415_v42 = vld [vmem:[#allocation2 + $0xca] sm:$0xff] }
 0x348   :  { %8110 = vst [vmem:[#allocation5_spill] sm:$0xff] %v7260_v57  ;;  %5805 = vmatmul.msk.f32.gmra.mxu3 %vm18_vm1, %v3879_v54  ;;  %v3881_v57 = vld [vmem:[#allocation2 + $0xc9] sm:$0xff] }
 0x349   :  { %5740 = vmatmul.msk.f32.gmra.mxu2 %vm18_vm1, %v3346_v16 }
 0x34b   :  { %v2186_v26 = vpop.f32.mrf.mxu3  ;;  %v2723_v20 = vpop.f32.mrf.mxu0 }
 0x34c   :  { %v2260_v28 = vadd.f32 %v2186_v26, %v1726_v50  ;;  %v1185_v37 = vpop.f32.mrf.mxu1  ;;  %v1655_v59 = vpop.f32.mrf.mxu2 }
 0x34d   :  { %v1186_v30 = vadd.f32 %v1185_v37, %v8111_v10  ;;  %v8113_v37 = vld [vmem:[#allocation29_spill] sm:$0xff]  ;;  %v3348_v10 = vld [vmem:[#allocation2 + $0xd8] sm:$0xff] }
 0x34e   :  { %v7267_v11 = vadd.f32 %v2720_v41, %v2260_v28  ;;  %5872 = vmatmul.msk.f32.gmra.mxu0 %vm18_vm1, %v4414_v15 }
 0x34f   :  { %5674 = vmatmul.msk.f32.gmra.mxu1 %vm18_vm1, %v4412_v7  ;;  %v1727_v32 = vadd.f32 %v1655_v59, %v1186_v30  ;;  %v4416_v30 = vld [vmem:[#allocation2 + $0xda] sm:$0xff] }
 0x350   :  { %8112 = vst [vmem:[#allocation7_spill] sm:$0xff] %v7267_v11  ;;  %5806 = vmatmul.msk.f32.gmra.mxu3 %vm18_vm1, %v3880_v62  ;;  %v3882_v11 = vld [vmem:[#allocation2 + $0xd9] sm:$0xff] }
 0x351   :  { %5741 = vmatmul.msk.f32.gmra.mxu2 %vm18_vm1, %v3347_v21 }
 0x353   :  { %v2189_v54 = vpop.f32.mrf.mxu3  ;;  %v2726_v0 = vpop.f32.mrf.mxu0 }
 0x354   :  { %v2261_v16 = vadd.f32 %v2189_v54, %v1727_v32  ;;  %v1188_v50 = vpop.f32.mrf.mxu1  ;;  %v1658_v26 = vpop.f32.mrf.mxu2 }
 0x355   :  { %v1189_v41 = vadd.f32 %v1188_v50, %v8113_v37  ;;  %v8115_v50 = vld [vmem:[#allocation31_spill] sm:$0xff]  ;;  %v3349_v37 = vld [vmem:[#allocation2 + $0xe0] sm:$0xff] }
 0x356   :  { %v7274_v28 = vadd.f32 %v2723_v20, %v2261_v16  ;;  %5873 = vmatmul.msk.f32.gmra.mxu0 %vm18_vm1, %v4415_v42 }
 0x357   :  { %5675 = vmatmul.msk.f32.gmra.mxu1 %vm18_vm1, %v4413_v4  ;;  %v1728_v7 = vadd.f32 %v1658_v26, %v1189_v41  ;;  %v4417_v41 = vld [vmem:[#allocation2 + $0xe2] sm:$0xff] }
 0x358   :  { %8114 = vst [vmem:[#allocation9_spill] sm:$0xff] %v7274_v28  ;;  %5807 = vmatmul.msk.f32.gmra.mxu3 %vm18_vm1, %v3881_v57  ;;  %v3883_v28 = vld [vmem:[#allocation2 + $0xe1] sm:$0xff] }
 0x359   :  { %5742 = vmatmul.msk.f32.gmra.mxu2 %vm18_vm1, %v3348_v10 }
 0x35b   :  { %v2192_v62 = vpop.f32.mrf.mxu3  ;;  %v2729_v59 = vpop.f32.mrf.mxu0 }
 0x35c   :  { %v2262_v21 = vadd.f32 %v2192_v62, %v1728_v7  ;;  %v1191_v32 = vpop.f32.mrf.mxu1  ;;  %v1661_v54 = vpop.f32.mrf.mxu2 }
 0x35d   :  { %v1192_v20 = vadd.f32 %v1191_v32, %v8115_v50  ;;  %v8117_v32 = vld [vmem:[#allocation33_spill] sm:$0xff]  ;;  %v3350_v50 = vld [vmem:[#allocation2 + $0xf0] sm:$0xff] }
 0x35e   :  { %v7281_v16 = vadd.f32 %v2726_v0, %v2262_v21  ;;  %5874 = vmatmul.msk.f32.gmra.mxu0 %vm18_vm1, %v4416_v30 }
 0x35f   :  { %5676 = vmatmul.msk.f32.gmra.mxu1 %vm18_vm1, %v4414_v15  ;;  %v1729_v4 = vadd.f32 %v1661_v54, %v1192_v20  ;;  %v4418_v20 = vld [vmem:[#allocation2 + $0xf2] sm:$0xff] }
 0x360   :  { %8116 = vst [vmem:[#allocation11_spill] sm:$0xff] %v7281_v16  ;;  %5808 = vmatmul.msk.f32.gmra.mxu3 %vm18_vm1, %v3882_v11  ;;  %v3884_v16 = vld [vmem:[#allocation2 + $0xf1] sm:$0xff] }
 0x361   :  { %5743 = vmatmul.msk.f32.gmra.mxu2 %vm18_vm1, %v3349_v37 }
 0x363   :  { %v2195_v57 = vpop.f32.mrf.mxu3  ;;  %v2732_v26 = vpop.f32.mrf.mxu0 }
 0x364   :  { %v2263_v10 = vadd.f32 %v2195_v57, %v1729_v4  ;;  %v1194_v7 = vpop.f32.mrf.mxu1  ;;  %v1664_v62 = vpop.f32.mrf.mxu2 }
 0x365   :  { %v1195_v0 = vadd.f32 %v1194_v7, %v8117_v32  ;;  %v3351_v7 = vld [vmem:[#allocation2 + $0xf8] sm:$0xff] }
 0x366   :  { %v7288_v21 = vadd.f32 %v2729_v59, %v2263_v10  ;;  %5875 = vmatmul.msk.f32.gmra.mxu0 %vm18_vm1, %v4417_v41  ;;  %v4419_v32 = vld [vmem:[#allocation2 + $0xfa] sm:$0xff] }
 0x367   :  { %5677 = vmatmul.msk.f32.gmra.mxu1 %vm18_vm1, %v4415_v42  ;;  %v1730_v15 = vadd.f32 %v1664_v62, %v1195_v0 }
 0x368   :  { %8118 = vst [vmem:[#allocation13_spill] sm:$0xff] %v7288_v21  ;;  %5809 = vmatmul.msk.f32.gmra.mxu3 %vm18_vm1, %v3883_v28 }
 0x369   :  { %5744 = vmatmul.msk.f32.gmra.mxu2 %vm18_vm1, %v3350_v50 }
 0x36b   :  { %v2198_v11 = vpop.f32.mrf.mxu3  ;;  %v4680_v54 = vpop.f32.mrf.mxu0 }
 0x36c   :  { %v2264_v37 = vadd.f32 %v2198_v11, %v1730_v15  ;;  %v3077_v4 = vpop.f32.mrf.mxu1  ;;  %v3612_v57 = vpop.f32.mrf.mxu2  ;;  %v3885_v15 = vld [vmem:[#allocation2 + $0xf9] sm:$0xff] }
 0x36d   :  { %v3269_v59 = vadd.f32 %v3077_v4, %v6825_v22  ;;  %v7304_v22 = vld [vmem:[%s8036_s2] ss:$0 sm:$0xff] }
 0x36e   :  { %v7295_v10 = vadd.f32 %v2732_v26, %v2264_v37  ;;  %5876 = vmatmul.msk.f32.gmra.mxu0 %vm18_vm1, %v4418_v20  ;;  %v3352_v37 = vld [vmem:[#allocation2 + $0x108] sm:$0xff] }
 0x36f   :  { %5678 = vmatmul.msk.f32.gmra.mxu1 %vm18_vm1, %v4416_v30  ;;  %v3804_v42 = vadd.f32 %v3612_v57, %v3269_v59 }
 0x370   :  { %8119 = vst [vmem:[#allocation15_spill] sm:$0xff] %v7295_v10  ;;  %5810 = vmatmul.msk.f32.gmra.mxu3 %vm18_vm1, %v3884_v16  ;;  %v7310_v16 = vld [vmem:[%s8036_s2 + $0x1] ss:$0 sm:$0xff]  ;;  %v3353_v10 = vld [vmem:[#allocation2 + $0x110] sm:$0xff] }
 0x371   :  { %5745 = vmatmul.msk.f32.gmra.mxu2 %vm18_vm1, %v3351_v7 }
 0x373   :  { %v4146_v28 = vpop.f32.mrf.mxu3  ;;  %v4683_v62 = vpop.f32.mrf.mxu0 }
 0x374   :  { %v4338_v0 = vadd.f32 %v4146_v28, %v3804_v42  ;;  %v3080_v50 = vpop.f32.mrf.mxu1  ;;  %v3615_v26 = vpop.f32.mrf.mxu2  ;;  %v4420_v42 = vld [vmem:[#allocation2 + $0x10a] sm:$0xff] }
 0x375   :  { %v3270_v11 = vadd.f32 %v3080_v50, %v6833_v14  ;;  %v7319_v14 = vstv %s8037_s3 }
 0x376   :  { %v4872_v30 = vadd.f32 %v4680_v54, %v4338_v0  ;;  %5877 = vmatmul.msk.f32.gmra.mxu0 %vm18_vm1, %v4419_v32 }
 0x377   :  { %5679 = vmatmul.msk.f32.gmra.mxu1 %vm18_vm1, %v4417_v41  ;;  %v3805_v57 = vadd.f32 %v3615_v26, %v3270_v11  ;;  %v3886_v26 = vld [vmem:[#allocation2 + $0x109] sm:$0xff] }
 0x378   :  { %v4939_v4 = vmul.f32 %v7304_v22, %v4872_v30  ;;  %5811 = vmatmul.msk.f32.gmra.mxu3 %vm18_vm1, %v3885_v15 }
 0x379   :  { %5746 = vmatmul.msk.f32.gmra.mxu2 %vm18_vm1, %v3352_v37 }
 0x37a   :  { %v5004_v54 = vadd.f32 %v7310_v16, %v4939_v4 }
 0x37b   :  { %v4149_v59 = vpop.f32.mrf.mxu3  ;;  %v4686_v7 = vpop.f32.mrf.mxu0 }
 0x37c   :  { %vm5069_vm3 = vcmp.ge.f32.partialorder %v5004_v54, 0.0  ;;  %v5134_v41 = vmul.f32 %v7319_v14, %v5004_v54  ;;  %v4339_v28 = vadd.f32 %v4149_v59, %v3805_v57  ;;  %v3083_v0 = vpop.f32.mrf.mxu1  ;;  %v3618_v50 = vpop.f32.mrf.mxu2 }
 0x37d   :  { %v3271_v11 = vadd.f32 %v3083_v0, %v6841_v52 }
 0x37e   :  { %v5198_v15 = vsel %vm5069_vm3, %v5004_v54, %v5134_v41  ;;  %v4873_v30 = vadd.f32 %v4683_v62, %v4339_v28  ;;  %5878 = vmatmul.msk.f32.gmra.mxu0 %vm18_vm1, %v4420_v42  ;;  %v4421_v54 = vld [vmem:[#allocation2 + $0x112] sm:$0xff] }
 0x37f   :  { %5263 = vst.msk [vmem:[%s8038_s4] sm:$0xff] %vm5262_vm4, %v5198_v15  ;;  %5680 = vmatmul.msk.f32.gmra.mxu1 %vm18_vm1, %v4418_v20  ;;  %v3806_v4 = vadd.f32 %v3618_v50, %v3271_v11  ;;  %v3887_v15 = vld [vmem:[#allocation2 + $0x111] sm:$0xff] }
 0x380   :  { %v4940_v37 = vmul.f32 %v7304_v22, %v4873_v30  ;;  %5812 = vmatmul.msk.f32.gmra.mxu3 %vm18_vm1, %v3886_v26  ;;  %v3354_v26 = vld [vmem:[#allocation2 + $0x120] sm:$0xff] }
 0x381   :  { %5747 = vmatmul.msk.f32.gmra.mxu2 %vm18_vm1, %v3353_v10 }
 0x382   :  { %v5005_v52 = vadd.f32 %v7310_v16, %v4940_v37  ;;  %v4422_v37 = vld [vmem:[#allocation2 + $0x122] sm:$0xff] }
 0x383   :  { %v4152_v62 = vpop.f32.mrf.mxu3  ;;  %v4689_v57 = vpop.f32.mrf.mxu0 }
 0x384   :  { %vm5070_vm5 = vcmp.ge.f32.partialorder %v5005_v52, 0.0  ;;  %v5135_v59 = vmul.f32 %v7319_v14, %v5005_v52  ;;  %v4340_v41 = vadd.f32 %v4152_v62, %v3806_v4  ;;  %v3086_v28 = vpop.f32.mrf.mxu1  ;;  %v3621_v0 = vpop.f32.mrf.mxu2 }
 0x385   :  { %v3272_v30 = vadd.f32 %v3086_v28, %v6849_v60 }
 0x386   :  { %v5199_v20 = vsel %vm5070_vm5, %v5005_v52, %v5135_v59  ;;  %v4874_v21 = vadd.f32 %v4686_v7, %v4340_v41  ;;  %5879 = vmatmul.msk.f32.gmra.mxu0 %vm18_vm1, %v4421_v54  ;;  %v3888_v41 = vld [vmem:[#allocation2 + $0x121] sm:$0xff] }
 0x387   :  { %5264 = vst.msk [vmem:[%s8038_s4 + $0x8] sm:$0xff] %vm5262_vm4, %v5199_v20  ;;  %5681 = vmatmul.msk.f32.gmra.mxu1 %vm18_vm1, %v4419_v32  ;;  %v3807_v50 = vadd.f32 %v3621_v0, %v3272_v30 }
 0x388   :  { %v4941_v10 = vmul.f32 %v7304_v22, %v4874_v21  ;;  %5813 = vmatmul.msk.f32.gmra.mxu3 %vm18_vm1, %v3887_v15  ;;  %v3355_v15 = vld [vmem:[#allocation2 + $0x128] sm:$0xff] }
 0x389   :  { %5748 = vmatmul.msk.f32.gmra.mxu2 %vm18_vm1, %v3354_v26  ;;  %v4423_v26 = vld [vmem:[#allocation2 + $0x12a] sm:$0xff] }
 0x38a   :  { %v5006_v60 = vadd.f32 %v7310_v16, %v4941_v10 }
 0x38b   :  { %v4155_v7 = vpop.f32.mrf.mxu3  ;;  %v4692_v11 = vpop.f32.mrf.mxu0 }
 0x38c   :  { %vm5071_vm6 = vcmp.ge.f32.partialorder %v5006_v60, 0.0  ;;  %v5136_v4 = vmul.f32 %v7319_v14, %v5006_v60  ;;  %v4341_v52 = vadd.f32 %v4155_v7, %v3807_v50  ;;  %v3089_v62 = vpop.f32.mrf.mxu1  ;;  %v3624_v59 = vpop.f32.mrf.mxu2 }
 0x38d   :  { %v3273_v21 = vadd.f32 %v3089_v62, %v6857_v2 }
 0x38e   :  { %v5200_v32 = vsel %vm5071_vm6, %v5006_v60, %v5136_v4  ;;  %v4875_v28 = vadd.f32 %v4689_v57, %v4341_v52  ;;  %5880 = vmatmul.msk.f32.gmra.mxu0 %vm18_vm1, %v4422_v37  ;;  %v3889_v4 = vld [vmem:[#allocation2 + $0x129] sm:$0xff] }
 0x38f   :  { %5265 = vst.msk [vmem:[%s8038_s4 + $0x10] sm:$0xff] %vm5262_vm4, %v5200_v32  ;;  %5682 = vmatmul.msk.f32.gmra.mxu1 %vm18_vm1, %v4420_v42  ;;  %v3808_v20 = vadd.f32 %v3624_v59, %v3273_v21 }
 0x390   :  { %v4942_v0 = vmul.f32 %v7304_v22, %v4875_v28  ;;  %5814 = vmatmul.msk.f32.gmra.mxu3 %vm18_vm1, %v3888_v41  ;;  %v3356_v41 = vld [vmem:[#allocation2 + $0x138] sm:$0xff] }
 0x391   :  { %5749 = vmatmul.msk.f32.gmra.mxu2 %vm18_vm1, %v3355_v15  ;;  %v4424_v28 = vld [vmem:[#allocation2 + $0x13a] sm:$0xff] }
 0x392   :  { %v5007_v2 = vadd.f32 %v7310_v16, %v4942_v0 }
 0x393   :  { %v4158_v57 = vpop.f32.mrf.mxu3  ;;  %v4695_v30 = vpop.f32.mrf.mxu0 }
 0x394   :  { %vm5072_vm7 = vcmp.ge.f32.partialorder %v5007_v2, 0.0  ;;  %v5137_v10 = vmul.f32 %v7319_v14, %v5007_v2  ;;  %v4342_v50 = vadd.f32 %v4158_v57, %v3808_v20  ;;  %v3092_v60 = vpop.f32.mrf.mxu1  ;;  %v3627_v7 = vpop.f32.mrf.mxu2  ;;  %v3890_v57 = vld [vmem:[#allocation2 + $0x139] sm:$0xff] }
 0x395   :  { %v3274_v52 = vadd.f32 %v3092_v60, %v6865_v12  ;;  %v3357_v60 = vld [vmem:[#allocation2 + $0x140] sm:$0xff] }
 0x396   :  { %v5201_v42 = vsel %vm5072_vm7, %v5007_v2, %v5137_v10  ;;  %v4876_v62 = vadd.f32 %v4692_v11, %v4342_v50  ;;  %5881 = vmatmul.msk.f32.gmra.mxu0 %vm18_vm1, %v4423_v26 }
 0x397   :  { %5266 = vst.msk [vmem:[%s8038_s4 + $0x18] sm:$0xff] %vm5262_vm4, %v5201_v42  ;;  %5683 = vmatmul.msk.f32.gmra.mxu1 %vm18_vm1, %v4421_v54  ;;  %v3809_v32 = vadd.f32 %v3627_v7, %v3274_v52  ;;  %v4425_v52 = vld [vmem:[#allocation2 + $0x142] sm:$0xff] }
 0x398   :  { %v4943_v59 = vmul.f32 %v7304_v22, %v4876_v62  ;;  %5815 = vmatmul.msk.f32.gmra.mxu3 %vm18_vm1, %v3889_v4 }
 0x399   :  { %5750 = vmatmul.msk.f32.gmra.mxu2 %vm18_vm1, %v3356_v41 }
 0x39a   :  { %v5008_v12 = vadd.f32 %v7310_v16, %v4943_v59 }
 0x39b   :  { %v4161_v11 = vpop.f32.mrf.mxu3  ;;  %v4698_v21 = vpop.f32.mrf.mxu0 }
 0x39c   :  { %vm5073_vm8 = vcmp.ge.f32.partialorder %v5008_v12, 0.0  ;;  %v5138_v15 = vmul.f32 %v7319_v14, %v5008_v12  ;;  %v4343_v0 = vadd.f32 %v4161_v11, %v3809_v32  ;;  %v3095_v20 = vpop.f32.mrf.mxu1  ;;  %v3630_v2 = vpop.f32.mrf.mxu2 }
 0x39d   :  { %v3275_v10 = vadd.f32 %v3095_v20, %v6873_v48 }
 0x39e   :  { %v5202_v54 = vsel %vm5073_vm8, %v5008_v12, %v5138_v15  ;;  %v4877_v50 = vadd.f32 %v4695_v30, %v4343_v0  ;;  %5882 = vmatmul.msk.f32.gmra.mxu0 %vm18_vm1, %v4424_v28  ;;  %v3891_v12 = vld [vmem:[#allocation2 + $0x141] sm:$0xff]  ;;  %v3358_v0 = vld [vmem:[#allocation2 + $0x150] sm:$0xff] }
 0x39f   :  { %5267 = vst.msk [vmem:[%s8038_s4 + $0x20] sm:$0xff] %vm5262_vm4, %v5202_v54  ;;  %5684 = vmatmul.msk.f32.gmra.mxu1 %vm18_vm1, %v4422_v37  ;;  %v3810_v4 = vadd.f32 %v3630_v2, %v3275_v10  ;;  %v4426_v54 = vld [vmem:[#allocation2 + $0x152] sm:$0xff] }
 0x3a0   :  { %v4944_v7 = vmul.f32 %v7304_v22, %v4877_v50  ;;  %5816 = vmatmul.msk.f32.gmra.mxu3 %vm18_vm1, %v3890_v57 }
 0x3a1   :  { %5751 = vmatmul.msk.f32.gmra.mxu2 %vm18_vm1, %v3357_v60 }
 0x3a2   :  { %v5009_v48 = vadd.f32 %v7310_v16, %v4944_v7 }
 0x3a3   :  { %v4164_v30 = vpop.f32.mrf.mxu3  ;;  %v4701_v42 = vpop.f32.mrf.mxu0 }
 0x3a4   :  { %vm5074_vm9 = vcmp.ge.f32.partialorder %v5009_v48, 0.0  ;;  %v5139_v62 = vmul.f32 %v7319_v14, %v5009_v48  ;;  %v4344_v41 = vadd.f32 %v4164_v30, %v3810_v4  ;;  %v3098_v59 = vpop.f32.mrf.mxu1  ;;  %v3633_v32 = vpop.f32.mrf.mxu2  ;;  %v3892_v4 = vld [vmem:[#allocation2 + $0x151] sm:$0xff] }
 0x3a5   :  { %v3276_v11 = vadd.f32 %v3098_v59, %v6881_v55 }
 0x3a6   :  { %v5203_v37 = vsel %vm5074_vm9, %v5009_v48, %v5139_v62  ;;  %v4878_v15 = vadd.f32 %v4698_v21, %v4344_v41  ;;  %5883 = vmatmul.msk.f32.gmra.mxu0 %vm18_vm1, %v4425_v52  ;;  %v3359_v62 = vld [vmem:[#allocation2 + $0x158] sm:$0xff] }
 0x3a7   :  { %5268 = vst.msk [vmem:[%s8038_s4 + $0x28] sm:$0xff] %vm5262_vm4, %v5203_v37  ;;  %5685 = vmatmul.msk.f32.gmra.mxu1 %vm18_vm1, %v4423_v26  ;;  %v3811_v2 = vadd.f32 %v3633_v32, %v3276_v11 }
 0x3a8   :  { %v4945_v20 = vmul.f32 %v7304_v22, %v4878_v15  ;;  %5817 = vmatmul.msk.f32.gmra.mxu3 %vm18_vm1, %v3891_v12  ;;  %v4427_v12 = vld [vmem:[#allocation2 + $0x15a] sm:$0xff] }
 0x3a9   :  { %5752 = vmatmul.msk.f32.gmra.mxu2 %vm18_vm1, %v3358_v0 }
 0x3aa   :  { %v5010_v55 = vadd.f32 %v7310_v16, %v4945_v20  ;;  %v3893_v20 = vld [vmem:[#allocation2 + $0x159] sm:$0xff] }
 0x3ab   :  { %v4167_v21 = vpop.f32.mrf.mxu3  ;;  %v4704_v57 = vpop.f32.mrf.mxu0 }
 0x3ac   :  { %vm5075_vm10 = vcmp.ge.f32.partialorder %v5010_v55, 0.0  ;;  %v5140_v10 = vmul.f32 %v7319_v14, %v5010_v55  ;;  %v4345_v50 = vadd.f32 %v4167_v21, %v3811_v2  ;;  %v3101_v60 = vpop.f32.mrf.mxu1  ;;  %v3636_v7 = vpop.f32.mrf.mxu2  ;;  %v3360_v21 = vld [vmem:[#allocation2 + $0x168] sm:$0xff] }
 0x3ad   :  { %v3277_v48 = vadd.f32 %v3101_v60, %v6889_v46 }
 0x3ae   :  { %v5204_v26 = vsel %vm5075_vm10, %v5010_v55, %v5140_v10  ;;  %v4879_v30 = vadd.f32 %v4701_v42, %v4345_v50  ;;  %5884 = vmatmul.msk.f32.gmra.mxu0 %vm18_vm1, %v4426_v54 }
 0x3af   :  { %5269 = vst.msk [vmem:[%s8038_s4 + $0x30] sm:$0xff] %vm5262_vm4, %v5204_v26  ;;  %5686 = vmatmul.msk.f32.gmra.mxu1 %vm18_vm1, %v4424_v28  ;;  %v3812_v59 = vadd.f32 %v3636_v7, %v3277_v48  ;;  %v4428_v7 = vld [vmem:[#allocation2 + $0x16a] sm:$0xff] }
 0x3b0   :  { %v4946_v41 = vmul.f32 %v7304_v22, %v4879_v30  ;;  %5818 = vmatmul.msk.f32.gmra.mxu3 %vm18_vm1, %v3892_v4 }
 0x3b1   :  { %5753 = vmatmul.msk.f32.gmra.mxu2 %vm18_vm1, %v3359_v62  ;;  %v3894_v62 = vld [vmem:[#allocation2 + $0x169] sm:$0xff] }
 0x3b2   :  { %v5011_v46 = vadd.f32 %v7310_v16, %v4946_v41 }
 0x3b3   :  { %v4170_v42 = vpop.f32.mrf.mxu3  ;;  %v4707_v32 = vpop.f32.mrf.mxu0 }
 0x3b4   :  { %vm5076_vm11 = vcmp.ge.f32.partialorder %v5011_v46, 0.0  ;;  %v5141_v37 = vmul.f32 %v7319_v14, %v5011_v46  ;;  %v4346_v11 = vadd.f32 %v4170_v42, %v3812_v59  ;;  %v3104_v15 = vpop.f32.mrf.mxu1  ;;  %v3639_v0 = vpop.f32.mrf.mxu2 }
 0x3b5   :  { %v3278_v2 = vadd.f32 %v3104_v15, %v6901_v31  ;;  %v4429_v15 = vld [vmem:[#allocation2 + $0x172] sm:$0xff] }
 0x3b6   :  { %v5205_v28 = vsel %vm5076_vm11, %v5011_v46, %v5141_v37  ;;  %v4880_v55 = vadd.f32 %v4704_v57, %v4346_v11  ;;  %5885 = vmatmul.msk.f32.gmra.mxu0 %vm18_vm1, %v4427_v12  ;;  %v3361_v46 = vld [vmem:[#allocation2 + $0x170] sm:$0xff] }
 0x3b7   :  { %5270 = vst.msk [vmem:[%s8038_s4 + $0x38] sm:$0xff] %vm5262_vm4, %v5205_v28  ;;  %5687 = vmatmul.msk.f32.gmra.mxu1 %vm18_vm1, %v4425_v52  ;;  %v3813_v50 = vadd.f32 %v3639_v0, %v3278_v2 }
 0x3b8   :  { %v4947_v10 = vmul.f32 %v7304_v22, %v4880_v55  ;;  %5819 = vmatmul.msk.f32.gmra.mxu3 %vm18_vm1, %v3893_v20  ;;  %v3895_v55 = vld [vmem:[#allocation2 + $0x171] sm:$0xff] }
 0x3b9   :  { %5754 = vmatmul.msk.f32.gmra.mxu2 %vm18_vm1, %v3360_v21 }
 0x3ba   :  { %v5012_v31 = vadd.f32 %v7310_v16, %v4947_v10 }
 0x3bb   :  { %v4173_v57 = vpop.f32.mrf.mxu3  ;;  %v4710_v60 = vpop.f32.mrf.mxu0 }
 0x3bc   :  { %vm5077_vm12 = vcmp.ge.f32.partialorder %v5012_v31, 0.0  ;;  %v5142_v4 = vmul.f32 %v7319_v14, %v5012_v31  ;;  %v4347_v26 = vadd.f32 %v4173_v57, %v3813_v50  ;;  %v3107_v48 = vpop.f32.mrf.mxu1  ;;  %v3642_v30 = vpop.f32.mrf.mxu2  ;;  %v3362_v50 = vld [vmem:[#allocation2 + $0x180] sm:$0xff] }
 0x3bd   :  { %v3279_v41 = vadd.f32 %v3107_v48, %v6913_v49 }
 0x3be   :  { %v5206_v52 = vsel %vm5077_vm12, %v5012_v31, %v5142_v4  ;;  %v4881_v59 = vadd.f32 %v4707_v32, %v4347_v26  ;;  %5886 = vmatmul.msk.f32.gmra.mxu0 %vm18_vm1, %v4428_v7  ;;  %v4430_v26 = vld [vmem:[#allocation2 + $0x182] sm:$0xff] }
 0x3bf   :  { %5271 = vst.msk [vmem:[%s8038_s4 + $0x40] sm:$0xff] %vm5262_vm4, %v5206_v52  ;;  %5688 = vmatmul.msk.f32.gmra.mxu1 %vm18_vm1, %v4426_v54  ;;  %v3814_v37 = vadd.f32 %v3642_v30, %v3279_v41  ;;  %v3896_v41 = vld [vmem:[#allocation2 + $0x181] sm:$0xff] }
 0x3c0   :  { %v4948_v42 = vmul.f32 %v7304_v22, %v4881_v59  ;;  %5820 = vmatmul.msk.f32.gmra.mxu3 %vm18_vm1, %v3894_v62 }
 0x3c1   :  { %5755 = vmatmul.msk.f32.gmra.mxu2 %vm18_vm1, %v3361_v46 }
 0x3c2   :  { %v5013_v49 = vadd.f32 %v7310_v16, %v4948_v42  ;;  %v3363_v42 = vld [vmem:[#allocation2 + $0x188] sm:$0xff] }
 0x3c3   :  { %v4176_v32 = vpop.f32.mrf.mxu3  ;;  %v4713_v11 = vpop.f32.mrf.mxu0 }
 0x3c4   :  { %vm5078_vm13 = vcmp.ge.f32.partialorder %v5013_v49, 0.0  ;;  %v5143_v0 = vmul.f32 %v7319_v14, %v5013_v49  ;;  %v4348_v20 = vadd.f32 %v4176_v32, %v3814_v37  ;;  %v3110_v28 = vpop.f32.mrf.mxu1  ;;  %v3645_v2 = vpop.f32.mrf.mxu2 }
 0x3c5   :  { %v3280_v21 = vadd.f32 %v3110_v28, %v6921_v35 }
 0x3c6   :  { %v5207_v54 = vsel %vm5078_vm13, %v5013_v49, %v5143_v0  ;;  %v4882_v10 = vadd.f32 %v4710_v60, %v4348_v20  ;;  %5887 = vmatmul.msk.f32.gmra.mxu0 %vm18_vm1, %v4429_v15  ;;  %v4431_v0 = vld [vmem:[#allocation2 + $0x18a] sm:$0xff] }
 0x3c7   :  { %5272 = vst.msk [vmem:[%s8038_s4 + $0x48] sm:$0xff] %vm5262_vm4, %v5207_v54  ;;  %5689 = vmatmul.msk.f32.gmra.mxu1 %vm18_vm1, %v4427_v12  ;;  %v3815_v57 = vadd.f32 %v3645_v2, %v3280_v21  ;;  %v3897_v54 = vld [vmem:[#allocation2 + $0x189] sm:$0xff] }
 0x3c8   :  { %v4949_v31 = vmul.f32 %v7304_v22, %v4882_v10  ;;  %5821 = vmatmul.msk.f32.gmra.mxu3 %vm18_vm1, %v3895_v55 }
 0x3c9   :  { %5756 = vmatmul.msk.f32.gmra.mxu2 %vm18_vm1, %v3362_v50  ;;  %v3364_v50 = vld [vmem:[#allocation2 + $0x198] sm:$0xff] }
 0x3ca   :  { %v5014_v35 = vadd.f32 %v7310_v16, %v4949_v31 }
 0x3cb   :  { %v4179_v60 = vpop.f32.mrf.mxu3  ;;  %v4716_v4 = vpop.f32.mrf.mxu0 }
 0x3cc   :  { %vm5079_vm14 = vcmp.ge.f32.partialorder %v5014_v35, 0.0  ;;  %v5144_v48 = vmul.f32 %v7319_v14, %v5014_v35  ;;  %v4349_v30 = vadd.f32 %v4179_v60, %v3815_v57  ;;  %v3113_v62 = vpop.f32.mrf.mxu1  ;;  %v3648_v52 = vpop.f32.mrf.mxu2 }
 0x3cd   :  { %v3281_v59 = vadd.f32 %v3113_v62, %v6929_v8 }
 0x3ce   :  { %v5208_v12 = vsel %vm5079_vm14, %v5014_v35, %v5144_v48  ;;  %v4883_v46 = vadd.f32 %v4713_v11, %v4349_v30  ;;  %5888 = vmatmul.msk.f32.gmra.mxu0 %vm18_vm1, %v4430_v26 }
 0x3cf   :  { %5273 = vst.msk [vmem:[%s8038_s4 + $0x50] sm:$0xff] %vm5262_vm4, %v5208_v12  ;;  %5690 = vmatmul.msk.f32.gmra.mxu1 %vm18_vm1, %v4428_v7  ;;  %v3816_v49 = vadd.f32 %v3648_v52, %v3281_v59 }
 0x3d0   :  { %v4950_v37 = vmul.f32 %v7304_v22, %v4883_v46  ;;  %5822 = vmatmul.msk.f32.gmra.mxu3 %vm18_vm1, %v3896_v41  ;;  %v3898_v41 = vld [vmem:[#allocation2 + $0x199] sm:$0xff] }
 0x3d1   :  { %5757 = vmatmul.msk.f32.gmra.mxu2 %vm18_vm1, %v3363_v42  ;;  %v3365_v46 = vld [vmem:[#allocation2 + $0x1a0] sm:$0xff] }
 0x3d2   :  { %v5015_v8 = vadd.f32 %v7310_v16, %v4950_v37 }
 0x3d3   :  { %v4182_v32 = vpop.f32.mrf.mxu3  ;;  %v4719_v11 = vpop.f32.mrf.mxu0 }
 0x3d4   :  { %vm5080_vm15 = vcmp.ge.f32.partialorder %v5015_v8, 0.0  ;;  %v5145_v20 = vmul.f32 %v7319_v14, %v5015_v8  ;;  %v4350_v28 = vadd.f32 %v4182_v32, %v3816_v49  ;;  %v3116_v2 = vpop.f32.mrf.mxu1  ;;  %v3651_v55 = vpop.f32.mrf.mxu2  ;;  %v4433_v32 = vld [vmem:[#allocation2 + $0x1a2] sm:$0xff] }
 0x3d5   :  { %v3282_v21 = vadd.f32 %v3116_v2, %v6937_v61 }
 0x3d6   :  { %v5209_v7 = vsel %vm5080_vm15, %v5015_v8, %v5145_v20  ;;  %v4884_v10 = vadd.f32 %v4716_v4, %v4350_v28  ;;  %5889 = vmatmul.msk.f32.gmra.mxu0 %vm18_vm1, %v4431_v0  ;;  %v4432_v4 = vld [vmem:[#allocation2 + $0x19a] sm:$0xff] }
 0x3d7   :  { %5274 = vst.msk [vmem:[%s8038_s4 + $0x58] sm:$0xff] %vm5262_vm4, %v5209_v7  ;;  %5691 = vmatmul.msk.f32.gmra.mxu1 %vm18_vm1, %v4429_v15  ;;  %v3817_v57 = vadd.f32 %v3651_v55, %v3282_v21  ;;  %v3899_v55 = vld [vmem:[#allocation2 + $0x1a1] sm:$0xff] }
 0x3d8   :  { %v4951_v31 = vmul.f32 %v7304_v22, %v4884_v10  ;;  %5823 = vmatmul.msk.f32.gmra.mxu3 %vm18_vm1, %v3897_v54  ;;  %v3366_v21 = vld [vmem:[#allocation2 + $0x1e0] sm:$0xff] }
 0x3d9   :  { %5758 = vmatmul.msk.f32.gmra.mxu2 %vm18_vm1, %v3364_v50 }
 0x3da   :  { %v5016_v61 = vadd.f32 %v7310_v16, %v4951_v31 }
 0x3db   :  { %v4185_v35 = vpop.f32.mrf.mxu3  ;;  %v4722_v60 = vpop.f32.mrf.mxu0 }
 0x3dc   :  { %vm5081_vm0 = vcmp.ge.f32.partialorder %v5016_v61, 0.0  ;;  %v5146_v48 = vmul.f32 %v7319_v14, %v5016_v61  ;;  %v4351_v30 = vadd.f32 %v4185_v35, %v3817_v57  ;;  %v3119_v62 = vpop.f32.mrf.mxu1  ;;  %v3654_v52 = vpop.f32.mrf.mxu2 }
 0x3dd   :  { %v3283_v12 = vadd.f32 %v3119_v62, %v6944_v6 }
 0x3de   :  { %v5210_v15 = vsel %vm5081_vm0, %v5016_v61, %v5146_v48  ;;  %v4885_v59 = vadd.f32 %v4719_v11, %v4351_v30  ;;  %5890 = vmatmul.msk.f32.gmra.mxu0 %vm18_vm1, %v4432_v4  ;;  %v4434_v61 = vld [vmem:[#allocation2 + $0x1e2] sm:$0xff]  ;;  %v2831_v48 = vld [vmem:[#allocation2 + $0x1ca] sm:$0xff] }
 0x3df   :  { %5275 = vst.msk [vmem:[%s8038_s4 + $0x60] sm:$0xff] %vm5262_vm4, %v5210_v15  ;;  %5692 = vmatmul.msk.f32.gmra.mxu1 %vm18_vm1, %v4430_v26  ;;  %v3818_v37 = vadd.f32 %v3654_v52, %v3283_v12  ;;  %v3367_v15 = vld [vmem:[#allocation2 + $0x1e8] sm:$0xff] }
 0x3e0   :  { %v4952_v42 = vmul.f32 %v7304_v22, %v4885_v59  ;;  %5824 = vmatmul.msk.f32.gmra.mxu3 %vm18_vm1, %v3898_v41 }
 0x3e1   :  { %5759 = vmatmul.msk.f32.gmra.mxu2 %vm18_vm1, %v3365_v46 }
 0x3e2   :  { %v5017_v6 = vadd.f32 %v7310_v16, %v4952_v42 }
 0x3e3   :  { %v4188_v49 = vpop.f32.mrf.mxu3  ;;  %v4725_v8 = vpop.f32.mrf.mxu0 }
 0x3e4   :  { %vm5082_vm2 = vcmp.ge.f32.partialorder %v5017_v6, 0.0  ;;  %v5147_v11 = vmul.f32 %v7319_v14, %v5017_v6  ;;  %v4352_v20 = vadd.f32 %v4188_v49, %v3818_v37  ;;  %v3122_v28 = vpop.f32.mrf.mxu1  ;;  %v3657_v2 = vpop.f32.mrf.mxu2  ;;  %v4435_v37 = vld [vmem:[#allocation2 + $0x1ea] sm:$0xff] }
 0x3e5   :  { %v3284_v54 = vadd.f32 %v3122_v28, %v6951_v13 }
 0x3e6   :  { %v5211_v26 = vsel %vm5082_vm2, %v5017_v6, %v5147_v11  ;;  %v4886_v7 = vadd.f32 %v4722_v60, %v4352_v20  ;;  %5891 = vmatmul.msk.f32.gmra.mxu0 %vm18_vm1, %v4433_v32  ;;  %v2832_v32 = vld [vmem:[#allocation2 + $0x1d2] sm:$0xff]  ;;  %v3901_v20 = vld [vmem:[#allocation2 + $0x1e9] sm:$0xff] }
 0x3e7   :  { %5276 = vst.msk [vmem:[%s8038_s4 + $0x68] sm:$0xff] %vm5262_vm4, %v5211_v26  ;;  %5693 = vmatmul.msk.f32.gmra.mxu1 %vm18_vm1, %v4431_v0  ;;  %v3819_v50 = vadd.f32 %v3657_v2, %v3284_v54  ;;  %v3900_v0 = vld [vmem:[#allocation2 + $0x1e1] sm:$0xff]  ;;  %v3368_v26 = vld [vmem:[#allocation2 + $0x1f8] sm:$0xff] }
 0x3e8   :  { %v4953_v10 = vmul.f32 %v7304_v22, %v4886_v7  ;;  %5825 = vmatmul.msk.f32.gmra.mxu3 %vm18_vm1, %v3899_v55 }
 0x3e9   :  { %5760 = vmatmul.msk.f32.gmra.mxu2 %vm18_vm1, %v3366_v21 }
 0x3ea   :  { %v5018_v13 = vadd.f32 %v7310_v16, %v4953_v10 }
 0x3eb   :  { %v4191_v31 = vpop.f32.mrf.mxu3  ;;  %v4728_v57 = vpop.f32.mrf.mxu0 }
 0x3ec   :  { %vm5083_vm3 = vcmp.ge.f32.partialorder %v5018_v13, 0.0  ;;  %v5148_v35 = vmul.f32 %v7319_v14, %v5018_v13  ;;  %v4353_v60 = vadd.f32 %v4191_v31, %v3819_v50  ;;  %v3125_v4 = vpop.f32.mrf.mxu1  ;;  %v3660_v30 = vpop.f32.mrf.mxu2  ;;  %v4436_v50 = vld [vmem:[#allocation2 + $0x1fa] sm:$0xff] }
 0x3ed   :  { %v3285_v52 = vadd.f32 %v3125_v4, %v6958_v19 }
 0x3ee   :  { %v5212_v62 = vsel %vm5083_vm3, %v5018_v13, %v5148_v35  ;;  %v4887_v41 = vadd.f32 %v4725_v8, %v4353_v60  ;;  %5892 = vmatmul.msk.f32.gmra.mxu0 %vm18_vm1, %v4434_v61  ;;  %v3902_v60 = vld [vmem:[#allocation2 + $0x1f9] sm:$0xff] }
 0x3ef   :  { %5277 = vst.msk [vmem:[%s8038_s4 + $0x70] sm:$0xff] %vm5262_vm4, %v5212_v62  ;;  %5694 = vmatmul.msk.f32.gmra.mxu1 %vm18_vm1, %v2831_v48  ;;  %v3820_v59 = vadd.f32 %v3660_v30, %v3285_v52 }
 0x3f0   :  { %v4954_v12 = vmul.f32 %v7304_v22, %v4887_v41  ;;  %5826 = vmatmul.msk.f32.gmra.mxu3 %vm18_vm1, %v3900_v0  ;;  %v3369_v0 = vld [vmem:[#allocation2 + $0x200] sm:$0xff] }
 0x3f1   :  { %5761 = vmatmul.msk.f32.gmra.mxu2 %vm18_vm1, %v3367_v15 }
 0x3f2   :  { %v5019_v19 = vadd.f32 %v7310_v16, %v4954_v12  ;;  %v4437_v12 = vld [vmem:[#allocation2 + $0x202] sm:$0xff] }
 0x3f3   :  { %v4194_v46 = vpop.f32.mrf.mxu3  ;;  %v4731_v42 = vpop.f32.mrf.mxu0 }
 0x3f4   :  { %vm5084_vm5 = vcmp.ge.f32.partialorder %v5019_v19, 0.0  ;;  %v5149_v6 = vmul.f32 %v7319_v14, %v5019_v19  ;;  %v4354_v49 = vadd.f32 %v4194_v46, %v3820_v59  ;;  %v3128_v8 = vpop.f32.mrf.mxu1  ;;  %v3663_v11 = vpop.f32.mrf.mxu2 }
 0x3f5   :  { %v3286_v2 = vadd.f32 %v3128_v8, %v6965_v43 }
 0x3f6   :  { %v5213_v28 = vsel %vm5084_vm5, %v5019_v19, %v5149_v6  ;;  %v4888_v55 = vadd.f32 %v4728_v57, %v4354_v49  ;;  %5893 = vmatmul.msk.f32.gmra.mxu0 %vm18_vm1, %v4435_v37  ;;  %v3903_v6 = vld [vmem:[#allocation2 + $0x201] sm:$0xff] }
 0x3f7   :  { %5278 = vst.msk [vmem:[%s8038_s4 + $0x78] sm:$0xff] %vm5262_vm4, %v5213_v28  ;;  %5695 = vmatmul.msk.f32.gmra.mxu1 %vm18_vm1, %v2832_v32  ;;  %v3821_v7 = vadd.f32 %v3663_v11, %v3286_v2  ;;  %v3370_v32 = vld [vmem:[#allocation2 + $0x210] sm:$0xff] }
 0x3f8   :  { %v4955_v54 = vmul.f32 %v7304_v22, %v4888_v55  ;;  %5827 = vmatmul.msk.f32.gmra.mxu3 %vm18_vm1, %v3901_v20  ;;  %v4438_v55 = vld [vmem:[#allocation2 + $0x212] sm:$0xff] }
 0x3f9   :  { %5762 = vmatmul.msk.f32.gmra.mxu2 %vm18_vm1, %v3368_v26 }
 0x3fa   :  { %v5020_v43 = vadd.f32 %v7310_v16, %v4955_v54 }
 0x3fb   :  { %v4197_v21 = vpop.f32.mrf.mxu3  ;;  %v4734_v10 = vpop.f32.mrf.mxu0 }
 0x3fc   :  { %vm5085_vm6 = vcmp.ge.f32.partialorder %v5020_v43, 0.0  ;;  %v5150_v13 = vmul.f32 %v7319_v14, %v5020_v43  ;;  %v4355_v31 = vadd.f32 %v4197_v21, %v3821_v7  ;;  %v3131_v57 = vpop.f32.mrf.mxu1  ;;  %v3666_v35 = vpop.f32.mrf.mxu2  ;;  %v3904_v21 = vld [vmem:[#allocation2 + $0x211] sm:$0xff] }
 0x3fd   :  { %v3287_v48 = vadd.f32 %v3131_v57, %v6972_v53 }
 0x3fe   :  { %v5214_v4 = vsel %vm5085_vm6, %v5020_v43, %v5150_v13  ;;  %v4889_v30 = vadd.f32 %v4731_v42, %v4355_v31  ;;  %5894 = vmatmul.msk.f32.gmra.mxu0 %vm18_vm1, %v4436_v50  ;;  %v3371_v31 = vld [vmem:[#allocation2 + $0x218] sm:$0xff] }
 0x3ff   :  { %5279 = vst.msk [vmem:[%s8038_s4 + $0x80] sm:$0xff] %vm5262_vm4, %v5214_v4  ;;  %5696 = vmatmul.msk.f32.gmra.mxu1 %vm18_vm1, %v4434_v61  ;;  %v3822_v52 = vadd.f32 %v3666_v35, %v3287_v48  ;;  %v4439_v48 = vld [vmem:[#allocation2 + $0x21a] sm:$0xff] }
 0x400   :  { %v4956_v62 = vmul.f32 %v7304_v22, %v4889_v30  ;;  %5828 = vmatmul.msk.f32.gmra.mxu3 %vm18_vm1, %v3902_v60 }
 0x401   :  { %5763 = vmatmul.msk.f32.gmra.mxu2 %vm18_vm1, %v3369_v0 }
 0x402   :  { %v5021_v53 = vadd.f32 %v7310_v16, %v4956_v62 }
 0x403   :  { %v4200_v41 = vpop.f32.mrf.mxu3  ;;  %v4737_v15 = vpop.f32.mrf.mxu0 }
 0x404   :  { %vm5086_vm7 = vcmp.ge.f32.partialorder %v5021_v53, 0.0  ;;  %v5151_v59 = vmul.f32 %v7319_v14, %v5021_v53  ;;  %v4356_v19 = vadd.f32 %v4200_v41, %v3822_v52  ;;  %v3134_v46 = vpop.f32.mrf.mxu1  ;;  %v3669_v42 = vpop.f32.mrf.mxu2 }
 0x405   :  { %v3288_v49 = vadd.f32 %v3134_v46, %v6979_v34 }
 0x406   :  { %v5215_v61 = vsel %vm5086_vm7, %v5021_v53, %v5151_v59  ;;  %v4890_v8 = vadd.f32 %v4734_v10, %v4356_v19  ;;  %5895 = vmatmul.msk.f32.gmra.mxu0 %vm18_vm1, %v4437_v12  ;;  %v3905_v53 = vld [vmem:[#allocation2 + $0x219] sm:$0xff]  ;;  %v3372_v59 = vld [vmem:[#allocation2 + $0x228] sm:$0xff] }
 0x407   :  { %5280 = vst.msk [vmem:[%s8038_s4 + $0x88] sm:$0xff] %vm5262_vm4, %v5215_v61  ;;  %5697 = vmatmul.msk.f32.gmra.mxu1 %vm18_vm1, %v4435_v37  ;;  %v3823_v20 = vadd.f32 %v3669_v42, %v3288_v49  ;;  %v4440_v61 = vld [vmem:[#allocation2 + $0x22a] sm:$0xff] }
 0x408   :  { %v4957_v11 = vmul.f32 %v7304_v22, %v4890_v8  ;;  %5829 = vmatmul.msk.f32.gmra.mxu3 %vm18_vm1, %v3903_v6 }
 0x409   :  { %5764 = vmatmul.msk.f32.gmra.mxu2 %vm18_vm1, %v3370_v32 }
 0x40a   :  { %v5022_v34 = vadd.f32 %v7310_v16, %v4957_v11 }
 0x40b   :  { %v4203_v28 = vpop.f32.mrf.mxu3  ;;  %v4740_v2 = vpop.f32.mrf.mxu0 }
 0x40c   :  { %vm5087_vm8 = vcmp.ge.f32.partialorder %v5022_v34, 0.0  ;;  %v5152_v26 = vmul.f32 %v7319_v14, %v5022_v34  ;;  %v4357_v54 = vadd.f32 %v4203_v28, %v3823_v20  ;;  %v3137_v7 = vpop.f32.mrf.mxu1  ;;  %v3672_v43 = vpop.f32.mrf.mxu2  ;;  %v3906_v20 = vld [vmem:[#allocation2 + $0x229] sm:$0xff] }
 0x40d   :  { %v3289_v10 = vadd.f32 %v3137_v7, %v6986_v5 }
 0x40e   :  { %v5216_v37 = vsel %vm5087_vm8, %v5022_v34, %v5152_v26  ;;  %v4891_v13 = vadd.f32 %v4737_v15, %v4357_v54  ;;  %5896 = vmatmul.msk.f32.gmra.mxu0 %vm18_vm1, %v4438_v55 }
 0x40f   :  { %5281 = vst.msk [vmem:[%s8038_s4 + $0x90] sm:$0xff] %vm5262_vm4, %v5216_v37  ;;  %5698 = vmatmul.msk.f32.gmra.mxu1 %vm18_vm1, %v4436_v50  ;;  %v3824_v35 = vadd.f32 %v3672_v43, %v3289_v10 }
 0x410   :  { %v4958_v57 = vmul.f32 %v7304_v22, %v4891_v13  ;;  %5830 = vmatmul.msk.f32.gmra.mxu3 %vm18_vm1, %v3904_v21  ;;  %v4441_v21 = vld [vmem:[#allocation2 + $0x232] sm:$0xff] }
 0x411   :  { %5765 = vmatmul.msk.f32.gmra.mxu2 %vm18_vm1, %v3371_v31 }
 0x412   :  { %v5023_v5 = vadd.f32 %v7310_v16, %v4958_v57  ;;  %v3907_v57 = vld [vmem:[#allocation2 + $0x231] sm:$0xff] }
 0x413   :  { %v4206_v60 = vpop.f32.mrf.mxu3  ;;  %v4743_v4 = vpop.f32.mrf.mxu0 }
 0x414   :  { %vm5088_vm9 = vcmp.ge.f32.partialorder %v5023_v5, 0.0  ;;  %v5153_v30 = vmul.f32 %v7319_v14, %v5023_v5  ;;  %v4358_v0 = vadd.f32 %v4206_v60, %v3824_v35  ;;  %v3140_v62 = vpop.f32.mrf.mxu1  ;;  %v3675_v52 = vpop.f32.mrf.mxu2  ;;  %v3374_v60 = vld [vmem:[#allocation2 + $0x240] sm:$0xff] }
 0x415   :  { %v3290_v41 = vadd.f32 %v3140_v62, %v6993_v29 }
 0x416   :  { %v5217_v50 = vsel %vm5088_vm9, %v5023_v5, %v5153_v30  ;;  %v4892_v15 = vadd.f32 %v4740_v2, %v4358_v0  ;;  %5897 = vmatmul.msk.f32.gmra.mxu0 %vm18_vm1, %v4439_v48  ;;  %v3373_v2 = vld [vmem:[#allocation2 + $0x230] sm:$0xff] }
 0x417   :  { %5282 = vst.msk [vmem:[%s8038_s4 + $0x98] sm:$0xff] %vm5262_vm4, %v5217_v50  ;;  %5699 = vmatmul.msk.f32.gmra.mxu1 %vm18_vm1, %v4437_v12  ;;  %v3825_v46 = vadd.f32 %v3675_v52, %v3290_v41  ;;  %v4442_v52 = vld [vmem:[#allocation2 + $0x242] sm:$0xff] }
 0x418   :  { %v4959_v19 = vmul.f32 %v7304_v22, %v4892_v15  ;;  %5831 = vmatmul.msk.f32.gmra.mxu3 %vm18_vm1, %v3905_v53 }
 0x419   :  { %5766 = vmatmul.msk.f32.gmra.mxu2 %vm18_vm1, %v3372_v59  ;;  %v3908_v59 = vld [vmem:[#allocation2 + $0x241] sm:$0xff] }
 0x41a   :  { %v5024_v29 = vadd.f32 %v7310_v16, %v4959_v19 }
 0x41b   :  { %v4209_v42 = vpop.f32.mrf.mxu3  ;;  %v4746_v6 = vpop.f32.mrf.mxu0 }
 0x41c   :  { %vm5089_vm10 = vcmp.ge.f32.partialorder %v5024_v29, 0.0  ;;  %v5154_v49 = vmul.f32 %v7319_v14, %v5024_v29  ;;  %v4359_v8 = vadd.f32 %v4209_v42, %v3825_v46  ;;  %v3143_v32 = vpop.f32.mrf.mxu1  ;;  %v3678_v11 = vpop.f32.mrf.mxu2 }
 0x41d   :  { %v3291_v34 = vadd.f32 %v3143_v32, %v7000_v24  ;;  %v4443_v32 = vld [vmem:[#allocation2 + $0x24a] sm:$0xff] }
 0x41e   :  { %v5218_v12 = vsel %vm5089_vm10, %v5024_v29, %v5154_v49  ;;  %v4893_v28 = vadd.f32 %v4743_v4, %v4359_v8  ;;  %5898 = vmatmul.msk.f32.gmra.mxu0 %vm18_vm1, %v4440_v61  ;;  %v3375_v29 = vld [vmem:[#allocation2 + $0x248] sm:$0xff] }
 0x41f   :  { %5283 = vst.msk [vmem:[%s8038_s4 + $0xa0] sm:$0xff] %vm5262_vm4, %v5218_v12  ;;  %5700 = vmatmul.msk.f32.gmra.mxu1 %vm18_vm1, %v4438_v55  ;;  %v3826_v54 = vadd.f32 %v3678_v11, %v3291_v34 }
 0x420   :  { %v4960_v26 = vmul.f32 %v7304_v22, %v4893_v28  ;;  %5832 = vmatmul.msk.f32.gmra.mxu3 %vm18_vm1, %v3906_v20  ;;  %v3909_v28 = vld [vmem:[#allocation2 + $0x249] sm:$0xff] }
 0x421   :  { %5767 = vmatmul.msk.f32.gmra.mxu2 %vm18_vm1, %v3373_v2 }
 0x422   :  { %v5025_v24 = vadd.f32 %v7310_v16, %v4960_v26  ;;  %v3376_v26 = vld [vmem:[#allocation2 + $0x258] sm:$0xff] }
 0x423   :  { %v4212_v7 = vpop.f32.mrf.mxu3  ;;  %v4749_v43 = vpop.f32.mrf.mxu0 }
 0x424   :  { %vm5090_vm11 = vcmp.ge.f32.partialorder %v5025_v24, 0.0  ;;  %v5155_v37 = vmul.f32 %v7319_v14, %v5025_v24  ;;  %v4360_v10 = vadd.f32 %v4212_v7, %v3826_v54  ;;  %v3146_v13 = vpop.f32.mrf.mxu1  ;;  %v3681_v31 = vpop.f32.mrf.mxu2 }
 0x425   :  { %v3292_v35 = vadd.f32 %v3146_v13, %v7007_v33 }
 0x426   :  { %v5219_v55 = vsel %vm5090_vm11, %v5025_v24, %v5155_v37  ;;  %v4894_v5 = vadd.f32 %v4746_v6, %v4360_v10  ;;  %5899 = vmatmul.msk.f32.gmra.mxu0 %vm18_vm1, %v4441_v21  ;;  %v7618_v24 = vld [vmem:[%s8036_s2 + $0x1] ss:$0 sm:$0xff] }
 0x427   :  { %5284 = vst.msk [vmem:[%s8038_s4 + $0xa8] sm:$0xff] %vm5262_vm4, %v5219_v55  ;;  %5701 = vmatmul.msk.f32.gmra.mxu1 %vm18_vm1, %v4439_v48  ;;  %v3827_v30 = vadd.f32 %v3681_v31, %v3292_v35  ;;  %v4444_v37 = vld [vmem:[#allocation2 + $0x25a] sm:$0xff] }
 0x428   :  { %v4961_v4 = vmul.f32 %v7304_v22, %v4894_v5  ;;  %5833 = vmatmul.msk.f32.gmra.mxu3 %vm18_vm1, %v3907_v57  ;;  %v3910_v55 = vld [vmem:[#allocation2 + $0x259] sm:$0xff] }
 0x429   :  { %5768 = vmatmul.msk.f32.gmra.mxu2 %vm18_vm1, %v3374_v60 }
 0x42a   :  { %v5026_v33 = vadd.f32 %v7310_v16, %v4961_v4  ;;  %v3377_v4 = vld [vmem:[#allocation2 + $0x260] sm:$0xff] }
 0x42b   :  { %v4215_v0 = vpop.f32.mrf.mxu3  ;;  %v4752_v62 = vpop.f32.mrf.mxu0 }
 0x42c   :  { %vm5091_vm12 = vcmp.ge.f32.partialorder %v5026_v33, 0.0  ;;  %v5156_v53 = vmul.f32 %v7319_v14, %v5026_v33  ;;  %v4361_v50 = vadd.f32 %v4215_v0, %v3827_v30  ;;  %v3149_v41 = vpop.f32.mrf.mxu1  ;;  %v3684_v15 = vpop.f32.mrf.mxu2 }
 0x42d   :  { %v3293_v19 = vadd.f32 %v3149_v41, %v7014_v44 }
 0x42e   :  { %v5220_v48 = vsel %vm5091_vm12, %v5026_v33, %v5156_v53  ;;  %v4895_v46 = vadd.f32 %v4749_v43, %v4361_v50  ;;  %5900 = vmatmul.msk.f32.gmra.mxu0 %vm18_vm1, %v4442_v52  ;;  %v4445_v53 = vld [vmem:[#allocation2 + $0x262] sm:$0xff] }
 0x42f   :  { %5285 = vst.msk [vmem:[%s8038_s4 + $0xb0] sm:$0xff] %vm5262_vm4, %v5220_v48  ;;  %5702 = vmatmul.msk.f32.gmra.mxu1 %vm18_vm1, %v4440_v61  ;;  %v3828_v6 = vadd.f32 %v3684_v15, %v3293_v19  ;;  %v3911_v48 = vld [vmem:[#allocation2 + $0x261] sm:$0xff] }
 0x430   :  { %v4962_v42 = vmul.f32 %v7304_v22, %v4895_v46  ;;  %5834 = vmatmul.msk.f32.gmra.mxu3 %vm18_vm1, %v3908_v59 }
 0x431   :  { %5769 = vmatmul.msk.f32.gmra.mxu2 %vm18_vm1, %v3375_v29  ;;  %v3378_v29 = vld [vmem:[#allocation2 + $0x270] sm:$0xff] }
 0x432   :  { %v5027_v44 = vadd.f32 %v7310_v16, %v4962_v42  ;;  %v7610_v16 = vld [vmem:[%s8036_s2] ss:$0 sm:$0xff] }
 0x433   :  { %v4218_v49 = vpop.f32.mrf.mxu3  ;;  %v4755_v8 = vpop.f32.mrf.mxu0 }
 0x434   :  { %vm5092_vm13 = vcmp.ge.f32.partialorder %v5027_v44, 0.0  ;;  %v5157_v11 = vmul.f32 %v7319_v14, %v5027_v44  ;;  %v4362_v20 = vadd.f32 %v4218_v49, %v3828_v6  ;;  %v3152_v12 = vpop.f32.mrf.mxu1  ;;  %v3687_v34 = vpop.f32.mrf.mxu2 }
 0x435   :  { %v3294_v22 = vadd.f32 %v3152_v12, %v7021_v27 }
 0x436   :  { %v5221_v61 = vsel %vm5092_vm13, %v5027_v44, %v5157_v11  ;;  %v4896_v2 = vadd.f32 %v4752_v62, %v4362_v20  ;;  %5901 = vmatmul.msk.f32.gmra.mxu0 %vm18_vm1, %v4443_v32 }
 0x437   :  { %5286 = vst.msk [vmem:[%s8038_s4 + $0xb8] sm:$0xff] %vm5262_vm4, %v5221_v61  ;;  %5703 = vmatmul.msk.f32.gmra.mxu1 %vm18_vm1, %v4441_v21  ;;  %v3829_v27 = vadd.f32 %v3687_v34, %v3294_v22 }
 0x438   :  { %v4963_v54 = vmul.f32 %v7610_v16, %v4896_v2  ;;  %5835 = vmatmul.msk.f32.gmra.mxu3 %vm18_vm1, %v3909_v28  ;;  %v3912_v28 = vld [vmem:[#allocation2 + $0x271] sm:$0xff] }
 0x439   :  { %5770 = vmatmul.msk.f32.gmra.mxu2 %vm18_vm1, %v3376_v26  ;;  %v3379_v2 = vld [vmem:[#allocation2 + $0x278] sm:$0xff] }
 0x43a   :  { %v5028_v7 = vadd.f32 %v7618_v24, %v4963_v54 }
 0x43b   :  { %v4221_v43 = vpop.f32.mrf.mxu3  ;;  %v4758_v21 = vpop.f32.mrf.mxu0 }
 0x43c   :  { %vm5093_vm14 = vcmp.ge.f32.partialorder %v5028_v7, 0.0  ;;  %v5158_v10 = vmul.f32 %v7319_v14, %v5028_v7  ;;  %v4363_v13 = vadd.f32 %v4221_v43, %v3829_v27  ;;  %v3155_v31 = vpop.f32.mrf.mxu1  ;;  %v3690_v57 = vpop.f32.mrf.mxu2  ;;  %v4447_v43 = vld [vmem:[#allocation2 + $0x27a] sm:$0xff] }
 0x43d   :  { %v3295_v5 = vadd.f32 %v3155_v31, %v7028_v17 }
 0x43e   :  { %v5222_v35 = vsel %vm5093_vm14, %v5028_v7, %v5158_v10  ;;  %v4897_v60 = vadd.f32 %v4755_v8, %v4363_v13  ;;  %5902 = vmatmul.msk.f32.gmra.mxu0 %vm18_vm1, %v4444_v37  ;;  %v4446_v8 = vld [vmem:[#allocation2 + $0x272] sm:$0xff] }
 0x43f   :  { %5287 = vst.msk [vmem:[%s8038_s4 + $0xc0] sm:$0xff] %vm5262_vm4, %v5222_v35  ;;  %5704 = vmatmul.msk.f32.gmra.mxu1 %vm18_vm1, %v4442_v52  ;;  %v3830_v33 = vadd.f32 %v3690_v57, %v3295_v5  ;;  %v3913_v57 = vld [vmem:[#allocation2 + $0x279] sm:$0xff]  ;;  %v3380_v5 = vld [vmem:[#allocation2 + $0x288] sm:$0xff] }
 0x440   :  { %v4964_v30 = vmul.f32 %v7610_v16, %v4897_v60  ;;  %5836 = vmatmul.msk.f32.gmra.mxu3 %vm18_vm1, %v3910_v55 }
 0x441   :  { %5771 = vmatmul.msk.f32.gmra.mxu2 %vm18_vm1, %v3377_v4 }
 0x442   :  { %v5029_v17 = vadd.f32 %v7618_v24, %v4964_v30 }
 0x443   :  { %v4224_v0 = vpop.f32.mrf.mxu3  ;;  %v4761_v62 = vpop.f32.mrf.mxu0 }
 0x444   :  { %vm5094_vm15 = vcmp.ge.f32.partialorder %v5029_v17, 0.0  ;;  %v5159_v50 = vmul.f32 %v7319_v14, %v5029_v17  ;;  %v4364_v41 = vadd.f32 %v4224_v0, %v3830_v33  ;;  %v3158_v15 = vpop.f32.mrf.mxu1  ;;  %v3693_v59 = vpop.f32.mrf.mxu2 }
 0x445   :  { %v3296_v19 = vadd.f32 %v3158_v15, %v7035_v25  ;;  %v3914_v15 = vld [vmem:[#allocation2 + $0x289] sm:$0xff] }
 0x446   :  { %v5223_v52 = vsel %vm5094_vm15, %v5029_v17, %v5159_v50  ;;  %v4898_v46 = vadd.f32 %v4758_v21, %v4364_v41  ;;  %5903 = vmatmul.msk.f32.gmra.mxu0 %vm18_vm1, %v4445_v53  ;;  %v4448_v17 = vld [vmem:[#allocation2 + $0x28a] sm:$0xff] }
 0x447   :  { %5288 = vst.msk [vmem:[%s8038_s4 + $0xc8] sm:$0xff] %vm5262_vm4, %v5223_v52  ;;  %5705 = vmatmul.msk.f32.gmra.mxu1 %vm18_vm1, %v4443_v32  ;;  %v3831_v6 = vadd.f32 %v3693_v59, %v3296_v19  ;;  %v3381_v52 = vld [vmem:[#allocation2 + $0x290] sm:$0xff] }
 0x448   :  { %v4965_v42 = vmul.f32 %v7610_v16, %v4898_v46  ;;  %5837 = vmatmul.msk.f32.gmra.mxu3 %vm18_vm1, %v3911_v48 }
 0x449   :  { %5772 = vmatmul.msk.f32.gmra.mxu2 %vm18_vm1, %v3378_v29 }
 0x44a   :  { %v5030_v25 = vadd.f32 %v7618_v24, %v4965_v42 }
 0x44b   :  { %v4227_v44 = vpop.f32.mrf.mxu3  ;;  %v4764_v49 = vpop.f32.mrf.mxu0 }
 0x44c   :  { %vm5095_vm0 = vcmp.ge.f32.partialorder %v5030_v25, 0.0  ;;  %v5160_v11 = vmul.f32 %v7319_v14, %v5030_v25  ;;  %v4365_v20 = vadd.f32 %v4227_v44, %v3831_v6  ;;  %v3161_v12 = vpop.f32.mrf.mxu1  ;;  %v3696_v34 = vpop.f32.mrf.mxu2  ;;  %v4449_v6 = vld [vmem:[#allocation2 + $0x292] sm:$0xff] }
 0x44d   :  { %v3297_v61 = vadd.f32 %v3161_v12, %v7042_v45 }
 0x44e   :  { %v5224_v32 = vsel %vm5095_vm0, %v5030_v25, %v5160_v11  ;;  %v4899_v22 = vadd.f32 %v4761_v62, %v4365_v20  ;;  %5904 = vmatmul.msk.f32.gmra.mxu0 %vm18_vm1, %v4446_v8  ;;  %v3915_v20 = vld [vmem:[#allocation2 + $0x291] sm:$0xff] }
 0x44f   :  { %5289 = vst.msk [vmem:[%s8038_s4 + $0xd0] sm:$0xff] %vm5262_vm4, %v5224_v32  ;;  %5706 = vmatmul.msk.f32.gmra.mxu1 %vm18_vm1, %v4444_v37  ;;  %v3832_v54 = vadd.f32 %v3696_v34, %v3297_v61 }
 0x450   :  { %v4966_v26 = vmul.f32 %v7610_v16, %v4899_v22  ;;  %5838 = vmatmul.msk.f32.gmra.mxu3 %vm18_vm1, %v3912_v28  ;;  %v3382_v28 = vld [vmem:[#allocation2 + $0x2a0] sm:$0xff] }
 0x451   :  { %5773 = vmatmul.msk.f32.gmra.mxu2 %vm18_vm1, %v3379_v2 }
 0x452   :  { %v5031_v45 = vadd.f32 %v7618_v24, %v4966_v26  ;;  %v4450_v26 = vld [vmem:[#allocation2 + $0x2a2] sm:$0xff] }
 0x453   :  { %v4230_v27 = vpop.f32.mrf.mxu3  ;;  %v4767_v7 = vpop.f32.mrf.mxu0 }
 0x454   :  { %vm5096_vm2 = vcmp.ge.f32.partialorder %v5031_v45, 0.0  ;;  %v5161_v21 = vmul.f32 %v7319_v14, %v5031_v45  ;;  %v4366_v10 = vadd.f32 %v4230_v27, %v3832_v54  ;;  %v3164_v13 = vpop.f32.mrf.mxu1  ;;  %v3699_v31 = vpop.f32.mrf.mxu2 }
 0x455   :  { %v3298_v55 = vadd.f32 %v3164_v13, %v7049_v38 }
 0x456   :  { %v5225_v37 = vsel %vm5096_vm2, %v5031_v45, %v5161_v21  ;;  %v4900_v35 = vadd.f32 %v4764_v49, %v4366_v10  ;;  %5905 = vmatmul.msk.f32.gmra.mxu0 %vm18_vm1, %v4447_v43  ;;  %v3916_v21 = vld [vmem:[#allocation2 + $0x2a1] sm:$0xff] }
 0x457   :  { %5290 = vst.msk [vmem:[%s8038_s4 + $0xd8] sm:$0xff] %vm5262_vm4, %v5225_v37  ;;  %5707 = vmatmul.msk.f32.gmra.mxu1 %vm18_vm1, %v4445_v53  ;;  %v3833_v4 = vadd.f32 %v3699_v31, %v3298_v55  ;;  %v3383_v31 = vld [vmem:[#allocation2 + $0x2a8] sm:$0xff] }
 0x458   :  { %v4967_v60 = vmul.f32 %v7610_v16, %v4900_v35  ;;  %5839 = vmatmul.msk.f32.gmra.mxu3 %vm18_vm1, %v3913_v57 }
 0x459   :  { %5774 = vmatmul.msk.f32.gmra.mxu2 %vm18_vm1, %v3380_v5  ;;  %v4451_v5 = vld [vmem:[#allocation2 + $0x2aa] sm:$0xff] }
 0x45a   :  { %v5032_v38 = vadd.f32 %v7618_v24, %v4967_v60 }
 0x45b   :  { %v4233_v30 = vpop.f32.mrf.mxu3  ;;  %v4770_v33 = vpop.f32.mrf.mxu0 }
 0x45c   :  { %vm5097_vm3 = vcmp.ge.f32.partialorder %v5032_v38, 0.0  ;;  %v5162_v0 = vmul.f32 %v7319_v14, %v5032_v38  ;;  %v4367_v62 = vadd.f32 %v4233_v30, %v3833_v4  ;;  %v3167_v50 = vpop.f32.mrf.mxu1  ;;  %v3702_v41 = vpop.f32.mrf.mxu2 }
 0x45d   :  { %v3299_v59 = vadd.f32 %v3167_v50, %v7056_v47  ;;  %v3384_v50 = vld [vmem:[#allocation2 + $0x2b8] sm:$0xff] }
 0x45e   :  { %v5226_v53 = vsel %vm5097_vm3, %v5032_v38, %v5162_v0  ;;  %v4901_v48 = vadd.f32 %v4767_v7, %v4367_v62  ;;  %5906 = vmatmul.msk.f32.gmra.mxu0 %vm18_vm1, %v4448_v17 }
 0x45f   :  { %5291 = vst.msk [vmem:[%s8038_s4 + $0xe0] sm:$0xff] %vm5262_vm4, %v5226_v53  ;;  %5708 = vmatmul.msk.f32.gmra.mxu1 %vm18_vm1, %v4446_v8  ;;  %v3834_v46 = vadd.f32 %v3702_v41, %v3299_v59 }
 0x460   :  { %v4968_v19 = vmul.f32 %v7610_v16, %v4901_v48  ;;  %5840 = vmatmul.msk.f32.gmra.mxu3 %vm18_vm1, %v3914_v15  ;;  %v4452_v48 = vld [vmem:[#allocation2 + $0x2ba] sm:$0xff] }
 0x461   :  { %5775 = vmatmul.msk.f32.gmra.mxu2 %vm18_vm1, %v3381_v52 }
 0x462   :  { %v5033_v47 = vadd.f32 %v7618_v24, %v4968_v19 }
 0x463   :  { %v4236_v29 = vpop.f32.mrf.mxu3  ;;  %v4773_v42 = vpop.f32.mrf.mxu0 }
 0x464   :  { %vm5098_vm5 = vcmp.ge.f32.partialorder %v5033_v47, 0.0  ;;  %v5163_v25 = vmul.f32 %v7319_v14, %v5033_v47  ;;  %v4368_v44 = vadd.f32 %v4236_v29, %v3834_v46  ;;  %v3170_v49 = vpop.f32.mrf.mxu1  ;;  %v3705_v11 = vpop.f32.mrf.mxu2  ;;  %v3918_v29 = vld [vmem:[#allocation2 + $0x2b9] sm:$0xff] }
 0x465   :  { %v3300_v12 = vadd.f32 %v3170_v49, %v7063_v56 }
 0x466   :  { %v5227_v8 = vsel %vm5098_vm5, %v5033_v47, %v5163_v25  ;;  %v4902_v34 = vadd.f32 %v4770_v33, %v4368_v44  ;;  %5907 = vmatmul.msk.f32.gmra.mxu0 %vm18_vm1, %v4449_v6  ;;  %v3917_v33 = vld [vmem:[#allocation2 + $0x2a9] sm:$0xff]  ;;  %v3385_v44 = vld [vmem:[#allocation2 + $0x2c0] sm:$0xff] }
 0x467   :  { %5292 = vst.msk [vmem:[%s8038_s4 + $0xe8] sm:$0xff] %vm5262_vm4, %v5227_v8  ;;  %5709 = vmatmul.msk.f32.gmra.mxu1 %vm18_vm1, %v4447_v43  ;;  %v3835_v61 = vadd.f32 %v3705_v11, %v3300_v12  ;;  %v4453_v12 = vld [vmem:[#allocation2 + $0x2c2] sm:$0xff] }
 0x468   :  { %v4969_v32 = vmul.f32 %v7610_v16, %v4902_v34  ;;  %5841 = vmatmul.msk.f32.gmra.mxu3 %vm18_vm1, %v3915_v20 }
 0x469   :  { %5776 = vmatmul.msk.f32.gmra.mxu2 %vm18_vm1, %v3382_v28 }
 0x46a   :  { %v5034_v56 = vadd.f32 %v7618_v24, %v4969_v32 }
 0x46b   :  { %v4239_v22 = vpop.f32.mrf.mxu3  ;;  %v4776_v2 = vpop.f32.mrf.mxu0 }
 0x46c   :  { %vm5099_vm6 = vcmp.ge.f32.partialorder %v5034_v56, 0.0  ;;  %v5164_v54 = vmul.f32 %v7319_v14, %v5034_v56  ;;  %v4369_v45 = vadd.f32 %v4239_v22, %v3835_v61  ;;  %v3173_v27 = vpop.f32.mrf.mxu1  ;;  %v3708_v7 = vpop.f32.mrf.mxu2 }
 0x46d   :  { %v3301_v10 = vadd.f32 %v3173_v27, %v7070_v1 }
 0x46e   :  { %v5228_v43 = vsel %vm5099_vm6, %v5034_v56, %v5164_v54  ;;  %v4903_v13 = vadd.f32 %v4773_v42, %v4369_v45  ;;  %5908 = vmatmul.msk.f32.gmra.mxu0 %vm18_vm1, %v4450_v26  ;;  %v3919_v56 = vld [vmem:[#allocation2 + $0x2c1] sm:$0xff]  ;;  %v3386_v54 = vld [vmem:[#allocation2 + $0x2d0] sm:$0xff] }
 0x46f   :  { %5293 = vst.msk [vmem:[%s8038_s4 + $0xf0] sm:$0xff] %vm5262_vm4, %v5228_v43  ;;  %5710 = vmatmul.msk.f32.gmra.mxu1 %vm18_vm1, %v4448_v17  ;;  %v3836_v37 = vadd.f32 %v3708_v7, %v3301_v10  ;;  %v4454_v43 = vld [vmem:[#allocation2 + $0x2d2] sm:$0xff] }
 0x470   :  { %v4970_v57 = vmul.f32 %v7610_v16, %v4903_v13  ;;  %5842 = vmatmul.msk.f32.gmra.mxu3 %vm18_vm1, %v3916_v21 }
 0x471   :  { %5777 = vmatmul.msk.f32.gmra.mxu2 %vm18_vm1, %v3383_v31 }
 0x472   :  { %v5035_v1 = vadd.f32 %v7618_v24, %v4970_v57 }
 0x473   :  { %v4242_v55 = vpop.f32.mrf.mxu3  ;;  %v4779_v35 = vpop.f32.mrf.mxu0 }
 0x474   :  { %vm5100_vm7 = vcmp.ge.f32.partialorder %v5035_v1, 0.0  ;;  %v5165_v60 = vmul.f32 %v7319_v14, %v5035_v1  ;;  %v4370_v4 = vadd.f32 %v4242_v55, %v3836_v37  ;;  %v3176_v38 = vpop.f32.mrf.mxu1  ;;  %v3711_v30 = vpop.f32.mrf.mxu2  ;;  %v3920_v37 = vld [vmem:[#allocation2 + $0x2d1] sm:$0xff] }
 0x475   :  { %v3302_v0 = vadd.f32 %v3176_v38, %v7077_v3 }
 0x476   :  { %v5229_v17 = vsel %vm5100_vm7, %v5035_v1, %v5165_v60  ;;  %v4904_v62 = vadd.f32 %v4776_v2, %v4370_v4  ;;  %5909 = vmatmul.msk.f32.gmra.mxu0 %vm18_vm1, %v4451_v5 }
 0x477   :  { %5294 = vst.msk [vmem:[%s8038_s4 + $0xf8] sm:$0xff] %vm5262_vm4, %v5229_v17  ;;  %5711 = vmatmul.msk.f32.gmra.mxu1 %vm18_vm1, %v4449_v6  ;;  %v3837_v15 = vadd.f32 %v3711_v30, %v3302_v0 }
 0x478   :  { %v4971_v41 = vmul.f32 %v7610_v16, %v4904_v62  ;;  %5843 = vmatmul.msk.f32.gmra.mxu3 %vm18_vm1, %v3917_v33  ;;  %v4455_v33 = vld [vmem:[#allocation2 + $0x2da] sm:$0xff] }
 0x479   :  { %5778 = vmatmul.msk.f32.gmra.mxu2 %vm18_vm1, %v3384_v50 }
 0x47a   :  { %v5036_v3 = vadd.f32 %v7618_v24, %v4971_v41  ;;  %v3921_v41 = vld [vmem:[#allocation2 + $0x2d9] sm:$0xff] }
 0x47b   :  { %v4245_v53 = vpop.f32.mrf.mxu3  ;;  %v4782_v59 = vpop.f32.mrf.mxu0 }
 0x47c   :  { %vm5101_vm8 = vcmp.ge.f32.partialorder %v5036_v3, 0.0  ;;  %v5166_v52 = vmul.f32 %v7319_v14, %v5036_v3  ;;  %v4371_v19 = vadd.f32 %v4245_v53, %v3837_v15  ;;  %v3179_v46 = vpop.f32.mrf.mxu1  ;;  %v3714_v47 = vpop.f32.mrf.mxu2 }
 0x47d   :  { %v3303_v6 = vadd.f32 %v3179_v46, %v7084_v51 }
 0x47e   :  { %v5230_v42 = vsel %vm5101_vm8, %v5036_v3, %v5166_v52  ;;  %v4905_v25 = vadd.f32 %v4779_v35, %v4371_v19  ;;  %5910 = vmatmul.msk.f32.gmra.mxu0 %vm18_vm1, %v4452_v48 }
 0x47f   :  { %5295 = vst.msk [vmem:[%s8038_s4 + $0x100] sm:$0xff] %vm5262_vm4, %v5230_v42  ;;  %5712 = vmatmul.msk.f32.gmra.mxu1 %vm18_vm1, %v4450_v26  ;;  %v3838_v11 = vadd.f32 %v3714_v47, %v3303_v6  ;;  %v4456_v47 = vld [vmem:[#allocation2 + $0x2ea] sm:$0xff] }
 0x480   :  { %v4972_v49 = vmul.f32 %v7610_v16, %v4905_v25  ;;  %5844 = vmatmul.msk.f32.gmra.mxu3 %vm18_vm1, %v3918_v29 }
 0x481   :  { %5779 = vmatmul.msk.f32.gmra.mxu2 %vm18_vm1, %v3385_v44  ;;  %v3922_v44 = vld [vmem:[#allocation2 + $0x2e9] sm:$0xff] }
 0x482   :  { %v5037_v51 = vadd.f32 %v7618_v24, %v4972_v49 }
 0x483   :  { %v4248_v20 = vpop.f32.mrf.mxu3  ;;  %v4785_v8 = vpop.f32.mrf.mxu0 }
 0x484   :  { %vm5102_vm9 = vcmp.ge.f32.partialorder %v5037_v51, 0.0  ;;  %v5167_v34 = vmul.f32 %v7319_v14, %v5037_v51  ;;  %v4372_v28 = vadd.f32 %v4248_v20, %v3838_v11  ;;  %v3182_v32 = vpop.f32.mrf.mxu1  ;;  %v3717_v61 = vpop.f32.mrf.mxu2  ;;  %v3389_v20 = vld [vmem:[#allocation2 + $0x2f0] sm:$0xff] }
 0x485   :  { %v3304_v2 = vadd.f32 %v3182_v32, %v7091_v23  ;;  %v4457_v32 = vld [vmem:[#allocation2 + $0x2f2] sm:$0xff] }
 0x486   :  { %v5231_v22 = vsel %vm5102_vm9, %v5037_v51, %v5167_v34  ;;  %v4906_v26 = vadd.f32 %v4782_v59, %v4372_v28  ;;  %5911 = vmatmul.msk.f32.gmra.mxu0 %vm18_vm1, %v4453_v12  ;;  %v3388_v59 = vld [vmem:[#allocation2 + $0x2e8] sm:$0xff] }
 0x487   :  { %5296 = vst.msk [vmem:[%s8038_s4 + $0x108] sm:$0xff] %vm5262_vm4, %v5231_v22  ;;  %5713 = vmatmul.msk.f32.gmra.mxu1 %vm18_vm1, %v4451_v5  ;;  %v3839_v27 = vadd.f32 %v3717_v61, %v3304_v2  ;;  %v3387_v5 = vld [vmem:[#allocation2 + $0x2d8] sm:$0xff] }
 0x488   :  { %v4973_v45 = vmul.f32 %v7610_v16, %v4906_v26  ;;  %5845 = vmatmul.msk.f32.gmra.mxu3 %vm18_vm1, %v3919_v56  ;;  %v3923_v26 = vld [vmem:[#allocation2 + $0x2f1] sm:$0xff] }
 0x489   :  { %5780 = vmatmul.msk.f32.gmra.mxu2 %vm18_vm1, %v3386_v54 }
 0x48a   :  { %v5038_v23 = vadd.f32 %v7618_v24, %v4973_v45 }
 0x48b   :  { %v4251_v7 = vpop.f32.mrf.mxu3  ;;  %v4788_v21 = vpop.f32.mrf.mxu0 }
 0x48c   :  { %vm5103_vm10 = vcmp.ge.f32.partialorder %v5038_v23, 0.0  ;;  %v5168_v10 = vmul.f32 %v7319_v14, %v5038_v23  ;;  %v4373_v13 = vadd.f32 %v4251_v7, %v3839_v27  ;;  %v3185_v31 = vpop.f32.mrf.mxu1  ;;  %v3720_v57 = vpop.f32.mrf.mxu2 }
 0x48d   :  { %v3305_v55 = vadd.f32 %v3185_v31, %v7098_v18 }
 0x48e   :  { %v5232_v1 = vsel %vm5103_vm10, %v5038_v23, %v5168_v10  ;;  %v4907_v35 = vadd.f32 %v4785_v8, %v4373_v13  ;;  %5912 = vmatmul.msk.f32.gmra.mxu0 %vm18_vm1, %v4454_v43  ;;  %v3390_v23 = vld [vmem:[#allocation2 + $0x300] sm:$0xff] }
 0x48f   :  { %5297 = vst.msk [vmem:[%s8038_s4 + $0x110] sm:$0xff] %vm5262_vm4, %v5232_v1  ;;  %5714 = vmatmul.msk.f32.gmra.mxu1 %vm18_vm1, %v4452_v48  ;;  %v3840_v4 = vadd.f32 %v3720_v57, %v3305_v55  ;;  %v4458_v13 = vld [vmem:[#allocation2 + $0x302] sm:$0xff] }
 0x490   :  { %v4974_v60 = vmul.f32 %v7610_v16, %v4907_v35  ;;  %5846 = vmatmul.msk.f32.gmra.mxu3 %vm18_vm1, %v3920_v37  ;;  %v3924_v55 = vld [vmem:[#allocation2 + $0x301] sm:$0xff] }
 0x491   :  { %5781 = vmatmul.msk.f32.gmra.mxu2 %vm18_vm1, %v3387_v5 }
 0x492   :  { %v5039_v18 = vadd.f32 %v7618_v24, %v4974_v60 }
 0x493   :  { %v4254_v38 = vpop.f32.mrf.mxu3  ;;  %v4791_v30 = vpop.f32.mrf.mxu0 }
 0x494   :  { %vm5104_vm11 = vcmp.ge.f32.partialorder %v5039_v18, 0.0  ;;  %v5169_v17 = vmul.f32 %v7319_v14, %v5039_v18  ;;  %v4374_v0 = vadd.f32 %v4254_v38, %v3840_v4  ;;  %v3188_v62 = vpop.f32.mrf.mxu1  ;;  %v3723_v50 = vpop.f32.mrf.mxu2  ;;  %v3391_v4 = vld [vmem:[#allocation2 + $0x308] sm:$0xff] }
 0x495   :  { %v3306_v3 = vadd.f32 %v3188_v62, %v7105_v39 }
 0x496   :  { %v5233_v15 = vsel %vm5104_vm11, %v5039_v18, %v5169_v17  ;;  %v4908_v53 = vadd.f32 %v4788_v21, %v4374_v0  ;;  %5913 = vmatmul.msk.f32.gmra.mxu0 %vm18_vm1, %v4455_v33  ;;  %v4459_v17 = vld [vmem:[#allocation2 + $0x30a] sm:$0xff] }
 0x497   :  { %5298 = vst.msk [vmem:[%s8038_s4 + $0x118] sm:$0xff] %vm5262_vm4, %v5233_v15  ;;  %5715 = vmatmul.msk.f32.gmra.mxu1 %vm18_vm1, %v4453_v12  ;;  %v3841_v52 = vadd.f32 %v3723_v50, %v3306_v3  ;;  %v3925_v15 = vld [vmem:[#allocation2 + $0x309] sm:$0xff] }
 0x498   :  { %v4975_v48 = vmul.f32 %v7610_v16, %v4908_v53  ;;  %5847 = vmatmul.msk.f32.gmra.mxu3 %vm18_vm1, %v3921_v41 }
 0x499   :  { %5782 = vmatmul.msk.f32.gmra.mxu2 %vm18_vm1, %v3388_v59 }
 0x49a   :  { %v5040_v39 = vadd.f32 %v7618_v24, %v4975_v48  ;;  %v3392_v48 = vld [vmem:[#allocation2 + $0x318] sm:$0xff] }
 0x49b   :  { %v4257_v19 = vpop.f32.mrf.mxu3  ;;  %v4794_v46 = vpop.f32.mrf.mxu0 }
 0x49c   :  { %vm5105_vm12 = vcmp.ge.f32.partialorder %v5040_v39, 0.0  ;;  %v5170_v29 = vmul.f32 %v7319_v14, %v5040_v39  ;;  %v4375_v42 = vadd.f32 %v4257_v19, %v3841_v52  ;;  %v3191_v6 = vpop.f32.mrf.mxu1  ;;  %v3726_v25 = vpop.f32.mrf.mxu2 }
 0x49d   :  { %v3307_v11 = vadd.f32 %v3191_v6, %v7112_v36 }
 0x49e   :  { %v5234_v49 = vsel %vm5105_vm12, %v5040_v39, %v5170_v29  ;;  %v4909_v51 = vadd.f32 %v4791_v30, %v4375_v42  ;;  %5914 = vmatmul.msk.f32.gmra.mxu0 %vm18_vm1, %v4456_v47 }
 0x49f   :  { %5299 = vst.msk [vmem:[%s8038_s4 + $0x120] sm:$0xff] %vm5262_vm4, %v5234_v49  ;;  %5716 = vmatmul.msk.f32.gmra.mxu1 %vm18_vm1, %v4454_v43  ;;  %v3842_v12 = vadd.f32 %v3726_v25, %v3307_v11 }
 0x4a0   :  { %v4976_v8 = vmul.f32 %v7610_v16, %v4909_v51  ;;  %5848 = vmatmul.msk.f32.gmra.mxu3 %vm18_vm1, %v3922_v44  ;;  %v3926_v44 = vld [vmem:[#allocation2 + $0x319] sm:$0xff] }
 0x4a1   :  { %5783 = vmatmul.msk.f32.gmra.mxu2 %vm18_vm1, %v3389_v20  ;;  %v3393_v20 = vld [vmem:[#allocation2 + $0x320] sm:$0xff] }
 0x4a2   :  { %v5041_v36 = vadd.f32 %v7618_v24, %v4976_v8 }
 0x4a3   :  { %v4260_v34 = vpop.f32.mrf.mxu3  ;;  %v4797_v28 = vpop.f32.mrf.mxu0 }
 0x4a4   :  { %vm5106_vm13 = vcmp.ge.f32.partialorder %v5041_v36, 0.0  ;;  %v5171_v61 = vmul.f32 %v7319_v14, %v5041_v36  ;;  %v4376_v56 = vadd.f32 %v4260_v34, %v3842_v12  ;;  %v3194_v22 = vpop.f32.mrf.mxu1  ;;  %v3729_v2 = vpop.f32.mrf.mxu2 }
 0x4a5   :  { %v3308_v45 = vadd.f32 %v3194_v22, %v7119_v63 }
 0x4a6   :  { %v5235_v54 = vsel %vm5106_vm13, %v5041_v36, %v5171_v61  ;;  %v4910_v27 = vadd.f32 %v4794_v46, %v4376_v56  ;;  %5915 = vmatmul.msk.f32.gmra.mxu0 %vm18_vm1, %v4457_v32 }
 0x4a7   :  { %5300 = vst.msk [vmem:[%s8038_s4 + $0x128] sm:$0xff] %vm5262_vm4, %v5235_v54  ;;  %5717 = vmatmul.msk.f32.gmra.mxu1 %vm18_vm1, %v4455_v33  ;;  %v3843_v21 = vadd.f32 %v3729_v2, %v3308_v45  ;;  %v3927_v2 = vld [vmem:[#allocation2 + $0x321] sm:$0xff]  ;;  %v8120_v54 = vld [vmem:[#allocation6_spill] sm:$0xff] }
 0x4a8   :  { %v4977_v7 = vmul.f32 %v7610_v16, %v4910_v27  ;;  %5849 = vmatmul.msk.f32.gmra.mxu3 %vm18_vm1, %v3923_v26 }
 0x4a9   :  { %5784 = vmatmul.msk.f32.gmra.mxu2 %vm18_vm1, %v3390_v23  ;;  %v3394_v23 = vld [vmem:[#allocation2 + $0x330] sm:$0xff] }
 0x4aa   :  { %v5042_v63 = vadd.f32 %v7618_v24, %v4977_v7 }
 0x4ab   :  { %v4263_v43 = vpop.f32.mrf.mxu3  ;;  %v4800_v10 = vpop.f32.mrf.mxu0 }
 0x4ac   :  { %vm5107_vm14 = vcmp.ge.f32.partialorder %v5042_v63, 0.0  ;;  %v5172_v31 = vmul.f32 %v7319_v14, %v5042_v63  ;;  %v4377_v57 = vadd.f32 %v4263_v43, %v3843_v21  ;;  %v3197_v37 = vpop.f32.mrf.mxu1  ;;  %v3732_v1 = vpop.f32.mrf.mxu2 }
 0x4ad   :  { %v3309_v5 = vadd.f32 %v3197_v37, %v7126_v9 }
 0x4ae   :  { %v5236_v35 = vsel %vm5107_vm14, %v5042_v63, %v5172_v31  ;;  %v4911_v60 = vadd.f32 %v4797_v28, %v4377_v57  ;;  %5916 = vmatmul.msk.f32.gmra.mxu0 %vm18_vm1, %v4458_v13  ;;  %v4461_v28 = vld [vmem:[#allocation2 + $0x322] sm:$0xff] }
 0x4af   :  { %5301 = vst.msk [vmem:[%s8038_s4 + $0x130] sm:$0xff] %vm5262_vm4, %v5236_v35  ;;  %5718 = vmatmul.msk.f32.gmra.mxu1 %vm18_vm1, %v4456_v47  ;;  %v3844_v38 = vadd.f32 %v3732_v1, %v3309_v5  ;;  %v4460_v47 = vld [vmem:[#allocation2 + $0x31a] sm:$0xff] }
 0x4b0   :  { %v4978_v18 = vmul.f32 %v7610_v16, %v4911_v60  ;;  %5850 = vmatmul.msk.f32.gmra.mxu3 %vm18_vm1, %v3924_v55  ;;  %v3928_v55 = vld [vmem:[#allocation2 + $0x331] sm:$0xff]  ;;  %v8121_v5 = vld [vmem:[#allocation8_spill] sm:$0xff] }
 0x4b1   :  { %5785 = vmatmul.msk.f32.gmra.mxu2 %vm18_vm1, %v3391_v4 }
 0x4b2   :  { %v5043_v9 = vadd.f32 %v7618_v24, %v4978_v18  ;;  %v3395_v18 = vld [vmem:[#allocation2 + $0x338] sm:$0xff] }
 0x4b3   :  { %v4266_v30 = vpop.f32.mrf.mxu3  ;;  %v4803_v33 = vpop.f32.mrf.mxu0 }
 0x4b4   :  { %vm5108_vm15 = vcmp.ge.f32.partialorder %v5043_v9, 0.0  ;;  %v5173_v0 = vmul.f32 %v7319_v14, %v5043_v9  ;;  %v4378_v62 = vadd.f32 %v4266_v30, %v3844_v38  ;;  %v3200_v50 = vpop.f32.mrf.mxu1  ;;  %v3735_v41 = vpop.f32.mrf.mxu2 }
 0x4b5   :  { %v3310_v53 = vadd.f32 %v3200_v50, %v7137_v40 }
 0x4b6   :  { %v5237_v3 = vsel %vm5108_vm15, %v5043_v9, %v5173_v0  ;;  %v4912_v59 = vadd.f32 %v4800_v10, %v4378_v62  ;;  %5917 = vmatmul.msk.f32.gmra.mxu0 %vm18_vm1, %v4459_v17  ;;  %v4463_v0 = vld [vmem:[#allocation2 + $0x33a] sm:$0xff] }
 0x4b7   :  { %5302 = vst.msk [vmem:[%s8038_s4 + $0x138] sm:$0xff] %vm5262_vm4, %v5237_v3  ;;  %5719 = vmatmul.msk.f32.gmra.mxu1 %vm18_vm1, %v4457_v32  ;;  %v3845_v39 = vadd.f32 %v3735_v41, %v3310_v53  ;;  %v3929_v3 = vld [vmem:[#allocation2 + $0x339] sm:$0xff] }
 0x4b8   :  { %v4979_v52 = vmul.f32 %v7610_v16, %v4912_v59  ;;  %5851 = vmatmul.msk.f32.gmra.mxu3 %vm18_vm1, %v3925_v15  ;;  %v8122_v59 = vld [vmem:[#allocation10_spill] sm:$0xff] }
 0x4b9   :  { %5786 = vmatmul.msk.f32.gmra.mxu2 %vm18_vm1, %v3392_v48 }
 0x4ba   :  { %v5044_v40 = vadd.f32 %v7618_v24, %v4979_v52 }
 0x4bb   :  { %v4269_v19 = vpop.f32.mrf.mxu3  ;;  %v4806_v46 = vpop.f32.mrf.mxu0 }
 0x4bc   :  { %vm5109_vm0 = vcmp.ge.f32.partialorder %v5044_v40, 0.0  ;;  %v5174_v29 = vmul.f32 %v7319_v14, %v5044_v40  ;;  %v4379_v42 = vadd.f32 %v4269_v19, %v3845_v39  ;;  %v3203_v6 = vpop.f32.mrf.mxu1  ;;  %v3738_v25 = vpop.f32.mrf.mxu2  ;;  %v3396_v39 = vld [vmem:[#allocation2 + $0x348] sm:$0xff] }
 0x4bd   :  { %v3311_v11 = vadd.f32 %v3203_v6, %v7148_v58 }
 0x4be   :  { %v5238_v49 = vsel %vm5109_vm0, %v5044_v40, %v5174_v29  ;;  %v4913_v51 = vadd.f32 %v4803_v33, %v4379_v42  ;;  %5918 = vmatmul.msk.f32.gmra.mxu0 %vm18_vm1, %v4460_v47  ;;  %v4464_v42 = vld [vmem:[#allocation2 + $0x34a] sm:$0xff] }
 0x4bf   :  { %5303 = vst.msk [vmem:[%s8038_s4 + $0x140] sm:$0xff] %vm5262_vm4, %v5238_v49  ;;  %5720 = vmatmul.msk.f32.gmra.mxu1 %vm18_vm1, %v4458_v13  ;;  %v3846_v12 = vadd.f32 %v3738_v25, %v3311_v11  ;;  %v4462_v13 = vld [vmem:[#allocation2 + $0x332] sm:$0xff]  ;;  %v3930_v11 = vld [vmem:[#allocation2 + $0x349] sm:$0xff] }
 0x4c0   :  { %v4980_v8 = vmul.f32 %v7610_v16, %v4913_v51  ;;  %5852 = vmatmul.msk.f32.gmra.mxu3 %vm18_vm1, %v3926_v44 }
 0x4c1   :  { %5787 = vmatmul.msk.f32.gmra.mxu2 %vm18_vm1, %v3393_v20  ;;  %v8123_v20 = vld [vmem:[#allocation12_spill] sm:$0xff] }
 0x4c2   :  { %v5045_v58 = vadd.f32 %v7618_v24, %v4980_v8 }
 0x4c3   :  { %v4272_v36 = vpop.f32.mrf.mxu3  ;;  %v4809_v34 = vpop.f32.mrf.mxu0 }
 0x4c4   :  { %vm5110_vm2 = vcmp.ge.f32.partialorder %v5045_v58, 0.0  ;;  %v5175_v32 = vmul.f32 %v7319_v14, %v5045_v58  ;;  %v4380_v61 = vadd.f32 %v4272_v36, %v3846_v12  ;;  %v3206_v56 = vpop.f32.mrf.mxu1  ;;  %v3741_v22 = vpop.f32.mrf.mxu2 }
 0x4c5   :  { %v3312_v45 = vadd.f32 %v3206_v56, %v8120_v54  ;;  %v4465_v56 = vld [vmem:[#allocation2 + $0x352] sm:$0xff] }
 0x4c6   :  { %v5239_v26 = vsel %vm5110_vm2, %v5045_v58, %v5175_v32  ;;  %v4914_v27 = vadd.f32 %v4806_v46, %v4380_v61  ;;  %5919 = vmatmul.msk.f32.gmra.mxu0 %vm18_vm1, %v4461_v28  ;;  %v3397_v58 = vld [vmem:[#allocation2 + $0x350] sm:$0xff] }
 0x4c7   :  { %5304 = vst.msk [vmem:[%s8038_s4 + $0x148] sm:$0xff] %vm5262_vm4, %v5239_v26  ;;  %5721 = vmatmul.msk.f32.gmra.mxu1 %vm18_vm1, %v4459_v17  ;;  %v3847_v21 = vadd.f32 %v3741_v22, %v3312_v45  ;;  %v3931_v45 = vld [vmem:[#allocation2 + $0x351] sm:$0xff] }
 0x4c8   :  { %v4981_v7 = vmul.f32 %v7610_v16, %v4914_v27  ;;  %5853 = vmatmul.msk.f32.gmra.mxu3 %vm18_vm1, %v3927_v2 }
 0x4c9   :  { %5788 = vmatmul.msk.f32.gmra.mxu2 %vm18_vm1, %v3394_v23  ;;  %v8124_v23 = vld [vmem:[#allocation14_spill] sm:$0xff] }
 0x4ca   :  { %v5046_v63 = vadd.f32 %v7618_v24, %v4981_v7 }
 0x4cb   :  { %v4275_v43 = vpop.f32.mrf.mxu3  ;;  %v4812_v10 = vpop.f32.mrf.mxu0 }
 0x4cc   :  { %vm5111_vm3 = vcmp.ge.f32.partialorder %v5046_v63, 0.0  ;;  %v5176_v31 = vmul.f32 %v7319_v14, %v5046_v63  ;;  %v4381_v57 = vadd.f32 %v4275_v43, %v3847_v21  ;;  %v3209_v37 = vpop.f32.mrf.mxu1  ;;  %v3744_v1 = vpop.f32.mrf.mxu2 }
 0x4cd   :  { %v3313_v60 = vadd.f32 %v3209_v37, %v8121_v5  ;;  %v8125_v5 = vld [vmem:[#allocation16_spill] sm:$0xff] }
 0x4ce   :  { %v5240_v35 = vsel %vm5111_vm3, %v5046_v63, %v5176_v31  ;;  %v4915_v4 = vadd.f32 %v4809_v34, %v4381_v57  ;;  %5920 = vmatmul.msk.f32.gmra.mxu0 %vm18_vm1, %v4462_v13 }
 0x4cf   :  { %5305 = vst.msk [vmem:[%s8038_s4 + $0x150] sm:$0xff] %vm5262_vm4, %v5240_v35  ;;  %5722 = vmatmul.msk.f32.gmra.mxu1 %vm18_vm1, %v4460_v47  ;;  %v3848_v9 = vadd.f32 %v3744_v1, %v3313_v60 }
 0x4d0   :  { %v4982_v38 = vmul.f32 %v7610_v16, %v4915_v4  ;;  %5854 = vmatmul.msk.f32.gmra.mxu3 %vm18_vm1, %v3928_v55 }
 0x4d1   :  { %5789 = vmatmul.msk.f32.gmra.mxu2 %vm18_vm1, %v3395_v18 }
 0x4d2   :  { %v5047_v30 = vadd.f32 %v7618_v24, %v4982_v38 }
 0x4d3   :  { %v4278_v33 = vpop.f32.mrf.mxu3  ;;  %v4815_v17 = vpop.f32.mrf.mxu0 }
 0x4d4   :  { %vm5112_vm5 = vcmp.ge.f32.partialorder %v5047_v30, 0.0  ;;  %v5177_v62 = vmul.f32 %v7319_v14, %v5047_v30  ;;  %v4382_v50 = vadd.f32 %v4278_v33, %v3848_v9  ;;  %v3212_v41 = vpop.f32.mrf.mxu1  ;;  %v3747_v15 = vpop.f32.mrf.mxu2 }
 0x4d5   :  { %v3314_v48 = vadd.f32 %v3212_v41, %v8122_v59 }
 0x4d6   :  { %v5241_v53 = vsel %vm5112_vm5, %v5047_v30, %v5177_v62  ;;  %v4916_v52 = vadd.f32 %v4812_v10, %v4382_v50  ;;  %5921 = vmatmul.msk.f32.gmra.mxu0 %vm18_vm1, %v4463_v0 }
 0x4d7   :  { %5306 = vst.msk [vmem:[%s8038_s4 + $0x158] sm:$0xff] %vm5262_vm4, %v5241_v53  ;;  %5723 = vmatmul.msk.f32.gmra.mxu1 %vm18_vm1, %v4461_v28  ;;  %v3849_v19 = vadd.f32 %v3747_v15, %v3314_v48  ;;  %v8126_v15 = vld [vmem:[#allocation18_spill] sm:$0xff] }
 0x4d8   :  { %v4983_v40 = vmul.f32 %v7610_v16, %v4916_v52  ;;  %5855 = vmatmul.msk.f32.gmra.mxu3 %vm18_vm1, %v3929_v3 }
 0x4d9   :  { %5790 = vmatmul.msk.f32.gmra.mxu2 %vm18_vm1, %v3396_v39 }
 0x4da   :  { %v5048_v46 = vadd.f32 %v7618_v24, %v4983_v40 }
 0x4db   :  { %v4281_v47 = vpop.f32.mrf.mxu3  ;;  %v4818_v29 = vpop.f32.mrf.mxu0 }
 0x4dc   :  { %vm5113_vm6 = vcmp.ge.f32.partialorder %v5048_v46, 0.0  ;;  %v5178_v6 = vmul.f32 %v7319_v14, %v5048_v46  ;;  %v4383_v25 = vadd.f32 %v4281_v47, %v3849_v19  ;;  %v3215_v44 = vpop.f32.mrf.mxu1  ;;  %v3750_v49 = vpop.f32.mrf.mxu2 }
 0x4dd   :  { %v3315_v8 = vadd.f32 %v3215_v44, %v8123_v20 }
 0x4de   :  { %v5242_v51 = vsel %vm5113_vm6, %v5048_v46, %v5178_v6  ;;  %v4917_v12 = vadd.f32 %v4815_v17, %v4383_v25  ;;  %5922 = vmatmul.msk.f32.gmra.mxu0 %vm18_vm1, %v4464_v42  ;;  %v8127_v6 = vld [vmem:[#allocation20_spill] sm:$0xff] }
 0x4df   :  { %5307 = vst.msk [vmem:[%s8038_s4 + $0x160] sm:$0xff] %vm5262_vm4, %v5242_v51  ;;  %5724 = vmatmul.msk.f32.gmra.mxu1 %vm18_vm1, %v4462_v13  ;;  %v3850_v34 = vadd.f32 %v3750_v49, %v3315_v8 }
 0x4e0   :  { %v4984_v36 = vmul.f32 %v7610_v16, %v4917_v12  ;;  %5856 = vmatmul.msk.f32.gmra.mxu3 %vm18_vm1, %v3930_v11 }
 0x4e1   :  { %5791 = vmatmul.msk.f32.gmra.mxu2 %vm18_vm1, %v3397_v58 }
 0x4e2   :  { %v5049_v28 = vadd.f32 %v7618_v24, %v4984_v36 }
 0x4e3   :  { %v4284_v32 = vpop.f32.mrf.mxu3  ;;  %v4821_v61 = vpop.f32.mrf.mxu0 }
 0x4e4   :  { %vm5114_vm7 = vcmp.ge.f32.partialorder %v5049_v28, 0.0  ;;  %v5179_v22 = vmul.f32 %v7319_v14, %v5049_v28  ;;  %v4384_v2 = vadd.f32 %v4284_v32, %v3850_v34  ;;  %v3218_v26 = vpop.f32.mrf.mxu1  ;;  %v3753_v54 = vpop.f32.mrf.mxu2  ;;  %v8128_v32 = vld [vmem:[#allocation22_spill] sm:$0xff] }
 0x4e5   :  { %v3316_v7 = vadd.f32 %v3218_v26, %v8124_v23 }
 0x4e6   :  { %v5243_v27 = vsel %vm5114_vm7, %v5049_v28, %v5179_v22  ;;  %v4918_v21 = vadd.f32 %v4818_v29, %v4384_v2  ;;  %5923 = vmatmul.msk.f32.gmra.mxu0 %vm18_vm1, %v4465_v56  ;;  %v7923_v2 = vld [vmem:[%s8036_s2 + $0x1] ss:$0 sm:$0xff] }
 0x4e7   :  { %5308 = vst.msk [vmem:[%s8038_s4 + $0x168] sm:$0xff] %vm5262_vm4, %v5243_v27  ;;  %5725 = vmatmul.msk.f32.gmra.mxu1 %vm18_vm1, %v4463_v0  ;;  %v3851_v43 = vadd.f32 %v3753_v54, %v3316_v7 }
 0x4e8   :  { %v4985_v63 = vmul.f32 %v7610_v16, %v4918_v21  ;;  %5857 = vmatmul.msk.f32.gmra.mxu3 %vm18_vm1, %v3931_v45 }
 0x4ea   :  { %v5050_v10 = vadd.f32 %v7618_v24, %v4985_v63 }
 0x4eb   :  { %v4287_v13 = vpop.f32.mrf.mxu3  ;;  %v4824_v31 = vpop.f32.mrf.mxu0 }
 0x4ec   :  { %vm5115_vm8 = vcmp.ge.f32.partialorder %v5050_v10, 0.0  ;;  %v5180_v57 = vmul.f32 %v7319_v14, %v5050_v10  ;;  %v4385_v37 = vadd.f32 %v4287_v13, %v3851_v43  ;;  %v3221_v1 = vpop.f32.mrf.mxu1  ;;  %v3756_v55 = vpop.f32.mrf.mxu2  ;;  %v8129_v43 = vld [vmem:[#allocation24_spill] sm:$0xff] }
 0x4ed   :  { %v3317_v60 = vadd.f32 %v3221_v1, %v8125_v5 }
 0x4ee   :  { %v5244_v35 = vsel %vm5115_vm8, %v5050_v10, %v5180_v57  ;;  %v4919_v4 = vadd.f32 %v4821_v61, %v4385_v37 }
 0x4ef   :  { %5309 = vst.msk [vmem:[%s8038_s4 + $0x170] sm:$0xff] %vm5262_vm4, %v5244_v35  ;;  %v3852_v38 = vadd.f32 %v3756_v55, %v3317_v60 }
 0x4f0   :  { %v4986_v18 = vmul.f32 %v7610_v16, %v4919_v4 }
 0x4f2   :  { %v5051_v9 = vadd.f32 %v7618_v24, %v4986_v18 }
 0x4f3   :  { %v4290_v30 = vpop.f32.mrf.mxu3  ;;  %v4827_v33 = vpop.f32.mrf.mxu0 }
 0x4f4   :  { %vm5116_vm1 = vcmp.ge.f32.partialorder %v5051_v9, 0.0  ;;  %v5181_v17 = vmul.f32 %v7319_v14, %v5051_v9  ;;  %v4386_v0 = vadd.f32 %v4290_v30, %v3852_v38  ;;  %v3224_v62 = vpop.f32.mrf.mxu1  ;;  %v3759_v50 = vpop.f32.mrf.mxu2  ;;  %v8130_v38 = vld [vmem:[#allocation26_spill] sm:$0xff] }
 0x4f5   :  { %v3318_v3 = vadd.f32 %v3224_v62, %v8126_v15 }
 0x4f6   :  { %v5245_v41 = vsel %vm5116_vm1, %v5051_v9, %v5181_v17  ;;  %v4920_v53 = vadd.f32 %v4824_v31, %v4386_v0 }
 0x4f7   :  { %5310 = vst.msk [vmem:[%s8038_s4 + $0x178] sm:$0xff] %vm5262_vm4, %v5245_v41  ;;  %v3853_v48 = vadd.f32 %v3759_v50, %v3318_v3 }
 0x4f8   :  { %v4987_v59 = vmul.f32 %v7610_v16, %v4920_v53 }
 0x4fa   :  { %v5052_v52 = vadd.f32 %v7618_v24, %v4987_v59 }
 0x4fb   :  { %v4293_v39 = vpop.f32.mrf.mxu3  ;;  %v4830_v40 = vpop.f32.mrf.mxu0 }
 0x4fc   :  { %vm5117_vm9 = vcmp.ge.f32.partialorder %v5052_v52, 0.0  ;;  %v5182_v19 = vmul.f32 %v7319_v14, %v5052_v52  ;;  %v4387_v46 = vadd.f32 %v4293_v39, %v3853_v48  ;;  %v3227_v47 = vpop.f32.mrf.mxu1  ;;  %v3762_v29 = vpop.f32.mrf.mxu2  ;;  %v8131_v48 = vld [vmem:[#allocation28_spill] sm:$0xff] }
 0x4fd   :  { %v3319_v25 = vadd.f32 %v3227_v47, %v8127_v6 }
 0x4fe   :  { %v5246_v42 = vsel %vm5117_vm9, %v5052_v52, %v5182_v19  ;;  %v4921_v44 = vadd.f32 %v4827_v33, %v4387_v46 }
 0x4ff   :  { %5311 = vst.msk [vmem:[%s8038_s4 + $0x180] sm:$0xff] %vm5262_vm4, %v5246_v42  ;;  %v3854_v11 = vadd.f32 %v3762_v29, %v3319_v25 }
 0x500   :  { %v4988_v49 = vmul.f32 %v7610_v16, %v4921_v44  ;;  %v7917_v16 = vld [vmem:[%s8036_s2] ss:$0 sm:$0xff] }
 0x502   :  { %v5053_v51 = vadd.f32 %v7618_v24, %v4988_v49 }
 0x503   :  { %v4296_v20 = vpop.f32.mrf.mxu3  ;;  %v4833_v8 = vpop.f32.mrf.mxu0 }
 0x504   :  { %vm5118_vm10 = vcmp.ge.f32.partialorder %v5053_v51, 0.0  ;;  %v5183_v12 = vmul.f32 %v7319_v14, %v5053_v51  ;;  %v4388_v58 = vadd.f32 %v4296_v20, %v3854_v11  ;;  %v3230_v36 = vpop.f32.mrf.mxu1  ;;  %v3765_v34 = vpop.f32.mrf.mxu2  ;;  %v8132_v11 = vld [vmem:[#allocation30_spill] sm:$0xff] }
 0x505   :  { %v3320_v61 = vadd.f32 %v3230_v36, %v8128_v32 }
 0x506   :  { %v5247_v28 = vsel %vm5118_vm10, %v5053_v51, %v5183_v12  ;;  %v4922_v56 = vadd.f32 %v4830_v40, %v4388_v58 }
 0x507   :  { %5312 = vst.msk [vmem:[%s8038_s4 + $0x188] sm:$0xff] %vm5262_vm4, %v5247_v28  ;;  %v3855_v22 = vadd.f32 %v3765_v34, %v3320_v61 }
 0x508   :  { %v4989_v24 = vmul.f32 %v7917_v16, %v4922_v56 }
 0x50a   :  { %v5054_v26 = vadd.f32 %v7923_v2, %v4989_v24 }
 0x50b   :  { %v4299_v54 = vpop.f32.mrf.mxu3  ;;  %v4836_v45 = vpop.f32.mrf.mxu0 }
 0x50c   :  { %vm5119_vm11 = vcmp.ge.f32.partialorder %v5054_v26, 0.0  ;;  %v5184_v27 = vmul.f32 %v7319_v14, %v5054_v26  ;;  %v4389_v23 = vadd.f32 %v4299_v54, %v3855_v22  ;;  %v3233_v7 = vpop.f32.mrf.mxu1  ;;  %v3768_v21 = vpop.f32.mrf.mxu2  ;;  %v8133_v22 = vld [vmem:[#allocation32_spill] sm:$0xff] }
 0x50d   :  { %v3321_v10 = vadd.f32 %v3233_v7, %v8129_v43 }
 0x50e   :  { %v5248_v63 = vsel %vm5119_vm11, %v5054_v26, %v5184_v27  ;;  %v4923_v13 = vadd.f32 %v4833_v8, %v4389_v23 }
 0x50f   :  { %5313 = vst.msk [vmem:[%s8038_s4 + $0x190] sm:$0xff] %vm5262_vm4, %v5248_v63  ;;  %v3856_v57 = vadd.f32 %v3768_v21, %v3321_v10 }
 0x510   :  { %v4990_v31 = vmul.f32 %v7917_v16, %v4923_v13 }
 0x512   :  { %v5055_v37 = vadd.f32 %v7923_v2, %v4990_v31 }
 0x513   :  { %v4302_v1 = vpop.f32.mrf.mxu3  ;;  %v4839_v55 = vpop.f32.mrf.mxu0 }
 0x514   :  { %vm5120_vm12 = vcmp.ge.f32.partialorder %v5055_v37, 0.0  ;;  %v5185_v35 = vmul.f32 %v7319_v14, %v5055_v37  ;;  %v4390_v5 = vadd.f32 %v4302_v1, %v3856_v57  ;;  %v3236_v60 = vpop.f32.mrf.mxu1  ;;  %v3771_v4 = vpop.f32.mrf.mxu2  ;;  %v8134_v57 = vld [vmem:[#allocation4_spill] sm:$0xff] }
 0x515   :  { %v3322_v9 = vadd.f32 %v3236_v60, %v8130_v38 }
 0x516   :  { %v5249_v18 = vsel %vm5120_vm12, %v5055_v37, %v5185_v35  ;;  %v4924_v30 = vadd.f32 %v4836_v45, %v4390_v5 }
 0x517   :  { %5314 = vst.msk [vmem:[%s8038_s4 + $0x198] sm:$0xff] %vm5262_vm4, %v5249_v18  ;;  %v3857_v17 = vadd.f32 %v3771_v4, %v3322_v9 }
 0x518   :  { %v4991_v33 = vmul.f32 %v7917_v16, %v4924_v30 }
 0x51a   :  { %v5056_v0 = vadd.f32 %v7923_v2, %v4991_v33 }
 0x51b   :  { %v4305_v62 = vpop.f32.mrf.mxu3  ;;  %v4842_v50 = vpop.f32.mrf.mxu0 }
 0x51c   :  { %vm5121_vm13 = vcmp.ge.f32.partialorder %v5056_v0, 0.0  ;;  %v5186_v41 = vmul.f32 %v7319_v14, %v5056_v0  ;;  %v4391_v15 = vadd.f32 %v4305_v62, %v3857_v17  ;;  %v3239_v3 = vpop.f32.mrf.mxu1  ;;  %v3774_v53 = vpop.f32.mrf.mxu2  ;;  %v8135_v17 = vld [vmem:[#allocation5_spill] sm:$0xff] }
 0x51d   :  { %v3323_v52 = vadd.f32 %v3239_v3, %v8131_v48 }
 0x51e   :  { %v5250_v59 = vsel %vm5121_vm13, %v5056_v0, %v5186_v41  ;;  %v4925_v39 = vadd.f32 %v4839_v55, %v4391_v15 }
 0x51f   :  { %5315 = vst.msk [vmem:[%s8038_s4 + $0x1a0] sm:$0xff] %vm5262_vm4, %v5250_v59  ;;  %v3858_v19 = vadd.f32 %v3774_v53, %v3323_v52 }
 0x520   :  { %v4992_v40 = vmul.f32 %v7917_v16, %v4925_v39 }
 0x522   :  { %v5057_v46 = vadd.f32 %v7923_v2, %v4992_v40 }
 0x523   :  { %v4308_v47 = vpop.f32.mrf.mxu3  ;;  %v4845_v29 = vpop.f32.mrf.mxu0 }
 0x524   :  { %vm5122_vm14 = vcmp.ge.f32.partialorder %v5057_v46, 0.0  ;;  %v5187_v42 = vmul.f32 %v7319_v14, %v5057_v46  ;;  %v4392_v6 = vadd.f32 %v4308_v47, %v3858_v19  ;;  %v3242_v25 = vpop.f32.mrf.mxu1  ;;  %v3777_v44 = vpop.f32.mrf.mxu2  ;;  %v8136_v19 = vld [vmem:[#allocation7_spill] sm:$0xff] }
 0x525   :  { %v3324_v51 = vadd.f32 %v3242_v25, %v8132_v11 }
 0x526   :  { %v5251_v49 = vsel %vm5122_vm14, %v5057_v46, %v5187_v42  ;;  %v4926_v20 = vadd.f32 %v4842_v50, %v4392_v6 }
 0x527   :  { %5316 = vst.msk [vmem:[%s8038_s4 + $0x1a8] sm:$0xff] %vm5262_vm4, %v5251_v49  ;;  %v3859_v12 = vadd.f32 %v3777_v44, %v3324_v51 }
 0x528   :  { %v4993_v8 = vmul.f32 %v7917_v16, %v4926_v20 }
 0x52a   :  { %v5058_v58 = vadd.f32 %v7923_v2, %v4993_v8 }
 0x52b   :  { %v4311_v36 = vpop.f32.mrf.mxu3  ;;  %v4848_v34 = vpop.f32.mrf.mxu0 }
 0x52c   :  { %vm5123_vm15 = vcmp.ge.f32.partialorder %v5058_v58, 0.0  ;;  %v5188_v28 = vmul.f32 %v7319_v14, %v5058_v58  ;;  %v4393_v32 = vadd.f32 %v4311_v36, %v3859_v12  ;;  %v3245_v61 = vpop.f32.mrf.mxu1  ;;  %v3780_v56 = vpop.f32.mrf.mxu2  ;;  %v8137_v12 = vld [vmem:[#allocation9_spill] sm:$0xff] }
 0x52d   :  { %v3325_v26 = vadd.f32 %v3245_v61, %v8133_v22 }
 0x52e   :  { %v5252_v24 = vsel %vm5123_vm15, %v5058_v58, %v5188_v28  ;;  %v4927_v54 = vadd.f32 %v4845_v29, %v4393_v32 }
 0x52f   :  { %5317 = vst.msk [vmem:[%s8038_s4 + $0x1b0] sm:$0xff] %vm5262_vm4, %v5252_v24  ;;  %v3860_v27 = vadd.f32 %v3780_v56, %v3325_v26 }
 0x530   :  { %v4994_v45 = vmul.f32 %v7917_v16, %v4927_v54 }
 0x532   :  { %v5059_v23 = vadd.f32 %v7923_v2, %v4994_v45  ;;  %v8138_v45 = vld [vmem:[#allocation11_spill] sm:$0xff] }
 0x533   :  { %v4314_v7 = vpop.f32.mrf.mxu3  ;;  %v4851_v21 = vpop.f32.mrf.mxu0 }
 0x534   :  { %vm5124_vm0 = vcmp.ge.f32.partialorder %v5059_v23, 0.0  ;;  %v5189_v63 = vmul.f32 %v7319_v14, %v5059_v23  ;;  %v4394_v43 = vadd.f32 %v4314_v7, %v3860_v27  ;;  %v3248_v10 = vpop.f32.mrf.mxu1  ;;  %v3783_v13 = vpop.f32.mrf.mxu2 }
 0x535   :  { %v3326_v37 = vadd.f32 %v3248_v10, %v8134_v57 }
 0x536   :  { %v5253_v31 = vsel %vm5124_vm0, %v5059_v23, %v5189_v63  ;;  %v4928_v1 = vadd.f32 %v4848_v34, %v4394_v43 }
 0x537   :  { %5318 = vst.msk [vmem:[%s8038_s4 + $0x1b8] sm:$0xff] %vm5262_vm4, %v5253_v31  ;;  %v3861_v35 = vadd.f32 %v3783_v13, %v3326_v37 }
 0x538   :  { %v4995_v55 = vmul.f32 %v7917_v16, %v4928_v1 }
 0x53a   :  { %v5060_v5 = vadd.f32 %v7923_v2, %v4995_v55  ;;  %v8139_v55 = vld [vmem:[#allocation13_spill] sm:$0xff] }
 0x53b   :  { %v4317_v60 = vpop.f32.mrf.mxu3  ;;  %v4854_v4 = vpop.f32.mrf.mxu0 }
 0x53c   :  { %vm5125_vm2 = vcmp.ge.f32.partialorder %v5060_v5, 0.0  ;;  %v5190_v18 = vmul.f32 %v7319_v14, %v5060_v5  ;;  %v4395_v38 = vadd.f32 %v4317_v60, %v3861_v35  ;;  %v3251_v9 = vpop.f32.mrf.mxu1  ;;  %v3786_v30 = vpop.f32.mrf.mxu2 }
 0x53d   :  { %v3327_v0 = vadd.f32 %v3251_v9, %v8135_v17 }
 0x53e   :  { %v5254_v33 = vsel %vm5125_vm2, %v5060_v5, %v5190_v18  ;;  %v4929_v62 = vadd.f32 %v4851_v21, %v4395_v38 }
 0x53f   :  { %5319 = vst.msk [vmem:[%s8038_s4 + $0x1c0] sm:$0xff] %vm5262_vm4, %v5254_v33  ;;  %v3862_v41 = vadd.f32 %v3786_v30, %v3327_v0 }
 0x540   :  { %v4996_v50 = vmul.f32 %v7917_v16, %v4929_v62 }
 0x542   :  { %v5061_v15 = vadd.f32 %v7923_v2, %v4996_v50  ;;  %v8140_v50 = vld [vmem:[#allocation15_spill] sm:$0xff] }
 0x543   :  { %v4320_v3 = vpop.f32.mrf.mxu3  ;;  %v4857_v53 = vpop.f32.mrf.mxu0 }
 0x544   :  { %vm5126_vm3 = vcmp.ge.f32.partialorder %v5061_v15, 0.0  ;;  %v5191_v59 = vmul.f32 %v7319_v14, %v5061_v15  ;;  %v4396_v48 = vadd.f32 %v4320_v3, %v3862_v41  ;;  %v3254_v52 = vpop.f32.mrf.mxu1  ;;  %v3789_v39 = vpop.f32.mrf.mxu2 }
 0x545   :  { %v3328_v46 = vadd.f32 %v3254_v52, %v8136_v19 }
 0x546   :  { %v5255_v40 = vsel %vm5126_vm3, %v5061_v15, %v5191_v59  ;;  %v4930_v47 = vadd.f32 %v4854_v4, %v4396_v48 }
 0x547   :  { %5320 = vst.msk [vmem:[%s8038_s4 + $0x1c8] sm:$0xff] %vm5262_vm4, %v5255_v40  ;;  %v3863_v42 = vadd.f32 %v3789_v39, %v3328_v46 }
 0x548   :  { %v4997_v29 = vmul.f32 %v7917_v16, %v4930_v47 }
 0x54a   :  { %v5062_v6 = vadd.f32 %v7923_v2, %v4997_v29 }
 0x54b   :  { %v4323_v25 = vpop.f32.mrf.mxu3  ;;  %v4860_v20 = vpop.f32.mrf.mxu0 }
 0x54c   :  { %vm5127_vm5 = vcmp.ge.f32.partialorder %v5062_v6, 0.0  ;;  %v5192_v44 = vmul.f32 %v7319_v14, %v5062_v6  ;;  %v4397_v49 = vadd.f32 %v4323_v25, %v3863_v42  ;;  %v3257_v11 = vpop.f32.mrf.mxu1  ;;  %v3792_v51 = vpop.f32.mrf.mxu2 }
 0x54d   :  { %v3329_v58 = vadd.f32 %v3257_v11, %v8137_v12 }
 0x54e   :  { %v5256_v8 = vsel %vm5127_vm5, %v5062_v6, %v5192_v44  ;;  %v4931_v36 = vadd.f32 %v4857_v53, %v4397_v49 }
 0x54f   :  { %5321 = vst.msk [vmem:[%s8038_s4 + $0x1d0] sm:$0xff] %vm5262_vm4, %v5256_v8  ;;  %v3864_v28 = vadd.f32 %v3792_v51, %v3329_v58 }
 0x550   :  { %v4998_v34 = vmul.f32 %v7917_v16, %v4931_v36 }
 0x552   :  { %v5063_v32 = vadd.f32 %v7923_v2, %v4998_v34 }
 0x553   :  { %v4326_v61 = vpop.f32.mrf.mxu3  ;;  %v4863_v7 = vpop.f32.mrf.mxu0 }
 0x554   :  { %vm5128_vm6 = vcmp.ge.f32.partialorder %v5063_v32, 0.0  ;;  %v5193_v56 = vmul.f32 %v7319_v14, %v5063_v32  ;;  %v4398_v24 = vadd.f32 %v4326_v61, %v3864_v28  ;;  %v3260_v22 = vpop.f32.mrf.mxu1  ;;  %v3795_v26 = vpop.f32.mrf.mxu2 }
 0x555   :  { %v3330_v27 = vadd.f32 %v3260_v22, %v8138_v45 }
 0x556   :  { %v5257_v54 = vsel %vm5128_vm6, %v5063_v32, %v5193_v56  ;;  %v4932_v23 = vadd.f32 %v4860_v20, %v4398_v24 }
 0x557   :  { %5322 = vst.msk [vmem:[%s8038_s4 + $0x1d8] sm:$0xff] %vm5262_vm4, %v5257_v54  ;;  %v3865_v63 = vadd.f32 %v3795_v26, %v3330_v27 }
 0x558   :  { %v4999_v21 = vmul.f32 %v7917_v16, %v4932_v23 }
 0x55a   :  { %v5064_v43 = vadd.f32 %v7923_v2, %v4999_v21 }
 0x55b   :  { %v4329_v10 = vpop.f32.mrf.mxu3  ;;  %v4866_v18 = vpop.f32.mrf.mxu0 }
 0x55c   :  { %vm5129_vm7 = vcmp.ge.f32.partialorder %v5064_v43, 0.0  ;;  %v5194_v13 = vmul.f32 %v7319_v14, %v5064_v43  ;;  %v4399_v31 = vadd.f32 %v4329_v10, %v3865_v63  ;;  %v3263_v57 = vpop.f32.mrf.mxu1  ;;  %v3798_v37 = vpop.f32.mrf.mxu2 }
 0x55d   :  { %v3331_v35 = vadd.f32 %v3263_v57, %v8139_v55 }
 0x55e   :  { %v5258_v1 = vsel %vm5129_vm7, %v5064_v43, %v5194_v13  ;;  %v4933_v5 = vadd.f32 %v4863_v7, %v4399_v31 }
 0x55f   :  { %5323 = vst.msk [vmem:[%s8038_s4 + $0x1e0] sm:$0xff] %vm5262_vm4, %v5258_v1  ;;  %v3866_v4 = vadd.f32 %v3798_v37, %v3331_v35 }
 0x560   :  { %v5000_v60 = vmul.f32 %v7917_v16, %v4933_v5 }
 0x562   :  { %v5065_v38 = vadd.f32 %v7923_v2, %v5000_v60 }
 0x563   :  { %v4332_v9 = vpop.f32.mrf.mxu3  ;;  %v4869_v52 = vpop.f32.mrf.mxu0 }
 0x564   :  { %vm5130_vm8 = vcmp.ge.f32.partialorder %v5065_v38, 0.0  ;;  %v5195_v30 = vmul.f32 %v7319_v14, %v5065_v38  ;;  %v4400_v33 = vadd.f32 %v4332_v9, %v3866_v4  ;;  %v3266_v17 = vpop.f32.mrf.mxu1  ;;  %v3801_v0 = vpop.f32.mrf.mxu2 }
 0x565   :  { %v3332_v41 = vadd.f32 %v3266_v17, %v8140_v50 }
 0x566   :  { %v5259_v62 = vsel %vm5130_vm8, %v5065_v38, %v5195_v30  ;;  %v4934_v15 = vadd.f32 %v4866_v18, %v4400_v33 }
 0x567   :  { %5324 = vst.msk [vmem:[%s8038_s4 + $0x1e8] sm:$0xff] %vm5262_vm4, %v5259_v62  ;;  %v3867_v53 = vadd.f32 %v3801_v0, %v3332_v41 }
 0x568   :  { %v5001_v3 = vmul.f32 %v7917_v16, %v4934_v15 }
 0x56a   :  { %v5066_v59 = vadd.f32 %v7923_v2, %v5001_v3 }
 0x56b   :  { %v4335_v48 = vpop.f32.mrf.mxu3 }
 0x56c   :  { %vm5131_vm1 = vcmp.ge.f32.partialorder %v5066_v59, 0.0  ;;  %v5196_v39 = vmul.f32 %v7319_v14, %v5066_v59  ;;  %v4401_v40 = vadd.f32 %v4335_v48, %v3867_v53 }
 0x56e   :  { %v5260_v19 = vsel %vm5131_vm1, %v5066_v59, %v5196_v39  ;;  %v4935_v46 = vadd.f32 %v4869_v52, %v4401_v40 }
 0x56f   :  { %5325 = vst.msk [vmem:[%s8038_s4 + $0x1f0] sm:$0xff] %vm5262_vm4, %v5260_v19 }
 0x570   :  { %v5002_v47 = vmul.f32 %v7917_v16, %v4935_v46 }
 0x572   :  { %v5067_v29 = vadd.f32 %v7923_v2, %v5002_v47 }
 0x574   :  { %vm5132_vm9 = vcmp.ge.f32.partialorder %v5067_v29, 0.0  ;;  %v5197_v42 = vmul.f32 %v7319_v14, %v5067_v29 }
 0x576   :  { %v5261_v6 = vsel %vm5132_vm9, %v5067_v29, %v5197_v42 }
 0x577   :  { %5326 = vst.msk [vmem:[%s8038_s4 + $0x1f8] sm:$0xff] %vm5262_vm4, %v5261_v6 }

</bundles_post_ra>
